<compile_context>
chip_gen: v6e
topology: v6e:2x2x1
jax: 0.10.0
libtpu: 0.0.40
codegen_flags: <defaults>
</compile_context>

<pallas_src>
import functools

import jax
import jax.numpy as jnp
from jax.experimental import pallas as pl
from jax.experimental.pallas import tpu as pltpu

NDF = 128            # fixed by the module: Conv2d(nc, 128, ...)
BN_EPS = 1e-5
SLOPE = 0.2
# <= ~48 MiB keeps v7x (64 MiB physical / TC) safe; v5e/v6e have 128 MiB.
_VMEM_LIMIT = 48 * 1024 * 1024


def _cparams():
    return pltpu.CompilerParams(dimension_semantics=("parallel",),
                                vmem_limit_bytes=_VMEM_LIMIT)


# ------------------------------ Pallas kernels ------------------------------

def _fused_conv_kernel(x1_ref, w1_ref, w2_ref, y2_ref, psum_ref, psq_ref):
    """Conv1(4x4,s2,p1)+LeakyReLU fused with Conv2(4x4,s2,p1) + BN partials.

    x1_ref: (NB, 4, 25, K1p) bf16  layer-1 im2col; dim1 = s2d sub-position
            (sh, sw), dim2 = padded s2d grid position (i, j) of conv2's input,
            K = (kh, kw, ci) zero-padded to K1p (lane-dense).  Rows that map to
            conv-1 padding are all-zero, which yields exactly-zero activations.
    w1_ref: (K1p, 128) bf16   conv1 weight, rows (kh, kw, ci)
    w2_ref: (2048, 128) bf16  conv2 weight, rows (dh, dw, sh, sw, ci)
    y2_ref: (NB*16, 128) f32  pre-BN conv2 output, rows (b, oh, ow)
    psum/psq: (1, 1, 128) f32 per-tile BatchNorm partials (sum, sum of squares)
    """
    nb = x1_ref.shape[0]
    k1p = x1_ref.shape[-1]
    c = y2_ref.shape[-1]

    x1 = x1_ref[...]                              # bf16, no f32 round trip
    w1 = w1_ref[...]

    # ---- layer 1: lane-dense (rows,128)@(128,128) MXU matmuls, one per s2d
    # sub-position (disjoint row sets -> no K-accumulator chain), f32 accum.
    pieces = [
        jnp.dot(x1[:, ss].reshape(nb * 25, k1p), w1,
                preferred_element_type=jnp.float32)
        for ss in range(4)
    ]
    a = jnp.concatenate(pieces, axis=1)           # (nb*25, 512) lanes=(sh,sw,ci)
    a = jnp.where(a >= 0, a, SLOPE * a).astype(jnp.bfloat16)
    a = a.reshape(nb, 5, 5, 4 * c)                # padded s2d of conv1 output

    # ---- layer 2: single K-concatenated matmul (K = 2048) over the 4 (dh,dw)
    # taps; unit-stride slices on major dims only.
    taps = [a[:, dh:dh + 4, dw:dw + 4, :].reshape(nb * 16, 4 * c)
            for dh in range(2) for dw in range(2)]
    x2 = jnp.concatenate(taps, axis=1)            # (nb*16, 2048) bf16
    y2 = jnp.dot(x2, w2_ref[...], preferred_element_type=jnp.float32)

    y2_ref[...] = y2
    psum_ref[...] = jnp.sum(y2, axis=0, keepdims=True).reshape(1, 1, c)
    psq_ref[...] = jnp.sum(y2 * y2, axis=0, keepdims=True).reshape(1, 1, c)


def _bn_head_kernel(y2_ref, psum_ref, psq_ref, g_ref, b_ref, w3_ref, o_ref, *,
                    inv_m):
    """BatchNorm (batch stats) + LeakyReLU + Conv(128->1, 4x4) + sigmoid.

    y2_ref:   (NB*16, 128) f32   pre-BN conv2 activations, rows (b, oh, ow)
    psum/psq: (NT, 1, 128) f32   per-tile partials over the whole batch
    g/b:      (1, 128)     f32   BN affine (gamma, beta)
    w3_ref:   (2048, 128)  f32   final conv weight, rows (kh, kw, ci); only
                                 column 0 is real (N padded to 128 for a
                                 lane-dense MXU matmul + lane-dense store)
    o_ref:    (NB, 1, 128) f32   sigmoid outputs in lane 0
    """
    c = y2_ref.shape[-1]
    nb = o_ref.shape[0]

    # Batch statistics (training-mode, biased variance).  Recomputed per grid
    # step: it is one vreg of VPU/EUP work hidden under the y2 tile DMA, and
    # keeping it inline lets this axis stay "parallel" (megacore) instead of
    # forcing "arbitrary" for a program_id==0 hoist into scratch.
    mean = jnp.sum(psum_ref[...], axis=0) * inv_m                  # (1, c)
    var = jnp.sum(psq_ref[...], axis=0) * inv_m - mean * mean
    var = jnp.maximum(var, 0.0)                                    # guard rsqrt
    scale = g_ref[...] * jax.lax.rsqrt(var + BN_EPS)               # (1, c)
    shift = b_ref[...] - mean * scale                              # (1, c)

    a = y2_ref[...] * scale + shift                                # (nb*16, c)
    a = jnp.where(a >= 0, a, SLOPE * a)
    a2 = a.reshape(nb, 16 * c)                                     # (nb, 2048)
    z = jnp.dot(a2, w3_ref[...], preferred_element_type=jnp.float32)
    o_ref[...] = jax.nn.sigmoid(z).reshape(nb, 1, c)


# ------------------------------- JAX glue -----------------------------------

def _build_x1(x_nhwc, k1p):
    """Layer-1 im2col laid out as the padded space-to-depth grid of layer 2.

    Returns (N, 4, 25, k1p) bf16:
      dim1 = (sh, sw) s2d sub-position, dim2 = (i, j) padded s2d position,
      K = (kh, kw, ci) zero-padded to k1p.  Conv-1 output position for entry
      (i, j, sh, sw) is (2i+sh-1, 2j+sw-1); out-of-range rows are zero, which
      reproduces conv-2's zero padding exactly (no bias, lrelu(0)=0).
    """
    n, h, w, c = x_nhwc.shape
    xp = jnp.pad(x_nhwc, ((0, 0), (1, 1), (1, 1), (0, 0)))          # conv1 pad
    taps = [xp[:, kh:kh + 15:2, kw:kw + 15:2, :]                    # (n,8,8,c)
            for kh in range(4) for kw in range(4)]
    patches = jnp.stack(taps, axis=3).reshape(n, 8, 8, 16 * c)      # K=(kh,kw,ci)
    pp = jnp.pad(patches, ((0, 0), (1, 1), (1, 1), (0, 0)))         # conv2 pad
    pieces = [pp[:, sh:sh + 9:2, sw:sw + 9:2, :]                    # (n,5,5,16c)
              for sh in range(2) for sw in range(2)]
    x1 = jnp.stack(pieces, axis=1).reshape(n, 4, 25, 16 * c)
    x1 = jnp.pad(x1, ((0, 0), (0, 0), (0, 0), (0, k1p - 16 * c)))
    return x1.astype(jnp.bfloat16)


def _w1_to_mat(w1, k1p):
    """PyTorch (128, nc, 4, 4) -> (k1p, 128); rows (kh, kw, ci), zero-padded."""
    cout, cin, kh, kw = w1.shape
    m = jnp.transpose(w1, (2, 3, 1, 0)).reshape(kh * kw * cin, cout)
    m = jnp.pad(m, ((0, k1p - kh * kw * cin), (0, 0)))
    return m.astype(jnp.bfloat16)


def _w2_to_mat(w2):
    """PyTorch (128, 128, 4, 4) -> (2048, 128); rows (dh, dw, sh, sw, ci)."""
    cout, cin, _, _ = w2.shape
    w6 = w2.reshape(cout, cin, 2, 2, 2, 2)          # (co, ci, dh, sh, dw, sw)
    w6 = jnp.transpose(w6, (2, 4, 3, 5, 1, 0))      # (dh, dw, sh, sw, ci, co)
    return w6.reshape(16 * cin, cout).astype(jnp.bfloat16)


def _w3_to_mat(w3):
    """PyTorch (1, 128, 4, 4) -> (2048, 128) f32; only column 0 is real."""
    _, cin, kh, kw = w3.shape
    col = jnp.transpose(w3, (2, 3, 1, 0)).reshape(kh * kw * cin, 1)
    return jnp.pad(col, ((0, 0), (0, NDF - 1))).astype(jnp.float32)


def _pick_tile(n, cap):
    """Largest divisor of n <= cap, preferring multiples of 16, then 8."""
    if n <= cap:
        return n
    best_any, best8 = None, None
    for t in range(cap, 0, -1):
        if n % t:
            continue
        if t % 16 == 0:
            return t
        if best8 is None and t % 8 == 0:
            best8 = t
        if best_any is None:
            best_any = t
    if best8 is not None:
        return best8
    return best_any if best_any is not None else 1


# ----------------------------- Discriminator --------------------------------

def init_params(key, nc):
    k1, k2, k3, k4 = jax.random.split(key, 4)
    return {
        "w1": 0.02 * jax.random.normal(k1, (NDF, nc, 4, 4), jnp.float32),
        "w2": 0.02 * jax.random.normal(k2, (NDF, NDF, 4, 4), jnp.float32),
        "w3": 0.02 * jax.random.normal(k3, (1, NDF, 4, 4), jnp.float32),
        "gamma": 1.0 + 0.02 * jax.random.normal(k4, (NDF,), jnp.float32),
        "beta": jnp.zeros((NDF,), jnp.float32),
    }


@jax.jit
def discriminator_forward(params, x_nchw):
    n, nc, h, w = x_nchw.shape
    # Canonical input size for this head: 16x16 so the final 4x4/s1/p0 conv -> 1x1.
    assert h == 16 and w == 16, "Discriminator_LC head expects 16x16 inputs"

    x = jnp.transpose(x_nchw, (0, 2, 3, 1)).astype(jnp.float32)      # NHWC
    k1p = ((16 * nc + 127) // 128) * 128                             # lane-dense K

    x1 = _build_x1(x, k1p)                                  # (n, 4, 25, k1p) bf16
    w1k = _w1_to_mat(params["w1"], k1p)                     # (k1p, 128) bf16
    w2k = _w2_to_mat(params["w2"])                          # (2048, 128) bf16
    w3k = _w3_to_mat(params["w3"])                          # (2048, 128) f32
    g = params["gamma"].reshape(1, NDF).astype(jnp.float32)
    b = params["beta"].reshape(1, NDF).astype(jnp.float32)

    # ------- fused Conv1 + LeakyReLU + Conv2 (+ one-pass BN partials) -------
    nb1 = _pick_tile(n, 64)
    nt1 = n // nb1
    y2, psum, psq = pl.pallas_call(
        _fused_conv_kernel,
        out_shape=(jax.ShapeDtypeStruct((n * 16, NDF), jnp.float32),
                   jax.ShapeDtypeStruct((nt1, 1, NDF), jnp.float32),
                   jax.ShapeDtypeStruct((nt1, 1, NDF), jnp.float32)),
        grid=(nt1,),
        in_specs=[
            pl.BlockSpec((nb1, 4, 25, k1p), lambda i: (i, 0, 0, 0)),
            pl.BlockSpec((k1p, NDF), lambda i: (0, 0)),
            pl.BlockSpec((16 * NDF, NDF), lambda i: (0, 0)),
        ],
        out_specs=(pl.BlockSpec((nb1 * 16, NDF), lambda i: (i, 0)),
                   pl.BlockSpec((1, 1, NDF), lambda i: (i, 0, 0)),
                   pl.BlockSpec((1, 1, NDF), lambda i: (i, 0, 0))),
        compiler_params=_cparams(),
    )(x1, w1k, w2k)

    # ------ BatchNorm (batch stats) + LeakyReLU + Conv(128->1) + sigmoid -----
    nb3 = _pick_tile(n, 128)
    out = pl.pallas_call(
        functools.partial(_bn_head_kernel, inv_m=1.0 / float(n * 16)),
        out_shape=jax.ShapeDtypeStruct((n, 1, NDF), jnp.float32),
        grid=(n // nb3,),
        in_specs=[
            pl.BlockSpec((nb3 * 16, NDF), lambda i: (i, 0)),
            pl.BlockSpec((nt1, 1, NDF), lambda i: (0, 0, 0)),
            pl.BlockSpec((nt1, 1, NDF), lambda i: (0, 0, 0)),
            pl.BlockSpec((1, NDF), lambda i: (0, 0)),
            pl.BlockSpec((1, NDF), lambda i: (0, 0)),
            pl.BlockSpec((16 * NDF, NDF), lambda i: (0, 0)),
        ],
        out_specs=pl.BlockSpec((nb3, 1, NDF), lambda i: (i, 0, 0)),
        compiler_params=_cparams(),
    )(y2, psum, psq, g, b, w3k)

    return out[:, 0, 0]                        # == output.view(-1,1).squeeze(1)


if __name__ == "__main__":
    key = jax.random.PRNGKey(0)
    k_param, k_in = jax.random.split(key)
    nc, batch, img = 4, 2, 16                  # 16x16 so the final conv -> 1x1
    params = init_params(k_param, nc)
    x = jax.random.normal(k_in, (batch, nc, img, img), jnp.float32)

    out = jax.block_until_ready(discriminator_forward(params, x))
    assert out.shape == (batch,), out.shape
    assert bool(jnp.all(jnp.isfinite(out)))
    assert bool(jnp.all((out >= 0.0) & (out <= 1.0)))
    print("KERNEL_OK")
</pallas_src>

<mosaic_0001>
module attributes {stable_mosaic.version = 11 : i64} {
  func.func @_fused_conv_kernel(%arg0: i32, %arg1: memref<2x4x25x128xbf16, #tpu.memory_space<vmem>>, %arg2: memref<128x128xbf16, #tpu.memory_space<vmem>>, %arg3: memref<2048x128xbf16, #tpu.memory_space<vmem>>, %arg4: memref<32x128xf32, #tpu.memory_space<vmem>>, %arg5: memref<1x1x128xf32, #tpu.memory_space<vmem>>, %arg6: memref<1x1x128xf32, #tpu.memory_space<vmem>>) attributes {dimension_semantics = [#tpu.dimension_semantics<parallel>], iteration_bounds = array<i64: 1>, scalar_prefetch = 0 : i64, scratch_operands = 0 : i64, tpu.core_type = #tpu.core_type<tc>, window_params = [{transform_indices = @transform_0, window_bounds = array<i64: 2, 4, 25, 128>}, {pipeline_mode = #tpu.pipeline_mode<synchronous>, transform_indices = @transform_1, window_bounds = array<i64: 128, 128>}, {pipeline_mode = #tpu.pipeline_mode<synchronous>, transform_indices = @transform_2, window_bounds = array<i64: 2048, 128>}, {transform_indices = @transform_3, window_bounds = array<i64: 32, 128>}, {transform_indices = @transform_4, window_bounds = array<i64: 1, 1, 128>}, {transform_indices = @transform_5, window_bounds = array<i64: 1, 1, 128>}]} {
    %c0 = arith.constant 0 : index
    %c0_0 = arith.constant 0 : index
    %c0_1 = arith.constant 0 : index
    %c0_2 = arith.constant 0 : index
    %0 = vector.load %arg1[%c0, %c0_0, %c0_1, %c0_2] : memref<2x4x25x128xbf16, #tpu.memory_space<vmem>>, vector<2x4x25x128xbf16>
    %c0_3 = arith.constant 0 : index
    %c0_4 = arith.constant 0 : index
    %1 = vector.load %arg2[%c0_3, %c0_4] : memref<128x128xbf16, #tpu.memory_space<vmem>>, vector<128x128xbf16>
    %2 = vector.extract_strided_slice %0 {offsets = [0, 0, 0, 0], sizes = [2, 1, 25, 128], strides = [1, 1, 1, 1]} : vector<2x4x25x128xbf16> to vector<2x1x25x128xbf16>
    %3 = vector.shape_cast %2 : vector<2x1x25x128xbf16> to vector<2x25x128xbf16>
    %4 = vector.shape_cast %3 : vector<2x25x128xbf16> to vector<50x128xbf16>
    %cst = arith.constant dense<0.000000e+00> : vector<50x128xf32>
    %5 = tpu.matmul %4, %1, %cst {dimension_numbers = #tpu.dot_dimension_numbers<[1], [0], [0], [1], [0, 0, 1, 1], [], []>} : vector<50x128xbf16>, vector<128x128xbf16>, vector<50x128xf32> -> vector<50x128xf32>
    %6 = vector.extract_strided_slice %0 {offsets = [0, 1, 0, 0], sizes = [2, 1, 25, 128], strides = [1, 1, 1, 1]} : vector<2x4x25x128xbf16> to vector<2x1x25x128xbf16>
    %7 = vector.shape_cast %6 : vector<2x1x25x128xbf16> to vector<2x25x128xbf16>
    %8 = vector.shape_cast %7 : vector<2x25x128xbf16> to vector<50x128xbf16>
    %cst_5 = arith.constant dense<0.000000e+00> : vector<50x128xf32>
    %9 = tpu.matmul %8, %1, %cst_5 {dimension_numbers = #tpu.dot_dimension_numbers<[1], [0], [0], [1], [0, 0, 1, 1], [], []>} : vector<50x128xbf16>, vector<128x128xbf16>, vector<50x128xf32> -> vector<50x128xf32>
    %10 = vector.extract_strided_slice %0 {offsets = [0, 2, 0, 0], sizes = [2, 1, 25, 128], strides = [1, 1, 1, 1]} : vector<2x4x25x128xbf16> to vector<2x1x25x128xbf16>
    %11 = vector.shape_cast %10 : vector<2x1x25x128xbf16> to vector<2x25x128xbf16>
    %12 = vector.shape_cast %11 : vector<2x25x128xbf16> to vector<50x128xbf16>
    %cst_6 = arith.constant dense<0.000000e+00> : vector<50x128xf32>
    %13 = tpu.matmul %12, %1, %cst_6 {dimension_numbers = #tpu.dot_dimension_numbers<[1], [0], [0], [1], [0, 0, 1, 1], [], []>} : vector<50x128xbf16>, vector<128x128xbf16>, vector<50x128xf32> -> vector<50x128xf32>
    %14 = vector.extract_strided_slice %0 {offsets = [0, 3, 0, 0], sizes = [2, 1, 25, 128], strides = [1, 1, 1, 1]} : vector<2x4x25x128xbf16> to vector<2x1x25x128xbf16>
    %15 = vector.shape_cast %14 : vector<2x1x25x128xbf16> to vector<2x25x128xbf16>
    %16 = vector.shape_cast %15 : vector<2x25x128xbf16> to vector<50x128xbf16>
    %cst_7 = arith.constant dense<0.000000e+00> : vector<50x128xf32>
    %17 = tpu.matmul %16, %1, %cst_7 {dimension_numbers = #tpu.dot_dimension_numbers<[1], [0], [0], [1], [0, 0, 1, 1], [], []>} : vector<50x128xbf16>, vector<128x128xbf16>, vector<50x128xf32> -> vector<50x128xf32>
    %18 = tpu.concatenate %5, %9, %13, %17 in 1 : vector<50x128xf32>, vector<50x128xf32>, vector<50x128xf32>, vector<50x128xf32> -> vector<50x512xf32>
    %cst_8 = arith.constant 0.000000e+00 : f32
    %19 = vector.broadcast %cst_8 : f32 to vector<50x512xf32>
    %20 = arith.cmpf oge, %18, %19 : vector<50x512xf32>
    %cst_9 = arith.constant 2.000000e-01 : f32
    %21 = vector.broadcast %cst_9 : f32 to vector<50x512xf32>
    %22 = arith.mulf %21, %18 : vector<50x512xf32>
    %23 = arith.select %20, %18, %22 : vector<50x512xi1>, vector<50x512xf32>
    %24 = arith.truncf %23 : vector<50x512xf32> to vector<50x512xbf16>
    %25 = vector.shape_cast %24 : vector<50x512xbf16> to vector<2x5x5x512xbf16>
    %26 = vector.extract_strided_slice %25 {offsets = [0, 0, 0, 0], sizes = [2, 4, 4, 512], strides = [1, 1, 1, 1]} : vector<2x5x5x512xbf16> to vector<2x4x4x512xbf16>
    %27 = vector.shape_cast %26 : vector<2x4x4x512xbf16> to vector<32x512xbf16>
    %28 = vector.extract_strided_slice %25 {offsets = [0, 0, 1, 0], sizes = [2, 4, 4, 512], strides = [1, 1, 1, 1]} : vector<2x5x5x512xbf16> to vector<2x4x4x512xbf16>
    %29 = vector.shape_cast %28 : vector<2x4x4x512xbf16> to vector<32x512xbf16>
    %30 = vector.extract_strided_slice %25 {offsets = [0, 1, 0, 0], sizes = [2, 4, 4, 512], strides = [1, 1, 1, 1]} : vector<2x5x5x512xbf16> to vector<2x4x4x512xbf16>
    %31 = vector.shape_cast %30 : vector<2x4x4x512xbf16> to vector<32x512xbf16>
    %32 = vector.extract_strided_slice %25 {offsets = [0, 1, 1, 0], sizes = [2, 4, 4, 512], strides = [1, 1, 1, 1]} : vector<2x5x5x512xbf16> to vector<2x4x4x512xbf16>
    %33 = vector.shape_cast %32 : vector<2x4x4x512xbf16> to vector<32x512xbf16>
    %34 = tpu.concatenate %27, %29, %31, %33 in 1 : vector<32x512xbf16>, vector<32x512xbf16>, vector<32x512xbf16>, vector<32x512xbf16> -> vector<32x2048xbf16>
    %c0_10 = arith.constant 0 : index
    %c0_11 = arith.constant 0 : index
    %35 = vector.load %arg3[%c0_10, %c0_11] : memref<2048x128xbf16, #tpu.memory_space<vmem>>, vector<2048x128xbf16>
    %cst_12 = arith.constant dense<0.000000e+00> : vector<32x128xf32>
    %36 = tpu.matmul %34, %35, %cst_12 {dimension_numbers = #tpu.dot_dimension_numbers<[1], [0], [0], [1], [0, 0, 1, 1], [], []>} : vector<32x2048xbf16>, vector<2048x128xbf16>, vector<32x128xf32> -> vector<32x128xf32>
    %c0_13 = arith.constant 0 : index
    %c0_14 = arith.constant 0 : index
    %37 = vector.load %arg4[%c0_13, %c0_14] : memref<32x128xf32, #tpu.memory_space<vmem>>, vector<32x128xf32>
    tpu.vector_store %arg4[%c0_13, %c0_14], %36 {strides = array<i32>} : memref<32x128xf32, #tpu.memory_space<vmem>>, vector<32x128xf32>,
    %cst_15 = arith.constant dense<0.000000e+00> : vector<128xf32>
    %38 = vector.multi_reduction <add>, %36, %cst_15 [0] : vector<32x128xf32> to vector<128xf32>
    %39 = vector.shape_cast %38 : vector<128xf32> to vector<1x128xf32>
    %40 = vector.shape_cast %39 : vector<1x128xf32> to vector<1x1x128xf32>
    %c0_16 = arith.constant 0 : index
    %c0_17 = arith.constant 0 : index
    %c0_18 = arith.constant 0 : index
    %41 = vector.load %arg5[%c0_16, %c0_17, %c0_18] : memref<1x1x128xf32, #tpu.memory_space<vmem>>, vector<1x1x128xf32>
    tpu.vector_store %arg5[%c0_16, %c0_17, %c0_18], %40 {strides = array<i32>} : memref<1x1x128xf32, #tpu.memory_space<vmem>>, vector<1x1x128xf32>,
    %42 = arith.mulf %36, %36 : vector<32x128xf32>
    %cst_19 = arith.constant dense<0.000000e+00> : vector<128xf32>
    %43 = vector.multi_reduction <add>, %42, %cst_19 [0] : vector<32x128xf32> to vector<128xf32>
    %44 = vector.shape_cast %43 : vector<128xf32> to vector<1x128xf32>
    %45 = vector.shape_cast %44 : vector<1x128xf32> to vector<1x1x128xf32>
    %c0_20 = arith.constant 0 : index
    %c0_21 = arith.constant 0 : index
    %c0_22 = arith.constant 0 : index
    %46 = vector.load %arg6[%c0_20, %c0_21, %c0_22] : memref<1x1x128xf32, #tpu.memory_space<vmem>>, vector<1x1x128xf32>
    tpu.vector_store %arg6[%c0_20, %c0_21, %c0_22], %45 {strides = array<i32>} : memref<1x1x128xf32, #tpu.memory_space<vmem>>, vector<1x1x128xf32>,
    return
  }
  func.func @transform_0(%arg0: i32) -> (i32, i32, i32, i32) {
    %c0_i32 = arith.constant 0 : i32
    %c0_i32_0 = arith.constant 0 : i32
    %c0_i32_1 = arith.constant 0 : i32
    %c0_i32_2 = arith.constant 0 : i32
    return %arg0, %c0_i32, %c0_i32_0, %c0_i32_1 : i32, i32, i32, i32
  }
  func.func @transform_1(%arg0: i32) -> (i32, i32) {
    %c0_i32 = arith.constant 0 : i32
    %c0_i32_0 = arith.constant 0 : i32
    %c0_i32_1 = arith.constant 0 : i32
    return %c0_i32, %c0_i32_0 : i32, i32
  }
  func.func @transform_2(%arg0: i32) -> (i32, i32) {
    %c0_i32 = arith.constant 0 : i32
    %c0_i32_0 = arith.constant 0 : i32
    %c0_i32_1 = arith.constant 0 : i32
    return %c0_i32, %c0_i32_0 : i32, i32
  }
  func.func @transform_3(%arg0: i32) -> (i32, i32) {
    %c0_i32 = arith.constant 0 : i32
    %c0_i32_0 = arith.constant 0 : i32
    return %arg0, %c0_i32 : i32, i32
  }
  func.func @transform_4(%arg0: i32) -> (i32, i32, i32) {
    %c0_i32 = arith.constant 0 : i32
    %c0_i32_0 = arith.constant 0 : i32
    %c0_i32_1 = arith.constant 0 : i32
    return %arg0, %c0_i32, %c0_i32_0 : i32, i32, i32
  }
  func.func @transform_5(%arg0: i32) -> (i32, i32, i32) {
    %c0_i32 = arith.constant 0 : i32
    %c0_i32_0 = arith.constant 0 : i32
    %c0_i32_1 = arith.constant 0 : i32
    return %arg0, %c0_i32, %c0_i32_0 : i32, i32, i32
  }
}

module attributes {stable_mosaic.version = 11 : i64} {
  func.func @_bn_head_kernel(%arg0: i32, %arg1: memref<32x128xf32, #tpu.memory_space<vmem>>, %arg2: memref<1x1x128xf32, #tpu.memory_space<vmem>>, %arg3: memref<1x1x128xf32, #tpu.memory_space<vmem>>, %arg4: memref<1x128xf32, #tpu.memory_space<vmem>>, %arg5: memref<1x128xf32, #tpu.memory_space<vmem>>, %arg6: memref<2048x128xf32, #tpu.memory_space<vmem>>, %arg7: memref<2x1x128xf32, #tpu.memory_space<vmem>>) attributes {dimension_semantics = [#tpu.dimension_semantics<parallel>], iteration_bounds = array<i64: 1>, scalar_prefetch = 0 : i64, scratch_operands = 0 : i64, tpu.core_type = #tpu.core_type<tc>, window_params = [{transform_indices = @transform_0, window_bounds = array<i64: 32, 128>}, {pipeline_mode = #tpu.pipeline_mode<synchronous>, transform_indices = @transform_1, window_bounds = array<i64: 1, 1, 128>}, {pipeline_mode = #tpu.pipeline_mode<synchronous>, transform_indices = @transform_2, window_bounds = array<i64: 1, 1, 128>}, {pipeline_mode = #tpu.pipeline_mode<synchronous>, transform_indices = @transform_3, window_bounds = array<i64: 1, 128>}, {pipeline_mode = #tpu.pipeline_mode<synchronous>, transform_indices = @transform_4, window_bounds = array<i64: 1, 128>}, {pipeline_mode = #tpu.pipeline_mode<synchronous>, transform_indices = @transform_5, window_bounds = array<i64: 2048, 128>}, {transform_indices = @transform_6, window_bounds = array<i64: 2, 1, 128>}]} {
    %c0 = arith.constant 0 : index
    %c0_0 = arith.constant 0 : index
    %c0_1 = arith.constant 0 : index
    %0 = vector.load %arg2[%c0, %c0_0, %c0_1] : memref<1x1x128xf32, #tpu.memory_space<vmem>>, vector<1x1x128xf32>
    %cst = arith.constant dense<0.000000e+00> : vector<1x128xf32>
    %1 = vector.multi_reduction <add>, %0, %cst [0] : vector<1x1x128xf32> to vector<1x128xf32>
    %cst_2 = arith.constant 3.125000e-02 : f32
    %2 = vector.broadcast %cst_2 : f32 to vector<1x128xf32>
    %3 = arith.mulf %1, %2 : vector<1x128xf32>
    %c0_3 = arith.constant 0 : index
    %c0_4 = arith.constant 0 : index
    %c0_5 = arith.constant 0 : index
    %4 = vector.load %arg3[%c0_3, %c0_4, %c0_5] : memref<1x1x128xf32, #tpu.memory_space<vmem>>, vector<1x1x128xf32>
    %cst_6 = arith.constant dense<0.000000e+00> : vector<1x128xf32>
    %5 = vector.multi_reduction <add>, %4, %cst_6 [0] : vector<1x1x128xf32> to vector<1x128xf32>
    %cst_7 = arith.constant 3.125000e-02 : f32
    %6 = vector.broadcast %cst_7 : f32 to vector<1x128xf32>
    %7 = arith.mulf %5, %6 : vector<1x128xf32>
    %8 = arith.mulf %3, %3 : vector<1x128xf32>
    %9 = arith.subf %7, %8 : vector<1x128xf32>
    %cst_8 = arith.constant 0.000000e+00 : f32
    %10 = vector.broadcast %cst_8 : f32 to vector<1x128xf32>
    %11 = arith.maximumf %9, %10 : vector<1x128xf32>
    %c0_9 = arith.constant 0 : index
    %c0_10 = arith.constant 0 : index
    %12 = vector.load %arg4[%c0_9, %c0_10] : memref<1x128xf32, #tpu.memory_space<vmem>>, vector<1x128xf32>
    %cst_11 = arith.constant 9.99999974E-6 : f32
    %13 = vector.broadcast %cst_11 : f32 to vector<1x128xf32>
    %14 = arith.addf %11, %13 : vector<1x128xf32>
    %15 = math.rsqrt %14 : vector<1x128xf32>
    %16 = arith.mulf %12, %15 : vector<1x128xf32>
    %c0_12 = arith.constant 0 : index
    %c0_13 = arith.constant 0 : index
    %17 = vector.load %arg5[%c0_12, %c0_13] : memref<1x128xf32, #tpu.memory_space<vmem>>, vector<1x128xf32>
    %18 = arith.mulf %3, %16 : vector<1x128xf32>
    %19 = arith.subf %17, %18 : vector<1x128xf32>
    %c0_14 = arith.constant 0 : index
    %c0_15 = arith.constant 0 : index
    %20 = vector.load %arg1[%c0_14, %c0_15] : memref<32x128xf32, #tpu.memory_space<vmem>>, vector<32x128xf32>
    %21 = vector.broadcast %16 : vector<1x128xf32> to vector<32x128xf32>
    %22 = arith.mulf %20, %21 : vector<32x128xf32>
    %23 = vector.broadcast %19 : vector<1x128xf32> to vector<32x128xf32>
    %24 = arith.addf %22, %23 : vector<32x128xf32>
    %cst_16 = arith.constant 0.000000e+00 : f32
    %25 = vector.broadcast %cst_16 : f32 to vector<32x128xf32>
    %26 = arith.cmpf oge, %24, %25 : vector<32x128xf32>
    %cst_17 = arith.constant 2.000000e-01 : f32
    %27 = vector.broadcast %cst_17 : f32 to vector<32x128xf32>
    %28 = arith.mulf %27, %24 : vector<32x128xf32>
    %29 = arith.select %26, %24, %28 : vector<32x128xi1>, vector<32x128xf32>
    %30 = vector.shape_cast %29 : vector<32x128xf32> to vector<2x2048xf32>
    %c0_18 = arith.constant 0 : index
    %c0_19 = arith.constant 0 : index
    %31 = vector.load %arg6[%c0_18, %c0_19] : memref<2048x128xf32, #tpu.memory_space<vmem>>, vector<2048x128xf32>
    %cst_20 = arith.constant dense<0.000000e+00> : vector<2x128xf32>
    %32 = tpu.matmul %30, %31, %cst_20 {dimension_numbers = #tpu.dot_dimension_numbers<[1], [0], [0], [1], [0, 0, 1, 1], [], []>} : vector<2x2048xf32>, vector<2048x128xf32>, vector<2x128xf32> -> vector<2x128xf32>
    %33 = arith.negf %32 : vector<2x128xf32>
    %34 = math.exp %33 : vector<2x128xf32>
    %cst_21 = arith.constant 1.000000e+00 : f32
    %35 = vector.broadcast %cst_21 : f32 to vector<2x128xf32>
    %36 = arith.addf %35, %34 : vector<2x128xf32>
    %37 = arith.divf %35, %36 : vector<2x128xf32>
    %38 = vector.shape_cast %37 : vector<2x128xf32> to vector<2x1x128xf32>
    %c0_22 = arith.constant 0 : index
    %c0_23 = arith.constant 0 : index
    %c0_24 = arith.constant 0 : index
    %39 = vector.load %arg7[%c0_22, %c0_23, %c0_24] : memref<2x1x128xf32, #tpu.memory_space<vmem>>, vector<2x1x128xf32>
    tpu.vector_store %arg7[%c0_22, %c0_23, %c0_24], %38 {strides = array<i32>} : memref<2x1x128xf32, #tpu.memory_space<vmem>>, vector<2x1x128xf32>,
    return
  }
  func.func @transform_0(%arg0: i32) -> (i32, i32) {
    %c0_i32 = arith.constant 0 : i32
    %c0_i32_0 = arith.constant 0 : i32
    return %arg0, %c0_i32 : i32, i32
  }
  func.func @transform_1(%arg0: i32) -> (i32, i32, i32) {
    %c0_i32 = arith.constant 0 : i32
    %c0_i32_0 = arith.constant 0 : i32
    %c0_i32_1 = arith.constant 0 : i32
    %c0_i32_2 = arith.constant 0 : i32
    return %c0_i32, %c0_i32_0, %c0_i32_1 : i32, i32, i32
  }
  func.func @transform_2(%arg0: i32) -> (i32, i32, i32) {
    %c0_i32 = arith.constant 0 : i32
    %c0_i32_0 = arith.constant 0 : i32
    %c0_i32_1 = arith.constant 0 : i32
    %c0_i32_2 = arith.constant 0 : i32
    return %c0_i32, %c0_i32_0, %c0_i32_1 : i32, i32, i32
  }
  func.func @transform_3(%arg0: i32) -> (i32, i32) {
    %c0_i32 = arith.constant 0 : i32
    %c0_i32_0 = arith.constant 0 : i32
    %c0_i32_1 = arith.constant 0 : i32
    return %c0_i32, %c0_i32_0 : i32, i32
  }
  func.func @transform_4(%arg0: i32) -> (i32, i32) {
    %c0_i32 = arith.constant 0 : i32
    %c0_i32_0 = arith.constant 0 : i32
    %c0_i32_1 = arith.constant 0 : i32
    return %c0_i32, %c0_i32_0 : i32, i32
  }
  func.func @transform_5(%arg0: i32) -> (i32, i32) {
    %c0_i32 = arith.constant 0 : i32
    %c0_i32_0 = arith.constant 0 : i32
    %c0_i32_1 = arith.constant 0 : i32
    return %c0_i32, %c0_i32_0 : i32, i32
  }
  func.func @transform_6(%arg0: i32) -> (i32, i32, i32) {
    %c0_i32 = arith.constant 0 : i32
    %c0_i32_0 = arith.constant 0 : i32
    %c0_i32_1 = arith.constant 0 : i32
    return %arg0, %c0_i32, %c0_i32_0 : i32, i32, i32
  }
}

</mosaic_0001>

<bundles_post_ra>
// kernel: discriminator_forward.3
= control target key start
LH: loop header
LB: loop body
LE: loop exit
PB: predicated region body
PF: predicated region fallthrough
CT: control target
= control target key end

     0   :  { %s2214_s5 = inlined_call_operand.vmem [shape: f32[2048,128], index: 5, kind: input, shape index: {}]   ;;  %s2215_s1 = inlined_call_operand.vmem [shape: f32[1,1,128], index: 1, kind: input, shape index: {}]   ;;  %s2216_s2 = inlined_call_operand.vmem [shape: f32[1,1,128], index: 2, kind: input, shape index: {}]   ;;  %s2217_s3 = inlined_call_operand.vmem [shape: f32[1,128], index: 3, kind: input, shape index: {}]   ;;  %s2218_s0 = inlined_call_operand.vmem [shape: f32[32,128], index: 0, kind: input, shape index: {}]   ;;  %s2219_s4 = inlined_call_operand.vmem [shape: f32[1,128], index: 4, kind: input, shape index: {}]   ;;  %s2220_s6 = inlined_call_operand.vmem [shape: f32[2,1,128], index: 6, kind: output, shape index: {}]  }
   0x1   :  { %v106_v0 = vld [vmem:[%s2214_s5 + $0xf8] sm:$0xff]  ;;  %v105_v2 = vld [vmem:[%s2214_s5 + $0xf0] sm:$0xff]  ;;  %v104_v6 = vld [vmem:[%s2214_s5 + $0xe8] sm:$0xff] }
   0x2   :  { %v90_v1 = vld [vmem:[%s2214_s5 + $0x78] sm:$0xff]  ;;  %1051 = vmatprep.subr.mxu0 %v106_v0  ;;  %v89_v4 = vld [vmem:[%s2214_s5 + $0x70] sm:$0xff]  ;;  %v88_v8 = vld [vmem:[%s2214_s5 + $0x68] sm:$0xff] }
   0x3   :  { %v138_v3 = vld [vmem:[%s2214_s5 + $0x1f8] sm:$0xff]  ;;  %1052 = vmatpush3.msra.mxu0 %v90_v1  ;;  %v137_v7 = vld [vmem:[%s2214_s5 + $0x1f0] sm:$0xff]  ;;  %v136_v10 = vld [vmem:[%s2214_s5 + $0x1e8] sm:$0xff] }
   0x4   :  { %v122_v5 = vld [vmem:[%s2214_s5 + $0x178] sm:$0xff]  ;;  %1086 = vmatprep.subr.mxu1 %v138_v3  ;;  %1053 = vmatprep.subr.mxu0 %v105_v2  ;;  %v121_v9 = vld [vmem:[%s2214_s5 + $0x170] sm:$0xff]  ;;  %v103_v11 = vld [vmem:[%s2214_s5 + $0xe0] sm:$0xff] }
   0x5   :  { %1087 = vmatpush3.msra.mxu1 %v122_v5  ;;  %1054 = vmatpush3.msra.mxu0 %v89_v4  ;;  %v120_v12 = vld [vmem:[%s2214_s5 + $0x168] sm:$0xff]  ;;  %v87_v13 = vld [vmem:[%s2214_s5 + $0x60] sm:$0xff]  ;;  %v102_v15 = vld [vmem:[%s2214_s5 + $0xd8] sm:$0xff] }
   0x6   :  { %1088 = vmatprep.subr.mxu1 %v137_v7  ;;  %1055 = vmatprep.subr.mxu0 %v104_v6  ;;  %v135_v14 = vld [vmem:[%s2214_s5 + $0x1e0] sm:$0xff]  ;;  %v86_v17 = vld [vmem:[%s2214_s5 + $0x58] sm:$0xff]  ;;  %v101_v19 = vld [vmem:[%s2214_s5 + $0xd0] sm:$0xff] }
   0x7   :  { %1089 = vmatpush3.msra.mxu1 %v121_v9  ;;  %1056 = vmatpush3.msra.mxu0 %v88_v8  ;;  %v119_v16 = vld [vmem:[%s2214_s5 + $0x160] sm:$0xff]  ;;  %v134_v18 = vld [vmem:[%s2214_s5 + $0x1d8] sm:$0xff]  ;;  %v85_v21 = vld [vmem:[%s2214_s5 + $0x50] sm:$0xff] }
   0x8   :  { %1090 = vmatprep.subr.mxu1 %v136_v10  ;;  %1057 = vmatprep.subr.mxu0 %v103_v11  ;;  %v118_v20 = vld [vmem:[%s2214_s5 + $0x158] sm:$0xff]  ;;  %v133_v22 = vld [vmem:[%s2214_s5 + $0x1d0] sm:$0xff]  ;;  %v100_v23 = vld [vmem:[%s2214_s5 + $0xc8] sm:$0xff]  ;;  %v44_v10 = vlaneseq }
   0x9   :  { %1091 = vmatpush3.msra.mxu1 %v120_v12  ;;  %1058 = vmatpush3.msra.mxu0 %v87_v13  ;;  %v117_v24 = vld [vmem:[%s2214_s5 + $0x150] sm:$0xff]  ;;  %v84_v25 = vld [vmem:[%s2214_s5 + $0x48] sm:$0xff]  ;;  %v99_v27 = vld [vmem:[%s2214_s5 + $0xc0] sm:$0xff] }
   0xa   :  { %1092 = vmatprep.subr.mxu1 %v135_v14  ;;  %1059 = vmatprep.subr.mxu0 %v102_v15  ;;  %v132_v26 = vld [vmem:[%s2214_s5 + $0x1c8] sm:$0xff]  ;;  %v83_v29 = vld [vmem:[%s2214_s5 + $0x40] sm:$0xff]  ;;  %v98_v31 = vld [vmem:[%s2214_s5 + $0xb8] sm:$0xff]  ;;  %v45_v11 = vshrl.u32 %v44_v10, 7 }
   0xb   :  { %1093 = vmatpush3.msra.mxu1 %v119_v16  ;;  %1060 = vmatpush3.msra.mxu0 %v86_v17  ;;  %v116_v28 = vld [vmem:[%s2214_s5 + $0x148] sm:$0xff]  ;;  %v131_v30 = vld [vmem:[%s2214_s5 + $0x1c0] sm:$0xff]  ;;  %v82_v33 = vld [vmem:[%s2214_s5 + $0x38] sm:$0xff] }
   0xc   :  { %1094 = vmatprep.subr.mxu1 %v134_v18  ;;  %1061 = vmatprep.subr.mxu0 %v101_v19  ;;  %v115_v32 = vld [vmem:[%s2214_s5 + $0x140] sm:$0xff]  ;;  %v130_v34 = vld [vmem:[%s2214_s5 + $0x1b8] sm:$0xff]  ;;  %v97_v35 = vld [vmem:[%s2214_s5 + $0xb0] sm:$0xff]  ;;  %v46_v13 = vsub.s32 0, %v45_v11 }
   0xd   :  { %1095 = vmatpush3.msra.mxu1 %v118_v20  ;;  %1062 = vmatpush3.msra.mxu0 %v85_v21  ;;  %v114_v36 = vld [vmem:[%s2214_s5 + $0x138] sm:$0xff]  ;;  %v81_v37 = vld [vmem:[%s2214_s5 + $0x30] sm:$0xff]  ;;  %v96_v39 = vld [vmem:[%s2214_s5 + $0xa8] sm:$0xff]  ;;  %v1338_v21 = vmov 1966171168  }
   0xe   :  { %1096 = vmatprep.subr.mxu1 %v133_v22  ;;  %1063 = vmatprep.subr.mxu0 %v100_v23  ;;  %v129_v38 = vld [vmem:[%s2214_s5 + $0x1b0] sm:$0xff]  ;;  %v80_v41 = vld [vmem:[%s2214_s5 + $0x28] sm:$0xff]  ;;  %v95_v43 = vld [vmem:[%s2214_s5 + $0xa0] sm:$0xff]  ;;  %v338_v22 = vunpack.c.l.s4 %v1338_v21 }
   0xf   :  { %1097 = vmatpush3.msra.mxu1 %v117_v24  ;;  %1064 = vmatpush3.msra.mxu0 %v84_v25  ;;  %v113_v40 = vld [vmem:[%s2214_s5 + $0x130] sm:$0xff]  ;;  %v128_v42 = vld [vmem:[%s2214_s5 + $0x1a8] sm:$0xff]  ;;  %v23_v45 = vld [vmem:[%s2215_s1] sm:$0x1] }
  0x10   :  { %1098 = vmatprep.subr.mxu1 %v132_v26  ;;  %1065 = vmatprep.subr.mxu0 %v99_v27  ;;  %v112_v44 = vld [vmem:[%s2214_s5 + $0x128] sm:$0xff]  ;;  %v79_v46 = vld [vmem:[%s2214_s5 + $0x20] sm:$0xff]  ;;  %v1518_v48 = vmul.f32 0.03125, %v23_v45  ;;  %v94_v50 = vld [vmem:[%s2214_s5 + $0x98] sm:$0xff]  ;;  %v339_v27 = vunpack.c.0.s8 %v338_v22 }
  0x11   :  { %1099 = vmatpush3.msra.mxu1 %v116_v28  ;;  %1066 = vmatpush3.msra.mxu0 %v83_v29  ;;  %v127_v47 = vld [vmem:[%s2214_s5 + $0x1a0] sm:$0xff]  ;;  %v78_v53 = vld [vmem:[%s2214_s5 + $0x18] sm:$0xff]  ;;  %v93_v56 = vld [vmem:[%s2214_s5 + $0x90] sm:$0xff] }
  0x12   :  { %1100 = vmatprep.subr.mxu1 %v131_v30  ;;  %1067 = vmatprep.subr.mxu0 %v98_v31  ;;  %v26_v49 = vld [vmem:[%s2216_s2] sm:$0x1]  ;;  %v126_v54 = vld [vmem:[%s2214_s5 + $0x198] sm:$0xff]  ;;  %v29_v55 = vmul.f32 %v1518_v48, %v1518_v48  ;;  %v77_v58 = vld [vmem:[%s2214_s5 + $0x10] sm:$0xff] }
  0x13   :  { %1101 = vmatpush3.msra.mxu1 %v115_v32  ;;  %1068 = vmatpush3.msra.mxu0 %v82_v33  ;;  %v111_v51 = vld [vmem:[%s2214_s5 + $0x120] sm:$0xff]  ;;  %v28_v52 = vmul.f32 0.03125, %v26_v49  ;;  %v110_v57 = vld [vmem:[%s2214_s5 + $0x118] sm:$0xff]  ;;  %v125_v59 = vld [vmem:[%s2214_s5 + $0x190] sm:$0xff]  ;;  %v1595_v32 = vsub.s32 %v339_v27, %v45_v11 }
  0x14   :  { %1102 = vmatprep.subr.mxu1 %v130_v34  ;;  %1069 = vmatprep.subr.mxu0 %v97_v35  ;;  %v92_v61 = vld [vmem:[%s2214_s5 + $0x88] sm:$0xff]  ;;  %v109_v62 = vld [vmem:[%s2214_s5 + $0x110] sm:$0xff]  ;;  %v91_v2 = vld [vmem:[%s2214_s5 + $0x80] sm:$0xff] }
  0x15   :  { %1103 = vmatpush3.msra.mxu1 %v114_v36  ;;  %1070 = vmatpush3.msra.mxu0 %v81_v37  ;;  %v30_v60 = vsub.f32 %v28_v52, %v29_v55  ;;  %v76_v63 = vld [vmem:[%s2214_s5 + $0x8] sm:$0xff]  ;;  %v75_v4 = vld [vmem:[%s2214_s5] sm:$0xff]  ;;  %v170_v7 = vld [vmem:[%s2214_s5 + $0x2f8] sm:$0xff] }
  0x16   :  { %1104 = vmatprep.subr.mxu1 %v129_v38  ;;  %1071 = vmatprep.subr.mxu0 %v96_v39  ;;  %v124_v0 = vld [vmem:[%s2214_s5 + $0x188] sm:$0xff]  ;;  %v123_v6 = vld [vmem:[%s2214_s5 + $0x180] sm:$0xff]  ;;  %v202_v9 = vld [vmem:[%s2214_s5 + $0x3f8] sm:$0xff] }
  0x17   :  { %1105 = vmatpush3.msra.mxu1 %v113_v40  ;;  %1072 = vmatpush3.msra.mxu0 %v80_v41  ;;  %v31_v1 = vmax.f32 %v30_v60, 0.0  ;;  %v108_v3 = vld [vmem:[%s2214_s5 + $0x108] sm:$0xff]  ;;  %v107_v8 = vld [vmem:[%s2214_s5 + $0x100] sm:$0xff]  ;;  %v41_v18 = vld [vmem:[%s2218_s0 + $0x10] sm:$0xff] }
  0x18   :  { %1106 = vmatprep.subr.mxu1 %v128_v42  ;;  %1073 = vmatprep.subr.mxu0 %v95_v43  ;;  %v32_v12 = vld [vmem:[%s2217_s3] sm:$0x1]  ;;  %v154_v40 = vld [vmem:[%s2214_s5 + $0x278] sm:$0xff]  ;;  %v169_v43 = vld [vmem:[%s2214_s5 + $0x2f0] sm:$0xff] }
  0x19   :  { %1107 = vmatpush3.msra.mxu1 %v112_v44  ;;  %1074 = vmatpush3.msra.mxu0 %v79_v46  ;;  %v33_v5 = vadd.f32 1e-05, %v31_v1  ;;  %v36_v16 = vld [vmem:[%s2219_s4] sm:$0x1]  ;;  %v40_v44 = vld [vmem:[%s2218_s0 + $0x8] sm:$0xff]  ;;  %v42_v45 = vld [vmem:[%s2218_s0 + $0x18] sm:$0xff] }
  0x1a   :  { %1108 = vmatprep.subr.mxu1 %v127_v47  ;;  %1075 = vmatprep.subr.mxu0 %v94_v50  ;;  %v39_v17 = vld [vmem:[%s2218_s0] sm:$0xff]  ;;  %v153_v46 = vld [vmem:[%s2214_s5 + $0x270] sm:$0xff]  ;;  %v186_v47 = vld [vmem:[%s2214_s5 + $0x378] sm:$0xff] }
  0x1b   :  { %1109 = vmatpush3.msra.mxu1 %v111_v51  ;;  %1076 = vmatpush3.msra.mxu0 %v78_v53  ;;  %1332 = vrsqrt.f32 %v33_v5  ;;  %v168_v50 = vld [vmem:[%s2214_s5 + $0x2e8] sm:$0xff]  ;;  %v201_v51 = vld [vmem:[%s2214_s5 + $0x3f0] sm:$0xff]  ;;  %v183_v1 = vld [vmem:[%s2214_s5 + $0x360] sm:$0xff] }
  0x1c   :  { %1110 = vmatprep.subr.mxu1 %v126_v54  ;;  %1077 = vmatprep.subr.mxu0 %v93_v56  ;;  %v152_v52 = vld [vmem:[%s2214_s5 + $0x268] sm:$0xff]  ;;  %v185_v53 = vld [vmem:[%s2214_s5 + $0x370] sm:$0xff]  ;;  %v167_v54 = vld [vmem:[%s2214_s5 + $0x2e0] sm:$0xff] }
  0x1d   :  { %1111 = vmatpush3.msra.mxu1 %v110_v57  ;;  %1078 = vmatpush3.msra.mxu0 %v77_v58  ;;  %v200_v57 = vld [vmem:[%s2214_s5 + $0x3e8] sm:$0xff]  ;;  %v151_v58 = vld [vmem:[%s2214_s5 + $0x260] sm:$0xff]  ;;  %v198_v5 = vld [vmem:[%s2214_s5 + $0x3d8] sm:$0xff] }
  0x1e   :  { %1112 = vmatprep.subr.mxu1 %v125_v59  ;;  %1079 = vmatprep.subr.mxu0 %v92_v61  ;;  %v184_v59 = vld [vmem:[%s2214_s5 + $0x368] sm:$0xff]  ;;  %v197_v11 = vld [vmem:[%s2214_s5 + $0x3d0] sm:$0xff]  ;;  %v146_v21 = vld [vmem:[%s2214_s5 + $0x238] sm:$0xff] }
  0x1f   :  { %1113 = vmatpush3.msra.mxu1 %v109_v62  ;;  %1080 = vmatpush3.msra.mxu0 %v76_v63  ;;  %v166_v62 = vld [vmem:[%s2214_s5 + $0x2d8] sm:$0xff]  ;;  %v199_v63 = vld [vmem:[%s2214_s5 + $0x3e0] sm:$0xff]  ;;  %v164_v10 = vld [vmem:[%s2214_s5 + $0x2c8] sm:$0xff] }
  0x20   :  { %1114 = vmatprep.subr.mxu1 %v124_v0  ;;  %1081 = vmatprep.subr.mxu0 %v91_v2  ;;  %v150_v0 = vld [vmem:[%s2214_s5 + $0x258] sm:$0xff]  ;;  %v179_v22 = vld [vmem:[%s2214_s5 + $0x340] sm:$0xff]  ;;  %v160_v27 = vld [vmem:[%s2214_s5 + $0x2a8] sm:$0xff] }
  0x21   :  { %1115 = vmatpush3.msra.mxu1 %v108_v3  ;;  %1082 = vmatpush3.msra.mxu0 %v75_v4  ;;  %v165_v4 = vld [vmem:[%s2214_s5 + $0x2d0] sm:$0xff] }
  0x22   :  { %1116 = vmatprep.subr.mxu1 %v123_v6  ;;  %1121 = vmatprep.subr.mxu0 %v170_v7 }
  0x23   :  { %1117 = vmatpush3.msra.mxu1 %v107_v8  ;;  %v149_v8 = vld [vmem:[%s2214_s5 + $0x250] sm:$0xff] }
  0x24   :  { %1156 = vmatprep.subr.mxu1 %v202_v9  ;;  %v182_v9 = vld [vmem:[%s2214_s5 + $0x358] sm:$0xff] }
  0x28   :  { %v1333_v14 = vpop.eup %1332 }
  0x29   :  { %v35_v15 = vmul.f32 %v1333_v14, %v32_v12  ;;  %v148_v12 = vld [vmem:[%s2214_s5 + $0x248] sm:$0xff]  ;;  %v163_v14 = vld [vmem:[%s2214_s5 + $0x2c0] sm:$0xff] }
  0x2b   :  { %v37_v19 = vmul.f32 %v35_v15, %v1518_v48  ;;  %v47_v20 = vrot.slane %v35_v15, %v46_v13  ;;  %v196_v15 = vld [vmem:[%s2214_s5 + $0x3c8] sm:$0xff] }
  0x2d   :  { %v38_v23 = vsub.f32 %v36_v16, %v37_v19  ;;  %v49_v24 = vmul.f32 %v47_v20, %v39_v17  ;;  %v51_v25 = vmul.f32 %v47_v20, %v41_v18  ;;  %v50_v48 = vmul.f32 %v47_v20, %v40_v44  ;;  %v147_v16 = vld [vmem:[%s2214_s5 + $0x240] sm:$0xff]  ;;  %v180_v17 = vld [vmem:[%s2214_s5 + $0x348] sm:$0xff]  ;;  %v162_v18 = vld [vmem:[%s2214_s5 + $0x2b8] sm:$0xff] }
  0x2e   :  { %v52_v49 = vmul.f32 %v47_v20, %v42_v45  ;;  %v195_v19 = vld [vmem:[%s2214_s5 + $0x3c0] sm:$0xff]  ;;  %v141_v44 = vld [vmem:[%s2214_s5 + $0x210] sm:$0xff]  ;;  %v174_v45 = vld [vmem:[%s2214_s5 + $0x318] sm:$0xff] }
  0x2f   :  { %v57_v26 = vrot.slane %v38_v23, %v46_v13  ;;  %v181_v13 = vld [vmem:[%s2214_s5 + $0x350] sm:$0xff] }
  0x30   :  { %v161_v23 = vld [vmem:[%s2214_s5 + $0x2b0] sm:$0xff] }
  0x31   :  { %v59_v28 = vadd.f32 %v57_v26, %v49_v24  ;;  %v61_v29 = vadd.f32 %v57_v26, %v51_v25  ;;  %v60_v55 = vadd.f32 %v57_v26, %v50_v48  ;;  %v62_v56 = vadd.f32 %v57_v26, %v52_v49  ;;  %v194_v24 = vld [vmem:[%s2214_s5 + $0x3b8] sm:$0xff]  ;;  %v145_v25 = vld [vmem:[%s2214_s5 + $0x230] sm:$0xff]  ;;  %v140_v48 = vld [vmem:[%s2214_s5 + $0x208] sm:$0xff] }
  0x32   :  { %v178_v26 = vld [vmem:[%s2214_s5 + $0x338] sm:$0xff]  ;;  %v173_v49 = vld [vmem:[%s2214_s5 + $0x310] sm:$0xff] }
  0x33   :  { %vm63_vm0 = vcmp.ge.f32.partialorder %v59_v28, 0.0  ;;  %vm65_vm1 = vcmp.ge.f32.partialorder %v61_v29, 0.0  ;;  %v67_v30 = vmul.f32 0.2, %v59_v28  ;;  %v69_v31 = vmul.f32 0.2, %v61_v29 }
  0x34   :  { %vm64_vm2 = vcmp.ge.f32.partialorder %v60_v55, 0.0  ;;  %vm66_vm3 = vcmp.ge.f32.partialorder %v62_v56, 0.0  ;;  %v68_v60 = vmul.f32 0.2, %v60_v55  ;;  %v70_v61 = vmul.f32 0.2, %v62_v56 }
  0x35   :  { %v1597_v33 = vsel %vm63_vm0, %v59_v28, %v67_v30  ;;  %v1599_v34 = vsel %vm65_vm1, %v61_v29, %v69_v31  ;;  %v193_v28 = vld [vmem:[%s2214_s5 + $0x3b0] sm:$0xff]  ;;  %v144_v29 = vld [vmem:[%s2214_s5 + $0x228] sm:$0xff] }
  0x36   :  { %v335_v35 = vcombine.low %v1597_v33, %v1599_v34  ;;  %v1660_v2 = vsel %vm64_vm2, %v60_v55, %v68_v60  ;;  %v1662_v3 = vsel %vm66_vm3, %v62_v56, %v70_v61  ;;  %v336_v20 = vcombine.high %v1597_v33, %v1599_v34  ;;  %v177_v30 = vld [vmem:[%s2214_s5 + $0x330] sm:$0xff]  ;;  %v159_v33 = vld [vmem:[%s2214_s5 + $0x2a0] sm:$0xff]  ;;  %v192_v34 = vld [vmem:[%s2214_s5 + $0x3a8] sm:$0xff] }
  0x37   :  { %v385_v6 = vcombine.low %v1660_v2, %v1662_v3  ;;  %v386_v7 = vcombine.high %v1660_v2, %v1662_v3  ;;  %v172_v55 = vld [vmem:[%s2214_s5 + $0x308] sm:$0xff]  ;;  %v187_v56 = vld [vmem:[%s2214_s5 + $0x380] sm:$0xff]  ;;  %v218_v61 = vld [vmem:[%s2214_s5 + $0x478] sm:$0xff] }
  0x38   :  { %v343_v36 = vrot.slane %v335_v35, %v1595_v32  ;;  %v350_v31 = vrot.slane %v336_v20, %v1595_v32  ;;  %v143_v35 = vld [vmem:[%s2214_s5 + $0x220] sm:$0xff]  ;;  %v213_v20 = vld [vmem:[%s2214_s5 + $0x450] sm:$0xff]  ;;  %v320_v2 = vld [vmem:[%s2214_s5 + $0x7a8] sm:$0xff] }
  0x39   :  { %v271_v3 = vld [vmem:[%s2214_s5 + $0x620] sm:$0xff] }
  0x3a   :  { %v351_v37 = vcombine.high %v343_v36, %v343_v36  ;;  %v359_v38 = vrot.slane %v343_v36, %v1595_v32  ;;  %v176_v36 = vld [vmem:[%s2214_s5 + $0x328] sm:$0xff] }
  0x3c   :  { %v373_v39 = vrot.slane %v351_v37, %v1595_v32  ;;  %v381_v41 = vcombine.high %v359_v38, %v359_v38  ;;  %v158_v37 = vld [vmem:[%s2214_s5 + $0x298] sm:$0xff] }
  0x3e   :  { %515 = vmatprep.mubr.f32.mxu0 %v373_v39  ;;  %v383_v42 = vcombine.high %v373_v39, %v373_v39  ;;  %v142_v39 = vld [vmem:[%s2214_s5 + $0x218] sm:$0xff] }
  0x3f   :  { %516 = vmatmul.mubr.f32.vlgmr.msra.gmra.mxu0 %v359_v38  ;;  %v191_v38 = vld [vmem:[%s2214_s5 + $0x3a0] sm:$0xff] }
  0x40   :  { %1122 = vmatpush3.msra.mxu0 %v154_v40  ;;  %585 = vmatprep.mubr.f32.mxu1 %v383_v42  ;;  %v175_v40 = vld [vmem:[%s2214_s5 + $0x320] sm:$0xff]  ;;  %v157_v42 = vld [vmem:[%s2214_s5 + $0x290] sm:$0xff] }
  0x41   :  { %1123 = vmatprep.subr.mxu0 %v169_v43  ;;  %586 = vmatmul.mubr.f32.vlgmr.msra.gmra.mxu1 %v381_v41  ;;  %v352_v41 = vcombine.high %v350_v31, %v350_v31  ;;  %v190_v43 = vld [vmem:[%s2214_s5 + $0x398] sm:$0xff] }
  0x42   :  { %1124 = vmatpush3.msra.mxu0 %v153_v46  ;;  %1157 = vmatpush3.msra.mxu1 %v186_v47  ;;  %v156_v46 = vld [vmem:[%s2214_s5 + $0x288] sm:$0xff]  ;;  %v189_v47 = vld [vmem:[%s2214_s5 + $0x390] sm:$0xff] }
  0x43   :  { %1125 = vmatprep.subr.mxu0 %v168_v50  ;;  %1158 = vmatprep.subr.mxu1 %v201_v51  ;;  %v380_v50 = vrot.slane %v352_v41, %v1595_v32  ;;  %v155_v51 = vld [vmem:[%s2214_s5 + $0x280] sm:$0xff]  ;;  %v208_v41 = vld [vmem:[%s2214_s5 + $0x428] sm:$0xff] }
  0x44   :  { %1126 = vmatpush3.msra.mxu0 %v152_v52  ;;  %1159 = vmatpush3.msra.mxu1 %v185_v53  ;;  %v188_v52 = vld [vmem:[%s2214_s5 + $0x388] sm:$0xff]  ;;  %v366_v53 = vrot.slane %v350_v31, %v1595_v32  ;;  %v259_v31 = vld [vmem:[%s2214_s5 + $0x5c0] sm:$0xff] }
  0x45   :  { %1127 = vmatprep.subr.mxu0 %v167_v54  ;;  %1160 = vmatprep.subr.mxu1 %v200_v57  ;;  %v139_v54 = vld [vmem:[%s2214_s5 + $0x200] sm:$0xff]  ;;  %v234_v57 = vld [vmem:[%s2214_s5 + $0x4f8] sm:$0xff] }
  0x46   :  { %1128 = vmatpush3.msra.mxu0 %v151_v58  ;;  %1161 = vmatpush3.msra.mxu1 %v184_v59  ;;  %v384_v58 = vcombine.high %v380_v50, %v380_v50  ;;  %v171_v59 = vld [vmem:[%s2214_s5 + $0x300] sm:$0xff]  ;;  %v382_v60 = vcombine.high %v366_v53, %v366_v53 }
  0x47   :  { %1129 = vmatprep.subr.mxu0 %v166_v62  ;;  %1162 = vmatprep.subr.mxu1 %v199_v63  ;;  %v233_v62 = vld [vmem:[%s2214_s5 + $0x4f0] sm:$0xff]  ;;  %v266_v63 = vld [vmem:[%s2214_s5 + $0x5f8] sm:$0xff] }
  0x48   :  { %1130 = vmatpush3.msra.mxu0 %v150_v0  ;;  %1163 = vmatpush3.msra.mxu1 %v183_v1  ;;  %v217_v0 = vld [vmem:[%s2214_s5 + $0x470] sm:$0xff]  ;;  %v250_v1 = vld [vmem:[%s2214_s5 + $0x578] sm:$0xff] }
  0x49   :  { %1131 = vmatprep.subr.mxu0 %v165_v4  ;;  %1164 = vmatprep.subr.mxu1 %v198_v5  ;;  %v232_v4 = vld [vmem:[%s2214_s5 + $0x4e8] sm:$0xff]  ;;  %v265_v5 = vld [vmem:[%s2214_s5 + $0x5f0] sm:$0xff] }
  0x4a   :  { %1132 = vmatpush3.msra.mxu0 %v149_v8  ;;  %1165 = vmatpush3.msra.mxu1 %v182_v9  ;;  %v216_v8 = vld [vmem:[%s2214_s5 + $0x468] sm:$0xff]  ;;  %v249_v9 = vld [vmem:[%s2214_s5 + $0x570] sm:$0xff] }
  0x4b   :  { %1133 = vmatprep.subr.mxu0 %v164_v10  ;;  %1166 = vmatprep.subr.mxu1 %v197_v11  ;;  %v231_v10 = vld [vmem:[%s2214_s5 + $0x4e0] sm:$0xff]  ;;  %v264_v11 = vld [vmem:[%s2214_s5 + $0x5e8] sm:$0xff] }
  0x4c   :  { %1134 = vmatpush3.msra.mxu0 %v148_v12  ;;  %1167 = vmatpush3.msra.mxu1 %v181_v13  ;;  %v215_v12 = vld [vmem:[%s2214_s5 + $0x460] sm:$0xff]  ;;  %v248_v13 = vld [vmem:[%s2214_s5 + $0x568] sm:$0xff] }
  0x4d   :  { %1135 = vmatprep.subr.mxu0 %v163_v14  ;;  %1168 = vmatprep.subr.mxu1 %v196_v15  ;;  %v230_v14 = vld [vmem:[%s2214_s5 + $0x4d8] sm:$0xff]  ;;  %v263_v15 = vld [vmem:[%s2214_s5 + $0x5e0] sm:$0xff] }
  0x4e   :  { %1136 = vmatpush3.msra.mxu0 %v147_v16  ;;  %1169 = vmatpush3.msra.mxu1 %v180_v17  ;;  %v214_v16 = vld [vmem:[%s2214_s5 + $0x458] sm:$0xff]  ;;  %v247_v17 = vld [vmem:[%s2214_s5 + $0x560] sm:$0xff] }
  0x4f   :  { %1137 = vmatprep.subr.mxu0 %v162_v18  ;;  %1170 = vmatprep.subr.mxu1 %v195_v19  ;;  %v229_v18 = vld [vmem:[%s2214_s5 + $0x4d0] sm:$0xff]  ;;  %v262_v19 = vld [vmem:[%s2214_s5 + $0x5d8] sm:$0xff] }
  0x50   :  { %1138 = vmatpush3.msra.mxu0 %v146_v21  ;;  %1171 = vmatpush3.msra.mxu1 %v179_v22  ;;  %v246_v21 = vld [vmem:[%s2214_s5 + $0x558] sm:$0xff]  ;;  %v228_v22 = vld [vmem:[%s2214_s5 + $0x4c8] sm:$0xff] }
  0x51   :  { %1139 = vmatprep.subr.mxu0 %v161_v23  ;;  %1172 = vmatprep.subr.mxu1 %v194_v24  ;;  %v261_v23 = vld [vmem:[%s2214_s5 + $0x5d0] sm:$0xff]  ;;  %v212_v24 = vld [vmem:[%s2214_s5 + $0x448] sm:$0xff] }
  0x52   :  { %1140 = vmatpush3.msra.mxu0 %v145_v25  ;;  %1173 = vmatpush3.msra.mxu1 %v178_v26  ;;  %v245_v25 = vld [vmem:[%s2214_s5 + $0x550] sm:$0xff]  ;;  %v227_v26 = vld [vmem:[%s2214_s5 + $0x4c0] sm:$0xff] }
  0x53   :  { %1141 = vmatprep.subr.mxu0 %v160_v27  ;;  %1174 = vmatprep.subr.mxu1 %v193_v28  ;;  %v260_v27 = vld [vmem:[%s2214_s5 + $0x5c8] sm:$0xff]  ;;  %v211_v28 = vld [vmem:[%s2214_s5 + $0x440] sm:$0xff] }
  0x54   :  { %1142 = vmatpush3.msra.mxu0 %v144_v29  ;;  %1175 = vmatpush3.msra.mxu1 %v177_v30  ;;  %v244_v29 = vld [vmem:[%s2214_s5 + $0x548] sm:$0xff]  ;;  %v226_v30 = vld [vmem:[%s2214_s5 + $0x4b8] sm:$0xff] }
  0x55   :  { %1143 = vmatprep.subr.mxu0 %v159_v33  ;;  %1176 = vmatprep.subr.mxu1 %v192_v34  ;;  %v210_v33 = vld [vmem:[%s2214_s5 + $0x438] sm:$0xff]  ;;  %v243_v34 = vld [vmem:[%s2214_s5 + $0x540] sm:$0xff] }
  0x56   :  { %1144 = vmatpush3.msra.mxu0 %v143_v35  ;;  %1177 = vmatpush3.msra.mxu1 %v176_v36  ;;  %v225_v35 = vld [vmem:[%s2214_s5 + $0x4b0] sm:$0xff]  ;;  %v258_v36 = vld [vmem:[%s2214_s5 + $0x5b8] sm:$0xff] }
  0x57   :  { %1145 = vmatprep.subr.mxu0 %v158_v37  ;;  %1178 = vmatprep.subr.mxu1 %v191_v38  ;;  %v209_v37 = vld [vmem:[%s2214_s5 + $0x430] sm:$0xff]  ;;  %v242_v38 = vld [vmem:[%s2214_s5 + $0x538] sm:$0xff] }
  0x58   :  { %1146 = vmatpush3.msra.mxu0 %v142_v39  ;;  %1179 = vmatpush3.msra.mxu1 %v175_v40  ;;  %v224_v39 = vld [vmem:[%s2214_s5 + $0x4a8] sm:$0xff]  ;;  %v257_v40 = vld [vmem:[%s2214_s5 + $0x5b0] sm:$0xff] }
  0x59   :  { %1147 = vmatprep.subr.mxu0 %v157_v42  ;;  %1180 = vmatprep.subr.mxu1 %v190_v43  ;;  %v241_v42 = vld [vmem:[%s2214_s5 + $0x530] sm:$0xff]  ;;  %v393_v43 = vrot.slane %v385_v6, %v1595_v32  ;;  %v240_v6 = vld [vmem:[%s2214_s5 + $0x528] sm:$0xff] }
  0x5a   :  { %1148 = vmatpush3.msra.mxu0 %v141_v44  ;;  %1181 = vmatpush3.msra.mxu1 %v174_v45  ;;  %v223_v44 = vld [vmem:[%s2214_s5 + $0x4a0] sm:$0xff]  ;;  %v256_v45 = vld [vmem:[%s2214_s5 + $0x5a8] sm:$0xff] }
  0x5b   :  { %1149 = vmatprep.subr.mxu0 %v156_v46  ;;  %1182 = vmatprep.subr.mxu1 %v189_v47  ;;  %v207_v46 = vld [vmem:[%s2214_s5 + $0x420] sm:$0xff]  ;;  %v222_v47 = vld [vmem:[%s2214_s5 + $0x498] sm:$0xff] }
  0x5c   :  { %1150 = vmatpush3.msra.mxu0 %v140_v48  ;;  %1183 = vmatpush3.msra.mxu1 %v173_v49  ;;  %v255_v48 = vld [vmem:[%s2214_s5 + $0x5a0] sm:$0xff]  ;;  %v206_v49 = vld [vmem:[%s2214_s5 + $0x418] sm:$0xff] }
  0x5d   :  { %1151 = vmatprep.subr.mxu0 %v155_v51  ;;  %1184 = vmatprep.subr.mxu1 %v188_v52  ;;  %v401_v51 = vcombine.high %v393_v43, %v393_v43  ;;  %v221_v52 = vld [vmem:[%s2214_s5 + $0x490] sm:$0xff] }
  0x5e   :  { %1152 = vmatpush3.msra.mxu0 %v139_v54  ;;  %655 = vmatprep.mubr.f32.mxu0 %v380_v50  ;;  %v239_v50 = vld [vmem:[%s2214_s5 + $0x520] sm:$0xff]  ;;  %v205_v54 = vld [vmem:[%s2214_s5 + $0x410] sm:$0xff] }
  0x5f   :  { %1185 = vmatpush3.msra.mxu1 %v172_v55  ;;  %656 = vmatmul.mubr.f32.vlgmr.msra.gmra.mxu0 %v366_v53  ;;  %v254_v53 = vld [vmem:[%s2214_s5 + $0x598] sm:$0xff] }
  0x60   :  { %1186 = vmatprep.subr.mxu1 %v187_v56  ;;  %1191 = vmatprep.subr.mxu0 %v234_v57  ;;  %v238_v55 = vld [vmem:[%s2214_s5 + $0x518] sm:$0xff]  ;;  %v220_v56 = vld [vmem:[%s2214_s5 + $0x488] sm:$0xff]  ;;  %v253_v57 = vld [vmem:[%s2214_s5 + $0x590] sm:$0xff] }
  0x61   :  { %1187 = vmatpush3.msra.mxu1 %v171_v59  ;;  %725 = vmatprep.mubr.f32.mxu1 %v384_v58  ;;  %v204_v58 = vld [vmem:[%s2214_s5 + $0x408] sm:$0xff]  ;;  %v237_v59 = vld [vmem:[%s2214_s5 + $0x510] sm:$0xff] }
  0x62   :  { %1192 = vmatpush3.msra.mxu0 %v218_v61  ;;  %726 = vmatmul.mubr.f32.vlgmr.msra.gmra.mxu1 %v382_v60  ;;  %v423_v60 = vrot.slane %v401_v51, %v1595_v32  ;;  %v219_v61 = vld [vmem:[%s2214_s5 + $0x480] sm:$0xff]  ;;  %v272_v51 = vld [vmem:[%s2214_s5 + $0x628] sm:$0xff] }
  0x63   :  { %1193 = vmatprep.subr.mxu0 %v233_v62  ;;  %1226 = vmatprep.subr.mxu1 %v266_v63  ;;  %v252_v62 = vld [vmem:[%s2214_s5 + $0x588] sm:$0xff]  ;;  %v409_v63 = vrot.slane %v393_v43, %v1595_v32  ;;  %v274_v43 = vld [vmem:[%s2214_s5 + $0x638] sm:$0xff] }
  0x64   :  { %1194 = vmatpush3.msra.mxu0 %v217_v0  ;;  %1227 = vmatpush3.msra.mxu1 %v250_v1  ;;  %v203_v0 = vld [vmem:[%s2214_s5 + $0x400] sm:$0xff]  ;;  %v236_v1 = vld [vmem:[%s2214_s5 + $0x508] sm:$0xff] }
  0x65   :  { %1195 = vmatprep.subr.mxu0 %v232_v4  ;;  %1228 = vmatprep.subr.mxu1 %v265_v5  ;;  %v251_v4 = vld [vmem:[%s2214_s5 + $0x580] sm:$0xff]  ;;  %v298_v5 = vld [vmem:[%s2214_s5 + $0x6f8] sm:$0xff] }
  0x66   :  { %1196 = vmatpush3.msra.mxu0 %v216_v8  ;;  %1229 = vmatpush3.msra.mxu1 %v249_v9  ;;  %v433_v8 = vcombine.high %v423_v60, %v423_v60  ;;  %v235_v9 = vld [vmem:[%s2214_s5 + $0x500] sm:$0xff] }
  0x67   :  { %1197 = vmatprep.subr.mxu0 %v231_v10  ;;  %1230 = vmatprep.subr.mxu1 %v264_v11  ;;  %v431_v10 = vcombine.high %v409_v63, %v409_v63  ;;  %v282_v11 = vld [vmem:[%s2214_s5 + $0x678] sm:$0xff] }
  0x68   :  { %1198 = vmatpush3.msra.mxu0 %v215_v12  ;;  %1231 = vmatpush3.msra.mxu1 %v248_v13  ;;  %v297_v12 = vld [vmem:[%s2214_s5 + $0x6f0] sm:$0xff]  ;;  %v330_v13 = vld [vmem:[%s2214_s5 + $0x7f8] sm:$0xff] }
  0x69   :  { %1199 = vmatprep.subr.mxu0 %v230_v14  ;;  %1232 = vmatprep.subr.mxu1 %v263_v15  ;;  %v281_v14 = vld [vmem:[%s2214_s5 + $0x670] sm:$0xff]  ;;  %v314_v15 = vld [vmem:[%s2214_s5 + $0x778] sm:$0xff] }
  0x6a   :  { %1200 = vmatpush3.msra.mxu0 %v214_v16  ;;  %1233 = vmatpush3.msra.mxu1 %v247_v17  ;;  %v296_v16 = vld [vmem:[%s2214_s5 + $0x6e8] sm:$0xff]  ;;  %v329_v17 = vld [vmem:[%s2214_s5 + $0x7f0] sm:$0xff] }
  0x6b   :  { %1201 = vmatprep.subr.mxu0 %v229_v18  ;;  %1234 = vmatprep.subr.mxu1 %v262_v19  ;;  %v280_v18 = vld [vmem:[%s2214_s5 + $0x668] sm:$0xff]  ;;  %v313_v19 = vld [vmem:[%s2214_s5 + $0x770] sm:$0xff] }
  0x6c   :  { %1202 = vmatpush3.msra.mxu0 %v213_v20  ;;  %1235 = vmatpush3.msra.mxu1 %v246_v21  ;;  %v295_v20 = vld [vmem:[%s2214_s5 + $0x6e0] sm:$0xff]  ;;  %v328_v21 = vld [vmem:[%s2214_s5 + $0x7e8] sm:$0xff] }
  0x6d   :  { %1203 = vmatprep.subr.mxu0 %v228_v22  ;;  %1236 = vmatprep.subr.mxu1 %v261_v23  ;;  %v279_v22 = vld [vmem:[%s2214_s5 + $0x660] sm:$0xff]  ;;  %v312_v23 = vld [vmem:[%s2214_s5 + $0x768] sm:$0xff] }
  0x6e   :  { %1204 = vmatpush3.msra.mxu0 %v212_v24  ;;  %1237 = vmatpush3.msra.mxu1 %v245_v25  ;;  %v294_v24 = vld [vmem:[%s2214_s5 + $0x6d8] sm:$0xff]  ;;  %v327_v25 = vld [vmem:[%s2214_s5 + $0x7e0] sm:$0xff] }
  0x6f   :  { %1205 = vmatprep.subr.mxu0 %v227_v26  ;;  %1238 = vmatprep.subr.mxu1 %v260_v27  ;;  %v278_v26 = vld [vmem:[%s2214_s5 + $0x658] sm:$0xff]  ;;  %v311_v27 = vld [vmem:[%s2214_s5 + $0x760] sm:$0xff] }
  0x70   :  { %1206 = vmatpush3.msra.mxu0 %v211_v28  ;;  %1239 = vmatpush3.msra.mxu1 %v244_v29  ;;  %v293_v28 = vld [vmem:[%s2214_s5 + $0x6d0] sm:$0xff]  ;;  %v326_v29 = vld [vmem:[%s2214_s5 + $0x7d8] sm:$0xff] }
  0x71   :  { %1207 = vmatprep.subr.mxu0 %v226_v30  ;;  %1240 = vmatprep.subr.mxu1 %v259_v31  ;;  %v277_v30 = vld [vmem:[%s2214_s5 + $0x650] sm:$0xff]  ;;  %v310_v31 = vld [vmem:[%s2214_s5 + $0x758] sm:$0xff] }
  0x72   :  { %1208 = vmatpush3.msra.mxu0 %v210_v33  ;;  %1241 = vmatpush3.msra.mxu1 %v243_v34  ;;  %v292_v33 = vld [vmem:[%s2214_s5 + $0x6c8] sm:$0xff]  ;;  %v325_v34 = vld [vmem:[%s2214_s5 + $0x7d0] sm:$0xff] }
  0x73   :  { %1209 = vmatprep.subr.mxu0 %v225_v35  ;;  %1242 = vmatprep.subr.mxu1 %v258_v36  ;;  %v276_v35 = vld [vmem:[%s2214_s5 + $0x648] sm:$0xff]  ;;  %v309_v36 = vld [vmem:[%s2214_s5 + $0x750] sm:$0xff] }
  0x74   :  { %1210 = vmatpush3.msra.mxu0 %v209_v37  ;;  %1243 = vmatpush3.msra.mxu1 %v242_v38  ;;  %v291_v37 = vld [vmem:[%s2214_s5 + $0x6c0] sm:$0xff]  ;;  %v324_v38 = vld [vmem:[%s2214_s5 + $0x7c8] sm:$0xff] }
  0x75   :  { %1211 = vmatprep.subr.mxu0 %v224_v39  ;;  %1244 = vmatprep.subr.mxu1 %v257_v40  ;;  %v275_v39 = vld [vmem:[%s2214_s5 + $0x640] sm:$0xff]  ;;  %v308_v40 = vld [vmem:[%s2214_s5 + $0x748] sm:$0xff] }
  0x76   :  { %1212 = vmatpush3.msra.mxu0 %v208_v41  ;;  %1245 = vmatpush3.msra.mxu1 %v241_v42  ;;  %v290_v41 = vld [vmem:[%s2214_s5 + $0x6b8] sm:$0xff]  ;;  %v323_v42 = vld [vmem:[%s2214_s5 + $0x7c0] sm:$0xff] }
  0x77   :  { %1213 = vmatprep.subr.mxu0 %v223_v44  ;;  %1246 = vmatprep.subr.mxu1 %v256_v45  ;;  %v307_v44 = vld [vmem:[%s2214_s5 + $0x740] sm:$0xff]  ;;  %v289_v45 = vld [vmem:[%s2214_s5 + $0x6b0] sm:$0xff] }
  0x78   :  { %1214 = vmatpush3.msra.mxu0 %v207_v46  ;;  %1247 = vmatpush3.msra.mxu1 %v240_v6  ;;  %v322_v46 = vld [vmem:[%s2214_s5 + $0x7b8] sm:$0xff]  ;;  %v273_v6 = vld [vmem:[%s2214_s5 + $0x630] sm:$0xff] }
  0x79   :  { %1215 = vmatprep.subr.mxu0 %v222_v47  ;;  %1248 = vmatprep.subr.mxu1 %v255_v48  ;;  %v306_v47 = vld [vmem:[%s2214_s5 + $0x738] sm:$0xff]  ;;  %v288_v48 = vld [vmem:[%s2214_s5 + $0x6a8] sm:$0xff] }
  0x7a   :  { %1216 = vmatpush3.msra.mxu0 %v206_v49  ;;  %1249 = vmatpush3.msra.mxu1 %v239_v50  ;;  %v321_v49 = vld [vmem:[%s2214_s5 + $0x7b0] sm:$0xff]  ;;  %v400_v50 = vrot.slane %v386_v7, %v1595_v32  ;;  %v304_v7 = vld [vmem:[%s2214_s5 + $0x728] sm:$0xff] }
  0x7b   :  { %1217 = vmatprep.subr.mxu0 %v221_v52  ;;  %1250 = vmatprep.subr.mxu1 %v254_v53  ;;  %v305_v52 = vld [vmem:[%s2214_s5 + $0x730] sm:$0xff]  ;;  %v287_v53 = vld [vmem:[%s2214_s5 + $0x6a0] sm:$0xff] }
  0x7c   :  { %1218 = vmatpush3.msra.mxu0 %v205_v54  ;;  %1251 = vmatpush3.msra.mxu1 %v238_v55  ;;  %v286_v54 = vld [vmem:[%s2214_s5 + $0x698] sm:$0xff]  ;;  %v319_v55 = vld [vmem:[%s2214_s5 + $0x7a0] sm:$0xff] }
  0x7d   :  { %1219 = vmatprep.subr.mxu0 %v220_v56  ;;  %1252 = vmatprep.subr.mxu1 %v253_v57  ;;  %v402_v56 = vcombine.high %v400_v50, %v400_v50  ;;  %v270_v57 = vld [vmem:[%s2214_s5 + $0x618] sm:$0xff] }
  0x7e   :  { %1220 = vmatpush3.msra.mxu0 %v204_v58  ;;  %1253 = vmatpush3.msra.mxu1 %v237_v59  ;;  %v303_v58 = vld [vmem:[%s2214_s5 + $0x720] sm:$0xff]  ;;  %v285_v59 = vld [vmem:[%s2214_s5 + $0x690] sm:$0xff] }
  0x7f   :  { %1221 = vmatprep.subr.mxu0 %v219_v61  ;;  %1254 = vmatprep.subr.mxu1 %v252_v62  ;;  %v269_v61 = vld [vmem:[%s2214_s5 + $0x610] sm:$0xff]  ;;  %v302_v62 = vld [vmem:[%s2214_s5 + $0x718] sm:$0xff] }
  0x80   :  { %1222 = vmatpush3.msra.mxu0 %v203_v0  ;;  %795 = vmatprep.mubr.f32.mxu0 %v423_v60  ;;  %v318_v60 = vld [vmem:[%s2214_s5 + $0x798] sm:$0xff]  ;;  %v317_v0 = vld [vmem:[%s2214_s5 + $0x790] sm:$0xff] }
  0x81   :  { %1255 = vmatpush3.msra.mxu1 %v236_v1  ;;  %796 = vmatmul.mubr.f32.vlgmr.msra.gmra.mxu0 %v409_v63  ;;  %v284_v63 = vld [vmem:[%s2214_s5 + $0x688] sm:$0xff]  ;;  %v430_v1 = vrot.slane %v402_v56, %v1595_v32 }
  0x82   :  { %1256 = vmatprep.subr.mxu1 %v251_v4  ;;  %1261 = vmatprep.subr.mxu0 %v298_v5  ;;  %v268_v4 = vld [vmem:[%s2214_s5 + $0x608] sm:$0xff]  ;;  %v301_v5 = vld [vmem:[%s2214_s5 + $0x710] sm:$0xff] }
  0x83   :  { %1257 = vmatpush3.msra.mxu1 %v235_v9  ;;  %865 = vmatprep.mubr.f32.mxu1 %v433_v8  ;;  %v283_v8 = vld [vmem:[%s2214_s5 + $0x680] sm:$0xff]  ;;  %v316_v9 = vld [vmem:[%s2214_s5 + $0x788] sm:$0xff] }
  0x84   :  { %1262 = vmatpush3.msra.mxu0 %v282_v11  ;;  %866 = vmatmul.mubr.f32.vlgmr.msra.gmra.mxu1 %v431_v10  ;;  %v416_v10 = vrot.slane %v400_v50, %v1595_v32  ;;  %v267_v11 = vld [vmem:[%s2214_s5 + $0x600] sm:$0xff] }
  0x85   :  { %1263 = vmatprep.subr.mxu0 %v297_v12  ;;  %1296 = vmatprep.subr.mxu1 %v330_v13  ;;  %v300_v12 = vld [vmem:[%s2214_s5 + $0x708] sm:$0xff]  ;;  %v434_v13 = vcombine.high %v430_v1, %v430_v1 }
  0x86   :  { %1264 = vmatpush3.msra.mxu0 %v281_v14  ;;  %1297 = vmatpush3.msra.mxu1 %v314_v15  ;;  %v315_v14 = vld [vmem:[%s2214_s5 + $0x780] sm:$0xff] }
  0x87   :  { %1265 = vmatprep.subr.mxu0 %v296_v16  ;;  %1298 = vmatprep.subr.mxu1 %v329_v17  ;;  %v299_v15 = vld [vmem:[%s2214_s5 + $0x700] sm:$0xff]  ;;  %v432_v16 = vcombine.high %v416_v10, %v416_v10 }
  0x88   :  { %1266 = vmatpush3.msra.mxu0 %v280_v18  ;;  %1299 = vmatpush3.msra.mxu1 %v313_v19 }
  0x89   :  { %1267 = vmatprep.subr.mxu0 %v295_v20  ;;  %1300 = vmatprep.subr.mxu1 %v328_v21 }
  0x8a   :  { %1268 = vmatpush3.msra.mxu0 %v279_v22  ;;  %1301 = vmatpush3.msra.mxu1 %v312_v23 }
  0x8b   :  { %1269 = vmatprep.subr.mxu0 %v294_v24  ;;  %1302 = vmatprep.subr.mxu1 %v327_v25 }
  0x8c   :  { %1270 = vmatpush3.msra.mxu0 %v278_v26  ;;  %1303 = vmatpush3.msra.mxu1 %v311_v27 }
  0x8d   :  { %1271 = vmatprep.subr.mxu0 %v293_v28  ;;  %1304 = vmatprep.subr.mxu1 %v326_v29 }
  0x8e   :  { %1272 = vmatpush3.msra.mxu0 %v277_v30  ;;  %1305 = vmatpush3.msra.mxu1 %v310_v31 }
  0x8f   :  { %1273 = vmatprep.subr.mxu0 %v292_v33  ;;  %1306 = vmatprep.subr.mxu1 %v325_v34 }
  0x90   :  { %1274 = vmatpush3.msra.mxu0 %v276_v35  ;;  %1307 = vmatpush3.msra.mxu1 %v309_v36 }
  0x91   :  { %1275 = vmatprep.subr.mxu0 %v291_v37  ;;  %1308 = vmatprep.subr.mxu1 %v324_v38 }
  0x92   :  { %1276 = vmatpush3.msra.mxu0 %v275_v39  ;;  %1309 = vmatpush3.msra.mxu1 %v308_v40 }
  0x93   :  { %1277 = vmatprep.subr.mxu0 %v290_v41  ;;  %1310 = vmatprep.subr.mxu1 %v323_v42 }
  0x94   :  { %1278 = vmatpush3.msra.mxu0 %v274_v43  ;;  %1311 = vmatpush3.msra.mxu1 %v307_v44 }
  0x95   :  { %1279 = vmatprep.subr.mxu0 %v289_v45  ;;  %1312 = vmatprep.subr.mxu1 %v322_v46 }
  0x96   :  { %1280 = vmatpush3.msra.mxu0 %v273_v6  ;;  %1313 = vmatpush3.msra.mxu1 %v306_v47 }
  0x97   :  { %1281 = vmatprep.subr.mxu0 %v288_v48  ;;  %1314 = vmatprep.subr.mxu1 %v321_v49 }
  0x98   :  { %1282 = vmatpush3.msra.mxu0 %v272_v51  ;;  %1315 = vmatpush3.msra.mxu1 %v305_v52 }
  0x99   :  { %1283 = vmatprep.subr.mxu0 %v287_v53  ;;  %1316 = vmatprep.subr.mxu1 %v320_v2 }
  0x9a   :  { %1284 = vmatpush3.msra.mxu0 %v271_v3  ;;  %1317 = vmatpush3.msra.mxu1 %v304_v7 }
  0x9b   :  { %1285 = vmatprep.subr.mxu0 %v286_v54  ;;  %1318 = vmatprep.subr.mxu1 %v319_v55 }
  0x9c   :  { %1286 = vmatpush3.msra.mxu0 %v270_v57  ;;  %1319 = vmatpush3.msra.mxu1 %v303_v58 }
  0x9d   :  { %1287 = vmatprep.subr.mxu0 %v285_v59  ;;  %1320 = vmatprep.subr.mxu1 %v318_v60 }
  0x9e   :  { %1288 = vmatpush3.msra.mxu0 %v269_v61  ;;  %1321 = vmatpush3.msra.mxu1 %v302_v62 }
  0x9f   :  { %1289 = vmatprep.subr.mxu0 %v284_v63  ;;  %1322 = vmatprep.subr.mxu1 %v317_v0 }
  0xa0   :  { %1290 = vmatpush3.msra.mxu0 %v268_v4  ;;  %1323 = vmatpush3.msra.mxu1 %v301_v5 }
  0xa1   :  { %1291 = vmatprep.subr.mxu0 %v283_v8  ;;  %1324 = vmatprep.subr.mxu1 %v316_v9 }
  0xa2   :  { %1292 = vmatpush3.msra.mxu0 %v267_v11  ;;  %935 = vmatprep.mubr.f32.mxu0 %v430_v1 }
  0xa3   :  { %1325 = vmatpush3.msra.mxu1 %v300_v12  ;;  %936 = vmatmul.mubr.f32.vlgmr.msra.gmra.mxu0 %v416_v10 }
  0xa4   :  { %1326 = vmatprep.subr.mxu1 %v315_v14  ;;  %1005 = vmatprep.mubr.f32.mxu1 %v434_v13 }
  0xa5   :  { %1327 = vmatpush3.msra.mxu1 %v299_v15 }
  0xa6   :  { %1006 = vmatmul.mubr.f32.vlgmr.msra.gmra.mxu1 %v432_v16 }
  0xff   :  { %v1083_v17 = vpop.f32.mrf.mxu0 }
 0x101   :  { %v1084_v18 = vpop.f32.mrf.mxu0  ;;  %v1118_v19 = vpop.f32.mrf.mxu1 }
 0x102   :  { %v1085_v26 = vadd.f32 %v1084_v18, %v1083_v17 }
 0x103   :  { %v1119_v21 = vpop.f32.mrf.mxu1 }
 0x104   :  { %v1120_v24 = vadd.f32 %v1119_v21, %v1118_v19 }
 0x106   :  { %v588_v29 = vadd.f32 %v1120_v24, %v1085_v26 }
 0x11f   :  { %v1153_v20 = vpop.f32.mrf.mxu0 }
 0x121   :  { %v1154_v22 = vpop.f32.mrf.mxu0 }
 0x122   :  { %v1188_v23 = vpop.f32.mrf.mxu1  ;;  %v1155_v27 = vadd.f32 %v1154_v22, %v1153_v20 }
 0x124   :  { %v1189_v28 = vpop.f32.mrf.mxu1  ;;  %v658_v33 = vadd.f32 %v1155_v27, %v588_v29 }
 0x125   :  { %v1190_v34 = vadd.f32 %v1189_v28, %v1188_v23 }
 0x127   :  { %v728_v37 = vadd.f32 %v1190_v34, %v658_v33 }
 0x141   :  { %v1223_v25 = vpop.f32.mrf.mxu0 }
 0x143   :  { %v1224_v30 = vpop.f32.mrf.mxu0 }
 0x144   :  { %v1258_v31 = vpop.f32.mrf.mxu1  ;;  %v1225_v35 = vadd.f32 %v1224_v30, %v1223_v25 }
 0x146   :  { %v1259_v36 = vpop.f32.mrf.mxu1  ;;  %v798_v38 = vadd.f32 %v1225_v35, %v728_v37 }
 0x147   :  { %v1260_v39 = vadd.f32 %v1259_v36, %v1258_v31 }
 0x149   :  { %v868_v42 = vadd.f32 %v1260_v39, %v798_v38 }
 0x163   :  { %v1293_v40 = vpop.f32.mrf.mxu0 }
 0x165   :  { %v1294_v41 = vpop.f32.mrf.mxu0 }
 0x166   :  { %v1295_v43 = vadd.f32 %v1294_v41, %v1293_v40  ;;  %v1328_v44 = vpop.f32.mrf.mxu1 }
 0x168   :  { %v938_v45 = vadd.f32 %v1295_v43, %v868_v42  ;;  %v1329_v46 = vpop.f32.mrf.mxu1 }
 0x169   :  { %v1330_v6 = vadd.f32 %v1329_v46, %v1328_v44 }
 0x16b   :  { %v1008_v47 = vadd.f32 %v1330_v6, %v938_v45 }
 0x16d   :  { %v1048_v48 = vmul.f32 -1.442695, %v1008_v47 }
 0x16f   :  { %1334 = vpow2.f32 %v1048_v48 }
 0x17c   :  { %v1335_v49 = vpop.eup %1334 }
 0x17d   :  { %v1014_v50 = vadd.f32 1.0, %v1335_v49 }
 0x17f   :  { %1336 = vrcp.f32 %v1014_v50 }
 0x18c   :  { %v1337_v51 = vpop.eup %1336 }
 0x18d   :  { %v1024_v52 = vrot.slane %v1337_v51, %v1595_v32 }
 0x18f   :  { %v1025_v53 = vcombine.high %v1024_v52, %v1024_v52  ;;  %1049 = vst.sshfl [vmem:[%s2220_s6] sm:$0x1 pattern:$0x73625140] %v1024_v52 }
 0x191   :  { %1050 = vst.sshfl [vmem:[%s2220_s6 + $0x1] sm:$0x1 pattern:$0x73625140] %v1025_v53 }

// kernel: discriminator_forward.2
= control target key start
LH: loop header
LB: loop body
LE: loop exit
PB: predicated region body
PF: predicated region fallthrough
CT: control target
= control target key end

     0   :  { %v85_v0 = vlaneseq  ;;  %v5193_v2 = vmov 1966171168   ;;  %s6445_s1 = inlined_call_operand.vmem [shape: bf16[128,128], index: 1, kind: input, shape index: {}]   ;;  %s6446_s0 = inlined_call_operand.vmem [shape: bf16[2,4,25,128], index: 0, kind: input, shape index: {}]   ;;  %s6447_s2 = inlined_call_operand.vmem [shape: bf16[2048,128], index: 2, kind: input, shape index: {}]   ;;  %s6448_s3 = inlined_call_operand.vmem [shape: f32[32,128], index: 3, kind: output, shape index: {0}]   ;;  %s6449_s4 = inlined_call_operand.vmem [shape: f32[1,1,128], index: 4, kind: output, shape index: {1}]   ;;  %s6450_s5 = inlined_call_operand.vmem [shape: f32[1,1,128], index: 5, kind: output, shape index: {2}]  }
   0x1   :  { %v5227_v1 = vld [vmem:[%s6445_s1 + $0x38] sm:$0xff]   ;;  %v83_v3 = vunpack.c.l.s4 %v5193_v2  ;;  %v5232_v4 = vld [vmem:[%s6445_s1 + $0x30] sm:$0xff]   ;;  %v5243_v7 = vld [vmem:[%s6445_s1 + $0x28] sm:$0xff]  }
   0x2   :  { %4960 = vmatprep.subr.bf16.mxu0 %v5227_v1  ;;  %4984 = vmatprep.subr.bf16.mxu1 %v5227_v1  ;;  %v86_v6 = vshrl.u32 %v85_v0, 7  ;;  %v5254_v9 = vld [vmem:[%s6445_s1 + $0x20] sm:$0xff]   ;;  %v4452_v16 = vld.sshfl [vmem:[%s6446_s0 + $0x10] sm:$0x33 pattern:$0x75316420] }
   0x3   :  { %4961 = vmatpush3.bf16.msra.mxu0 %v5227_v1  ;;  %4985 = vmatpush3.bf16.msra.mxu1 %v5227_v1  ;;  %v84_v5 = vunpack.c.0.s8 %v83_v3  ;;  %v4420_v10 = vld.sshfl [vmem:[%s6446_s0] sm:$0x33 pattern:$0x75316420]  ;;  %v613_v19 = vcombine.high %v4452_v16, %v4452_v16  ;;  %v5279_v21 = vld [vmem:[%s6445_s1 + $0x18] sm:$0xff]   ;;  %v5301_v38 = vld [vmem:[%s6445_s1 + $0x10] sm:$0xff]  }
   0x4   :  { %4962 = vmatprep.subr.bf16.mxu0 %v5232_v4  ;;  %4986 = vmatprep.subr.bf16.mxu1 %v5232_v4  ;;  %v4421_v11 = vld.sshfl [vmem:[%s6446_s0 + $0x4] sm:$0x33 pattern:$0x75316420]  ;;  %v81_v12 = vcombine.high %v4420_v10, %v4420_v10  ;;  %v5325_v55 = vld [vmem:[%s6445_s1 + $0x8] sm:$0xff]  }
   0x5   :  { %v5247_v8 = vsub.s32 %v84_v5, %v86_v6  ;;  %v105_v14 = vcombine.high %v4421_v11, %v4421_v11  ;;  %v4453_v18 = vld.sshfl [vmem:[%s6446_s0 + $0x14] sm:$0x33 pattern:$0x75316420] }
   0x6   :  { %v637_v23 = vcombine.high %v4453_v18, %v4453_v18  ;;  %v4422_v25 = vld.sshfl [vmem:[%s6446_s0 + $0x8] sm:$0x33 pattern:$0x75316420] }
   0x7   :  { %4963 = vmatpush3.bf16.msra.mxu0 %v5232_v4  ;;  %4987 = vmatpush3.bf16.msra.mxu1 %v5232_v4  ;;  %v88_v13 = vrot.slane %v4420_v10, %v5247_v8  ;;  %v112_v15 = vrot.slane %v4421_v11, %v5247_v8  ;;  %v95_v17 = vrot.slane %v81_v12, %v5247_v8  ;;  %v4423_v37 = vld.sshfl [vmem:[%s6446_s0 + $0xc] sm:$0x1 pattern:$0x75316420] }
   0x8   :  { %4964 = vmatprep.subr.bf16.mxu0 %v5243_v7  ;;  %4988 = vmatprep.subr.bf16.mxu1 %v5243_v7  ;;  %v620_v20 = vrot.slane %v4452_v16, %v5247_v8  ;;  %v119_v22 = vrot.slane %v105_v14, %v5247_v8  ;;  %v644_v24 = vrot.slane %v4453_v18, %v5247_v8  ;;  %v4424_v46 = vld.sshfl [vmem:[%s6446_s0 + $0x40] sm:$0x33 pattern:$0x75316420] }
   0x9   :  { %v321_v26 = vcombine.low %v88_v13, %v95_v17  ;;  %v4441_v27 = vcombine.high %v88_v13, %v95_v17  ;;  %v627_v28 = vrot.slane %v613_v19, %v5247_v8  ;;  %v129_v29 = vcombine.high %v4422_v25, %v4422_v25  ;;  %v4454_v54 = vld.sshfl [vmem:[%s6446_s0 + $0x18] sm:$0x33 pattern:$0x75316420]  ;;  %v5342_v13 = vld [vmem:[%s6445_s1] sm:$0xff]  }
   0xa   :  { %v323_v30 = vcombine.low %v112_v15, %v119_v22  ;;  %v4442_v31 = vcombine.high %v112_v15, %v119_v22  ;;  %v651_v32 = vrot.slane %v637_v23, %v5247_v8  ;;  %v136_v33 = vrot.slane %v4422_v25, %v5247_v8  ;;  %v4455_v12 = vld.sshfl [vmem:[%s6446_s0 + $0x1c] sm:$0x1 pattern:$0x75316420] }
   0xb   :  { %4965 = vmatpush3.bf16.msra.mxu0 %v5243_v7  ;;  %4989 = vmatpush3.bf16.msra.mxu1 %v5243_v7  ;;  %v331_v34 = vrot.slane %v321_v26, %v5247_v8  ;;  %v338_v35 = vrot.slane %v4441_v27, %v5247_v8  ;;  %v853_v36 = vcombine.low %v620_v20, %v627_v28  ;;  %v4456_v18 = vld.sshfl [vmem:[%s6446_s0 + $0x50] sm:$0x33 pattern:$0x75316420] }
   0xc   :  { %4966 = vmatprep.subr.bf16.mxu0 %v5254_v9  ;;  %4990 = vmatprep.subr.bf16.mxu1 %v5254_v9  ;;  %v345_v39 = vrot.slane %v323_v30, %v5247_v8  ;;  %v352_v40 = vrot.slane %v4442_v31, %v5247_v8  ;;  %v4473_v41 = vcombine.high %v620_v20, %v627_v28 }
   0xd   :  { %v353_v42 = vcombine.low %v331_v34, %v338_v35  ;;  %v855_v43 = vcombine.low %v644_v24, %v651_v32  ;;  %v4474_v44 = vcombine.high %v644_v24, %v651_v32  ;;  %v863_v45 = vrot.slane %v853_v36, %v5247_v8 }
   0xe   :  { %v354_v47 = vcombine.low %v345_v39, %v352_v40  ;;  %v870_v48 = vrot.slane %v4473_v41, %v5247_v8  ;;  %v143_v49 = vrot.slane %v129_v29, %v5247_v8  ;;  %v159_v50 = vrot.slane %v4423_v37, %v5247_v8  ;;  %v4425_v40 = vld.sshfl [vmem:[%s6446_s0 + $0x44] sm:$0x33 pattern:$0x75316420] }
   0xf   :  { %4967 = vmatpush3.bf16.msra.mxu0 %v5254_v9  ;;  %4991 = vmatpush3.bf16.msra.mxu1 %v5254_v9  ;;  %v361_v51 = vrot.slane %v353_v42, %v5247_v8  ;;  %v877_v52 = vrot.slane %v855_v43, %v5247_v8  ;;  %v884_v53 = vrot.slane %v4474_v44, %v5247_v8 }
  0x10   :  { %4968 = vmatprep.subr.bf16.mxu0 %v5279_v21  ;;  %4992 = vmatprep.subr.bf16.mxu1 %v5279_v21  ;;  %v368_v56 = vrot.slane %v354_v47, %v5247_v8  ;;  %v885_v57 = vcombine.low %v863_v45, %v870_v48  ;;  %v167_v58 = vcombine.high %v4424_v46, %v4424_v46  ;;  %v4426_v45 = vld.sshfl [vmem:[%s6446_s0 + $0x48] sm:$0x33 pattern:$0x75316420] }
  0x11   :  { %v886_v59 = vcombine.low %v877_v52, %v884_v53  ;;  %v174_v60 = vrot.slane %v4424_v46, %v5247_v8  ;;  %v370_v61 = vcombine.low %v136_v33, %v143_v49  ;;  %v4443_v62 = vcombine.high %v136_v33, %v143_v49 }
  0x12   :  { %v369_v63 = vcombine.low %v361_v51, %v368_v56  ;;  %v893_v0 = vrot.slane %v885_v57, %v5247_v8  ;;  %v181_v2 = vrot.slane %v167_v58, %v5247_v8  ;;  %v661_v3 = vcombine.high %v4454_v54, %v4454_v54 }
  0x13   :  { %4969 = vmatpush3.bf16.msra.mxu0 %v5279_v21  ;;  %4993 = vmatpush3.bf16.msra.mxu1 %v5279_v21  ;;  %v900_v5 = vrot.slane %v886_v59, %v5247_v8  ;;  %v182_v6 = vcombine.high %v174_v60, %v174_v60  ;;  %v272_v10 = vunpack.i.h.s16 %v174_v60  ;;  %v4428_v11 = vpack.i.b16 %v174_v60, %v159_v50 }
  0x14   :  { %4970 = vmatprep.subr.bf16.mxu0 %v5301_v38  ;;  %4994 = vmatprep.subr.bf16.mxu1 %v5301_v38  ;;  %v5344_v14 = vcombine.high %v181_v2, %v181_v2  ;;  %v274_v15 = vunpack.i.h.s16 %v181_v2  ;;  %v380_v16 = vrot.slane %v370_v61, %v5247_v8  ;;  %v387_v17 = vrot.slane %v4443_v62, %v5247_v8 }
  0x15   :  { %4976 = vmatprep.mubr.bf16.mxu0 %v369_v63  ;;  %v901_v19 = vcombine.low %v893_v0, %v900_v5  ;;  %v276_v20 = vunpack.i.h.s16 %v182_v6  ;;  %v4429_v22 = vpack.i.b16 %v181_v2, %v272_v10  ;;  %v668_v23 = vrot.slane %v4454_v54, %v5247_v8 }
  0x16   :  { %v4430_v24 = vpack.i.b16 %v182_v6, %v274_v15  ;;  %v402_v25 = vcombine.low %v380_v16, %v387_v17  ;;  %v675_v26 = vrot.slane %v661_v3, %v5247_v8  ;;  %v691_v27 = vrot.slane %v4455_v12, %v5247_v8 }
  0x17   :  { %4971 = vmatpush3.bf16.msra.mxu0 %v5301_v38  ;;  %4995 = vmatpush3.bf16.msra.mxu1 %v5301_v38  ;;  %v4431_v28 = vpack.i.b16 %v5344_v14, %v276_v20  ;;  %v372_v29 = vcombine.low %v4428_v11, %v4429_v22  ;;  %v699_v30 = vcombine.high %v4456_v18, %v4456_v18  ;;  %v278_v34 = vunpack.i.h.s16 %v5344_v14 }
  0x18   :  { %4972 = vmatprep.subr.bf16.mxu0 %v5325_v55  ;;  %4996 = vmatprep.subr.bf16.mxu1 %v5325_v55  ;;  %v410_v31 = vrot.slane %v402_v25, %v5247_v8  ;;  %v706_v32 = vrot.slane %v4456_v18, %v5247_v8  ;;  %v902_v33 = vcombine.low %v668_v23, %v675_v26 }
  0x19   :  { %5000 = vmatprep.mubr.bf16.mxu1 %v901_v19  ;;  %v373_v35 = vcombine.low %v4430_v24, %v4431_v28  ;;  %v394_v36 = vrot.slane %v372_v29, %v5247_v8  ;;  %v713_v37 = vrot.slane %v699_v30, %v5247_v8  ;;  %v4475_v39 = vcombine.high %v668_v23, %v675_v26  ;;  %v4457_v26 = vld.sshfl [vmem:[%s6446_s0 + $0x54] sm:$0x33 pattern:$0x75316420] }
  0x1a   :  { %v714_v41 = vcombine.high %v706_v32, %v706_v32  ;;  %v804_v42 = vunpack.i.h.s16 %v706_v32  ;;  %v4460_v43 = vpack.i.b16 %v706_v32, %v691_v27  ;;  %v912_v44 = vrot.slane %v902_v33, %v5247_v8 }
  0x1b   :  { %4973 = vmatpush3.bf16.msra.mxu0 %v5325_v55  ;;  %4997 = vmatpush3.bf16.msra.mxu1 %v5325_v55  ;;  %v401_v46 = vrot.slane %v373_v35, %v5247_v8  ;;  %v5374_v47 = vcombine.high %v713_v37, %v713_v37  ;;  %v806_v48 = vunpack.i.h.s16 %v713_v37  ;;  %v919_v49 = vrot.slane %v4475_v39, %v5247_v8 }
  0x1c   :  { %4974 = vmatprep.subr.bf16.mxu0 %v5342_v13  ;;  %4998 = vmatprep.subr.bf16.mxu1 %v5342_v13  ;;  %v808_v50 = vunpack.i.h.s16 %v714_v41  ;;  %v4461_v51 = vpack.i.b16 %v713_v37, %v804_v42  ;;  %v191_v52 = vcombine.high %v4425_v40, %v4425_v40  ;;  %v198_v53 = vrot.slane %v4425_v40, %v5247_v8 }
  0x1d   :  { %v403_v54 = vcombine.low %v394_v36, %v401_v46  ;;  %v4462_v56 = vpack.i.b16 %v714_v41, %v806_v48  ;;  %v934_v57 = vcombine.low %v912_v44, %v919_v49  ;;  %v215_v58 = vcombine.high %v4426_v45, %v4426_v45 }
  0x1e   :  { %v4463_v59 = vpack.i.b16 %v5374_v47, %v808_v50  ;;  %v904_v60 = vcombine.low %v4460_v43, %v4461_v51  ;;  %v205_v61 = vrot.slane %v191_v52, %v5247_v8  ;;  %v206_v62 = vcombine.high %v198_v53, %v198_v53 }
  0x1f   :  { %4975 = vmatpush3.bf16.msra.mxu0 %v5342_v13  ;;  %4999 = vmatpush3.bf16.msra.mxu1 %v5342_v13  ;;  %v417_v63 = vrot.slane %v403_v54, %v5247_v8  ;;  %v942_v0 = vrot.slane %v934_v57, %v5247_v8  ;;  %v222_v2 = vrot.slane %v4426_v45, %v5247_v8  ;;  %v280_v11 = vunpack.i.h.s16 %v198_v53 }
  0x20   :  { %5008 = vmatprep.subr.bf16.mxu0 %v5227_v1  ;;  %5032 = vmatprep.subr.bf16.mxu1 %v5227_v1  ;;  %v229_v3 = vrot.slane %v215_v58, %v5247_v8  ;;  %v905_v5 = vcombine.low %v4462_v56, %v4463_v59  ;;  %v926_v6 = vrot.slane %v904_v60, %v5247_v8  ;;  %v282_v16 = vunpack.i.h.s16 %v205_v61 }
  0x21   :  { %v207_v10 = vcombine.high %v205_v61, %v205_v61  ;;  %v418_v12 = vcombine.low %v410_v31, %v417_v63  ;;  %v230_v14 = vcombine.high %v222_v2, %v222_v2  ;;  %v284_v18 = vunpack.i.h.s16 %v206_v62  ;;  %v4458_v31 = vld.sshfl [vmem:[%s6446_s0 + $0x58] sm:$0x33 pattern:$0x75316420] }
  0x22   :  { %v5387_v15 = vcombine.high %v229_v3, %v229_v3  ;;  %v933_v17 = vrot.slane %v905_v5, %v5247_v8  ;;  %v288_v20 = vunpack.i.h.s16 %v222_v2  ;;  %v290_v22 = vunpack.i.h.s16 %v229_v3 }
  0x23   :  { %v286_v19 = vunpack.i.h.s16 %v207_v10  ;;  %4977 = vmatmul.mubr.bf16.vlgmr.msra.gmra.mxu0 %v418_v12  ;;  %v292_v23 = vunpack.i.h.s16 %v230_v14  ;;  %v4432_v24 = vpack.i.b16 %v198_v53, %v278_v34  ;;  %v4433_v25 = vpack.i.b16 %v205_v61, %v280_v11 }
  0x24   :  { %v935_v27 = vcombine.low %v926_v6, %v933_v17  ;;  %5009 = vmatpush3.bf16.msra.mxu0 %v5227_v1  ;;  %v4434_v28 = vpack.i.b16 %v206_v62, %v282_v16  ;;  %v4435_v29 = vpack.i.b16 %v207_v10, %v284_v18  ;;  %v4437_v32 = vpack.i.b16 %v229_v3, %v288_v20  ;;  %v4427_v10 = vld.sshfl [vmem:[%s6446_s0 + $0x4c] sm:$0x1 pattern:$0x75316420] }
  0x25   :  { %v4436_v30 = vpack.i.b16 %v222_v2, %v286_v19  ;;  %5010 = vmatprep.subr.bf16.mxu0 %v5232_v4  ;;  %v4438_v33 = vpack.i.b16 %v230_v14, %v290_v22  ;;  %v4439_v34 = vpack.i.b16 %v5387_v15, %v292_v23  ;;  %v419_v35 = vcombine.low %v4432_v24, %v4433_v25  ;;  %v4459_v17 = vld.sshfl [vmem:[%s6446_s0 + $0x5c] sm:$0x1 pattern:$0x75316420] }
  0x26   :  { %v949_v36 = vrot.slane %v935_v27, %v5247_v8  ;;  %v420_v37 = vcombine.low %v4434_v28, %v4435_v29  ;;  %v723_v39 = vcombine.high %v4457_v26, %v4457_v26  ;;  %v730_v40 = vrot.slane %v4457_v26, %v5247_v8  ;;  %v4476_v23 = vld.sshfl [vmem:[%s6446_s0 + $0x20] sm:$0x33 pattern:$0x75316420] }
  0x27   :  { %v421_v41 = vcombine.low %v4436_v30, %v4437_v32  ;;  %v422_v42 = vcombine.low %v4438_v33, %v4439_v34  ;;  %v429_v43 = vrot.slane %v419_v35, %v5247_v8  ;;  %v747_v44 = vcombine.high %v4458_v31, %v4458_v31  ;;  %v4477_v34 = vld.sshfl [vmem:[%s6446_s0 + $0x24] sm:$0x33 pattern:$0x75316420] }
  0x28   :  { %v950_v45 = vcombine.low %v942_v0, %v949_v36  ;;  %5011 = vmatpush3.bf16.msra.mxu0 %v5232_v4  ;;  %v436_v46 = vrot.slane %v420_v37, %v5247_v8  ;;  %v737_v48 = vrot.slane %v723_v39, %v5247_v8  ;;  %v738_v49 = vcombine.high %v730_v40, %v730_v40 }
  0x29   :  { %5012 = vmatprep.subr.bf16.mxu0 %v5243_v7  ;;  %v443_v50 = vrot.slane %v421_v41, %v5247_v8  ;;  %v450_v51 = vrot.slane %v422_v42, %v5247_v8  ;;  %v754_v52 = vrot.slane %v4458_v31, %v5247_v8  ;;  %v761_v53 = vrot.slane %v747_v44, %v5247_v8 }
  0x2a   :  { %5001 = vmatmul.mubr.bf16.vlgmr.msra.gmra.mxu1 %v950_v45  ;;  %v451_v54 = vcombine.low %v429_v43, %v436_v46  ;;  %v739_v56 = vcombine.high %v737_v48, %v737_v48  ;;  %v810_v57 = vunpack.i.h.s16 %v5374_v47  ;;  %v812_v58 = vunpack.i.h.s16 %v730_v40 }
  0x2b   :  { %5033 = vmatpush3.bf16.msra.mxu1 %v5227_v1  ;;  %v452_v59 = vcombine.low %v443_v50, %v450_v51  ;;  %v762_v60 = vcombine.high %v754_v52, %v754_v52  ;;  %v763_v61 = vcombine.high %v761_v53, %v761_v53  ;;  %v814_v62 = vunpack.i.h.s16 %v737_v48 }
  0x2c   :  { %5034 = vmatprep.subr.bf16.mxu1 %v5232_v4  ;;  %5013 = vmatpush3.bf16.msra.mxu0 %v5243_v7  ;;  %v459_v63 = vrot.slane %v451_v54, %v5247_v8  ;;  %v816_v0 = vunpack.i.h.s16 %v738_v49  ;;  %v818_v2 = vunpack.i.h.s16 %v739_v56  ;;  %v820_v3 = vunpack.i.h.s16 %v754_v52 }
  0x2d   :  { %5014 = vmatprep.subr.bf16.mxu0 %v5254_v9  ;;  %v466_v47 = vrot.slane %v452_v59, %v5247_v8  ;;  %v822_v5 = vunpack.i.h.s16 %v761_v53  ;;  %v824_v6 = vunpack.i.h.s16 %v762_v60  ;;  %v4464_v1 = vpack.i.b16 %v730_v40, %v810_v57 }
  0x2e   :  { %v4465_v11 = vpack.i.b16 %v737_v48, %v812_v58  ;;  %v4466_v12 = vpack.i.b16 %v738_v49, %v814_v62  ;;  %v4467_v14 = vpack.i.b16 %v739_v56, %v816_v0  ;;  %v4468_v16 = vpack.i.b16 %v754_v52, %v818_v2  ;;  %v4501_v52 = vld.sshfl [vmem:[%s6446_s0 + $0x34] sm:$0x33 pattern:$0x75316420] }
  0x2f   :  { %5035 = vmatpush3.bf16.msra.mxu1 %v5232_v4  ;;  %v467_v18 = vcombine.low %v459_v63, %v466_v47  ;;  %v4469_v19 = vpack.i.b16 %v761_v53, %v820_v3  ;;  %v4470_v20 = vpack.i.b16 %v762_v60, %v822_v5  ;;  %v4471_v22 = vpack.i.b16 %v763_v61, %v824_v6  ;;  %v4478_v58 = vld.sshfl [vmem:[%s6446_s0 + $0x28] sm:$0x33 pattern:$0x75316420] }
  0x30   :  { %5036 = vmatprep.subr.bf16.mxu1 %v5243_v7  ;;  %5015 = vmatpush3.bf16.msra.mxu0 %v5254_v9  ;;  %v951_v24 = vcombine.low %v4464_v1, %v4465_v11  ;;  %v952_v25 = vcombine.low %v4466_v12, %v4467_v14  ;;  %v245_v26 = vrot.slane %v4427_v10, %v5247_v8  ;;  %v294_v27 = vunpack.i.h.s16 %v5387_v15  ;;  %v4479_v11 = vld.sshfl [vmem:[%s6446_s0 + $0x2c] sm:$0x1 pattern:$0x75316420] }
  0x31   :  { %4980 = vmatprep.mubr.bf16.mxu0 %v467_v18  ;;  %v953_v4 = vcombine.low %v4468_v16, %v4469_v19  ;;  %v954_v28 = vcombine.low %v4470_v20, %v4471_v22  ;;  %v777_v29 = vrot.slane %v4459_v17, %v5247_v8  ;;  %v826_v30 = vunpack.i.h.s16 %v763_v61  ;;  %5016 = vmatprep.subr.bf16.mxu0 %v5279_v21 }
  0x32   :  { %v961_v31 = vrot.slane %v951_v24, %v5247_v8  ;;  %v968_v32 = vrot.slane %v952_v25, %v5247_v8  ;;  %v4440_v33 = vpack.i.b16 %v245_v26, %v294_v27  ;;  %v1097_v35 = vcombine.high %v4476_v23, %v4476_v23 }
  0x33   :  { %5037 = vmatpush3.bf16.msra.mxu1 %v5243_v7  ;;  %v975_v15 = vrot.slane %v953_v4, %v5247_v8  ;;  %v982_v36 = vrot.slane %v954_v28, %v5247_v8  ;;  %v4472_v37 = vpack.i.b16 %v777_v29, %v826_v30  ;;  %v1104_v39 = vrot.slane %v4476_v23, %v5247_v8  ;;  %v4500_v7 = vld.sshfl [vmem:[%s6446_s0 + $0x30] sm:$0x33 pattern:$0x75316420] }
  0x34   :  { %5038 = vmatprep.subr.bf16.mxu1 %v5254_v9  ;;  %v983_v40 = vcombine.low %v961_v31, %v968_v32  ;;  %v474_v41 = vrot.slane %v4440_v33, %v5247_v8  ;;  %5017 = vmatpush3.bf16.msra.mxu0 %v5279_v21  ;;  %v1111_v42 = vrot.slane %v1097_v35, %v5247_v8 }
  0x35   :  { %v984_v43 = vcombine.low %v975_v15, %v982_v36  ;;  %v1006_v44 = vrot.slane %v4472_v37, %v5247_v8  ;;  %5018 = vmatprep.subr.bf16.mxu0 %v5301_v38  ;;  %v1121_v45 = vcombine.high %v4477_v34, %v4477_v34  ;;  %v1128_v46 = vrot.slane %v4477_v34, %v5247_v8  ;;  %v4502_v15 = vld.sshfl [vmem:[%s6446_s0 + $0x38] sm:$0x33 pattern:$0x75316420] }
  0x36   :  { %v991_v48 = vrot.slane %v983_v40, %v5247_v8  ;;  %v481_v49 = vrot.slane %v474_v41, %v5247_v8  ;;  %v1337_v50 = vcombine.low %v1104_v39, %v1111_v42  ;;  %v4497_v51 = vcombine.high %v1104_v39, %v1111_v42  ;;  %v4503_v41 = vld.sshfl [vmem:[%s6446_s0 + $0x3c] sm:$0x1 pattern:$0x75316420] }
  0x37   :  { %5039 = vmatpush3.bf16.msra.mxu1 %v5254_v9  ;;  %v998_v53 = vrot.slane %v984_v43, %v5247_v8  ;;  %v1013_v54 = vrot.slane %v1006_v44, %v5247_v8  ;;  %v1135_v56 = vrot.slane %v1121_v45, %v5247_v8  ;;  %v1581_v57 = vcombine.high %v4500_v7, %v4500_v7  ;;  %v4504_v45 = vld.sshfl [vmem:[%s6446_s0 + $0x70] sm:$0x33 pattern:$0x75316420] }
  0x38   :  { %4981 = vmatmul.mubr.bf16.gmra.mxu0 %v481_v49  ;;  %5040 = vmatprep.subr.bf16.mxu1 %v5279_v21  ;;  %v1347_v59 = vrot.slane %v1337_v50, %v5247_v8  ;;  %v1354_v60 = vrot.slane %v4497_v51, %v5247_v8  ;;  %v1588_v9 = vrot.slane %v4500_v7, %v5247_v8 }
  0x39   :  { %v999_v61 = vcombine.low %v991_v48, %v998_v53  ;;  %5019 = vmatpush3.bf16.msra.mxu0 %v5301_v38  ;;  %v1339_v62 = vcombine.low %v1128_v46, %v1135_v56  ;;  %v4498_v63 = vcombine.high %v1128_v46, %v1135_v56  ;;  %v1595_v0 = vrot.slane %v1581_v57, %v5247_v8 }
  0x3a   :  { %5020 = vmatprep.subr.bf16.mxu0 %v5325_v55  ;;  %v1369_v2 = vcombine.low %v1347_v59, %v1354_v60  ;;  %v1605_v3 = vcombine.high %v4501_v52, %v4501_v52  ;;  %v1612_v47 = vrot.slane %v4501_v52, %v5247_v8  ;;  %v1145_v5 = vcombine.high %v4478_v58, %v4478_v58 }
  0x3b   :  { %5004 = vmatprep.mubr.bf16.mxu1 %v999_v61  ;;  %5041 = vmatpush3.bf16.msra.mxu1 %v5279_v21  ;;  %v1361_v6 = vrot.slane %v1339_v62, %v5247_v8  ;;  %v1368_v1 = vrot.slane %v4498_v63, %v5247_v8  ;;  %v1821_v10 = vcombine.low %v1588_v9, %v1595_v0  ;;  %v4480_v21 = vld.sshfl [vmem:[%s6446_s0 + $0x60] sm:$0x33 pattern:$0x75316420] }
  0x3c   :  { %5005 = vmatmul.mubr.bf16.gmra.mxu1 %v1013_v54  ;;  %5042 = vmatprep.subr.bf16.mxu1 %v5301_v38  ;;  %v1377_v12 = vrot.slane %v1369_v2, %v5247_v8  ;;  %v1619_v14 = vrot.slane %v1605_v3, %v5247_v8  ;;  %v4521_v16 = vcombine.high %v1588_v9, %v1595_v0 }
  0x3d   :  { %5021 = vmatpush3.bf16.msra.mxu0 %v5325_v55  ;;  %v1370_v17 = vcombine.low %v1361_v6, %v1368_v1  ;;  %v1831_v18 = vrot.slane %v1821_v10, %v5247_v8  ;;  %v1152_v19 = vrot.slane %v4478_v58, %v5247_v8  ;;  %v1159_v20 = vrot.slane %v1145_v5, %v5247_v8 }
  0x3e   :  { %5022 = vmatprep.subr.bf16.mxu0 %v5342_v13  ;;  %v1823_v22 = vcombine.low %v1612_v47, %v1619_v14  ;;  %v4522_v23 = vcombine.high %v1612_v47, %v1619_v14  ;;  %v1838_v24 = vrot.slane %v4521_v16, %v5247_v8  ;;  %v1175_v25 = vrot.slane %v4479_v11, %v5247_v8 }
  0x3f   :  { %5043 = vmatpush3.bf16.msra.mxu1 %v5301_v38  ;;  %v1384_v26 = vrot.slane %v1370_v17, %v5247_v8  ;;  %v1183_v27 = vcombine.high %v4480_v21, %v4480_v21  ;;  %v1190_v4 = vrot.slane %v4480_v21, %v5247_v8  ;;  %v1386_v28 = vcombine.low %v1152_v19, %v1159_v20 }
  0x40   :  { %5044 = vmatprep.subr.bf16.mxu1 %v5325_v55  ;;  %v1845_v29 = vrot.slane %v1823_v22, %v5247_v8  ;;  %v1852_v30 = vrot.slane %v4522_v23, %v5247_v8  ;;  %v1853_v31 = vcombine.low %v1831_v18, %v1838_v24  ;;  %v4499_v32 = vcombine.high %v1152_v19, %v1159_v20 }
  0x41   :  { %5023 = vmatpush3.bf16.msra.mxu0 %v5342_v13  ;;  %v1385_v33 = vcombine.low %v1377_v12, %v1384_v26  ;;  %v1197_v34 = vrot.slane %v1183_v27, %v5247_v8  ;;  %v1198_v38 = vcombine.high %v1190_v4, %v1190_v4  ;;  %v1288_v35 = vunpack.i.h.s16 %v1190_v4 }
  0x42   :  { %v1854_v36 = vcombine.low %v1845_v29, %v1852_v30  ;;  %v1861_v37 = vrot.slane %v1853_v31, %v5247_v8  ;;  %v4484_v39 = vpack.i.b16 %v1190_v4, %v1175_v25  ;;  %v1396_v40 = vrot.slane %v1386_v28, %v5247_v8 }
  0x43   :  { %5045 = vmatpush3.bf16.msra.mxu1 %v5325_v55  ;;  %5024 = vmatprep.mubr.bf16.mxu0 %v1385_v33  ;;  %v5508_v42 = vcombine.high %v1197_v34, %v1197_v34  ;;  %v1290_v7 = vunpack.i.h.s16 %v1197_v34  ;;  %v1292_v43 = vunpack.i.h.s16 %v1198_v38  ;;  %v4485_v44 = vpack.i.b16 %v1197_v34, %v1288_v35  ;;  %v4481_v55 = vld.sshfl [vmem:[%s6446_s0 + $0x64] sm:$0x33 pattern:$0x75316420] }
  0x44   :  { %5046 = vmatprep.subr.bf16.mxu1 %v5342_v13  ;;  %v1868_v46 = vrot.slane %v1854_v36, %v5247_v8  ;;  %v1403_v48 = vrot.slane %v4499_v32, %v5247_v8  ;;  %v1629_v49 = vcombine.high %v4502_v15, %v4502_v15  ;;  %v1636_v50 = vrot.slane %v4502_v15, %v5247_v8 }
  0x45   :  { %v4486_v51 = vpack.i.b16 %v1198_v38, %v1290_v7  ;;  %v4487_v52 = vpack.i.b16 %v5508_v42, %v1292_v43  ;;  %v1388_v53 = vcombine.low %v4484_v39, %v4485_v44  ;;  %v1659_v54 = vrot.slane %v4503_v41, %v5247_v8 }
  0x46   :  { %v1869_v56 = vcombine.low %v1861_v37, %v1868_v46  ;;  %v1418_v57 = vcombine.low %v1396_v40, %v1403_v48  ;;  %v1643_v58 = vrot.slane %v1629_v49, %v5247_v8  ;;  %v1667_v59 = vcombine.high %v4504_v45, %v4504_v45  ;;  %v4505_v46 = vld.sshfl [vmem:[%s6446_s0 + $0x74] sm:$0x33 pattern:$0x75316420] }
  0x47   :  { %5047 = vmatpush3.bf16.msra.mxu1 %v5342_v13  ;;  %v1389_v60 = vcombine.low %v4486_v51, %v4487_v52  ;;  %v1410_v9 = vrot.slane %v1388_v53, %v5247_v8  ;;  %v1674_v61 = vrot.slane %v4504_v45, %v5247_v8  ;;  %v1207_v62 = vcombine.high %v4481_v55, %v4481_v55  ;;  %v4482_v13 = vld.sshfl [vmem:[%s6446_s0 + $0x68] sm:$0x33 pattern:$0x75316420] }
  0x48   :  { %5048 = vmatprep.mubr.bf16.mxu1 %v1869_v56  ;;  %v1426_v63 = vrot.slane %v1418_v57, %v5247_v8  ;;  %v1681_v0 = vrot.slane %v1667_v59, %v5247_v8  ;;  %v1870_v2 = vcombine.low %v1636_v50, %v1643_v58  ;;  %v4523_v3 = vcombine.high %v1636_v50, %v1643_v58 }
  0x49   :  { %v1417_v47 = vrot.slane %v1389_v60, %v5247_v8  ;;  %v1682_v5 = vcombine.high %v1674_v61, %v1674_v61  ;;  %v1772_v6 = vunpack.i.h.s16 %v1674_v61  ;;  %v4508_v1 = vpack.i.b16 %v1674_v61, %v1659_v54 }
  0x4a   :  { %v5532_v10 = vcombine.high %v1681_v0, %v1681_v0  ;;  %v1774_v11 = vunpack.i.h.s16 %v1681_v0  ;;  %v1880_v12 = vrot.slane %v1870_v2, %v5247_v8  ;;  %v1887_v14 = vrot.slane %v4523_v3, %v5247_v8 }
  0x4b   :  { %v1419_v16 = vcombine.low %v1410_v9, %v1417_v47  ;;  %v1776_v21 = vunpack.i.h.s16 %v1682_v5  ;;  %v4509_v17 = vpack.i.b16 %v1681_v0, %v1772_v6  ;;  %v1214_v18 = vrot.slane %v4481_v55, %v5247_v8  ;;  %v4506_v55 = vld.sshfl [vmem:[%s6446_s0 + $0x78] sm:$0x33 pattern:$0x75316420] }
  0x4c   :  { %v4510_v19 = vpack.i.b16 %v1682_v5, %v1774_v11  ;;  %v1902_v20 = vcombine.low %v1880_v12, %v1887_v14  ;;  %v1221_v22 = vrot.slane %v1207_v62, %v5247_v8  ;;  %v1231_v23 = vcombine.high %v4482_v13, %v4482_v13 }
  0x4d   :  { %v1433_v24 = vrot.slane %v1419_v16, %v5247_v8  ;;  %v4511_v25 = vpack.i.b16 %v5532_v10, %v1776_v21  ;;  %v1872_v26 = vcombine.low %v4508_v1, %v4509_v17  ;;  %v1222_v27 = vcombine.high %v1214_v18, %v1214_v18 }
  0x4e   :  { %v1910_v4 = vrot.slane %v1902_v20, %v5247_v8  ;;  %v1223_v28 = vcombine.high %v1221_v22, %v1221_v22  ;;  %v1238_v29 = vrot.slane %v4482_v13, %v5247_v8  ;;  %v1245_v30 = vrot.slane %v1231_v23, %v5247_v8 }
  0x4f   :  { %v1434_v31 = vcombine.low %v1426_v63, %v1433_v24  ;;  %v1873_v32 = vcombine.low %v4510_v19, %v4511_v25  ;;  %v1894_v33 = vrot.slane %v1872_v26, %v5247_v8  ;;  %v1294_v34 = vunpack.i.h.s16 %v5508_v42 }
  0x50   :  { %v1246_v38 = vcombine.high %v1238_v29, %v1238_v29  ;;  %v5545_v35 = vcombine.high %v1245_v30, %v1245_v30  ;;  %v1296_v15 = vunpack.i.h.s16 %v1214_v18  ;;  %v1298_v36 = vunpack.i.h.s16 %v1221_v22 }
  0x51   :  { %5025 = vmatmul.mubr.bf16.vlgmr.msra.gmra.mxu0 %v1434_v31  ;;  %v1901_v37 = vrot.slane %v1873_v32, %v5247_v8  ;;  %v1300_v39 = vunpack.i.h.s16 %v1222_v27  ;;  %v1302_v40 = vunpack.i.h.s16 %v1223_v28  ;;  %v1304_v41 = vunpack.i.h.s16 %v1238_v29  ;;  %v4507_v31 = vld.sshfl [vmem:[%s6446_s0 + $0x7c] sm:$0x1 pattern:$0x75316420] }
  0x52   :  { %v1306_v7 = vunpack.i.h.s16 %v1245_v30  ;;  %v1308_v43 = vunpack.i.h.s16 %v1246_v38  ;;  %v4488_v44 = vpack.i.b16 %v1214_v18, %v1294_v34  ;;  %v4489_v45 = vpack.i.b16 %v1221_v22, %v1296_v15 }
  0x53   :  { %v1903_v42 = vcombine.low %v1894_v33, %v1901_v37  ;;  %v4490_v48 = vpack.i.b16 %v1222_v27, %v1298_v36  ;;  %v4491_v49 = vpack.i.b16 %v1223_v28, %v1300_v39  ;;  %v4492_v50 = vpack.i.b16 %v1238_v29, %v1302_v40 }
  0x54   :  { %v4493_v51 = vpack.i.b16 %v1245_v30, %v1304_v41  ;;  %v4494_v52 = vpack.i.b16 %v1246_v38, %v1306_v7  ;;  %v4495_v53 = vpack.i.b16 %v5545_v35, %v1308_v43  ;;  %v1435_v54 = vcombine.low %v4488_v44, %v4489_v45 }
  0x55   :  { %v1917_v56 = vrot.slane %v1903_v42, %v5247_v8  ;;  %v1436_v57 = vcombine.low %v4490_v48, %v4491_v49  ;;  %v1691_v58 = vcombine.high %v4505_v46, %v4505_v46  ;;  %v1698_v59 = vrot.slane %v4505_v46, %v5247_v8 }
  0x56   :  { %v1437_v60 = vcombine.low %v4492_v50, %v4493_v51  ;;  %v1438_v9 = vcombine.low %v4494_v52, %v4495_v53  ;;  %v1445_v61 = vrot.slane %v1435_v54, %v5247_v8  ;;  %v1715_v62 = vcombine.high %v4506_v55, %v4506_v55 }
  0x57   :  { %v1918_v63 = vcombine.low %v1910_v4, %v1917_v56  ;;  %v1452_v0 = vrot.slane %v1436_v57, %v5247_v8  ;;  %v1705_v2 = vrot.slane %v1691_v58, %v5247_v8  ;;  %v1706_v3 = vcombine.high %v1698_v59, %v1698_v59  ;;  %v4483_v4 = vld.sshfl [vmem:[%s6446_s0 + $0x6c] sm:$0x1 pattern:$0x75316420]  ;;  %v5065_v58 = vld [vmem:[%s6447_s2 + $0x78] sm:$0xff]  }
  0x58   :  { %v1459_v47 = vrot.slane %v1437_v60, %v5247_v8  ;;  %v1466_v5 = vrot.slane %v1438_v9, %v5247_v8  ;;  %v1722_v6 = vrot.slane %v4506_v55, %v5247_v8  ;;  %v1729_v1 = vrot.slane %v1715_v62, %v5247_v8  ;;  %4736 = vmatprep.subr.bf16.mxu0 %v5065_v58  ;;  %v5067_v60 = vld [vmem:[%s6447_s2 + $0x38] sm:$0xff]   ;;  %v5070_v62 = vld [vmem:[%s6447_s2 + $0xf0] sm:$0xff]  }
  0x59   :  { %5049 = vmatmul.mubr.bf16.vlgmr.msra.gmra.mxu1 %v1918_v63  ;;  %v1467_v13 = vcombine.low %v1445_v61, %v1452_v0  ;;  %v1707_v11 = vcombine.high %v1705_v2, %v1705_v2  ;;  %v1778_v12 = vunpack.i.h.s16 %v5532_v10  ;;  %v1780_v14 = vunpack.i.h.s16 %v1698_v59  ;;  %v5068_v9 = vld [vmem:[%s6447_s2 + $0xb8] sm:$0xff]   ;;  %4737 = vmatpush3.bf16.msra.mxu0 %v5067_v60  ;;  %v5069_v61 = vld [vmem:[%s6447_s2 + $0x70] sm:$0xff]  }
  0x5a   :  { %v1468_v16 = vcombine.low %v1459_v47, %v1466_v5  ;;  %v1730_v21 = vcombine.high %v1722_v6, %v1722_v6  ;;  %v1731_v17 = vcombine.high %v1729_v1, %v1729_v1  ;;  %v1782_v18 = vunpack.i.h.s16 %v1705_v2  ;;  %4738 = vmatprep.subr.bf16.mxu0 %v5069_v61  ;;  %v5071_v63 = vld [vmem:[%s6447_s2 + $0x30] sm:$0xff]   ;;  %v5075_v47 = vld [vmem:[%s6447_s2 + $0x28] sm:$0xff]  }
  0x5b   :  { %v1475_v19 = vrot.slane %v1467_v13, %v5247_v8  ;;  %v1784_v20 = vunpack.i.h.s16 %v1706_v3  ;;  %v1786_v22 = vunpack.i.h.s16 %v1707_v11  ;;  %v1788_v23 = vunpack.i.h.s16 %v1722_v6  ;;  %v5072_v0 = vld [vmem:[%s6447_s2 + $0xb0] sm:$0xff]   ;;  %v5076_v5 = vld [vmem:[%s6447_s2 + $0xa8] sm:$0xff]   ;;  %v5079_v13 = vld [vmem:[%s6447_s2 + $0x20] sm:$0xff]  }
  0x5c   :  { %v1482_v24 = vrot.slane %v1468_v16, %v5247_v8  ;;  %v1790_v25 = vunpack.i.h.s16 %v1729_v1  ;;  %v1792_v26 = vunpack.i.h.s16 %v1730_v21  ;;  %v4512_v27 = vpack.i.b16 %v1698_v59, %v1778_v12  ;;  %v5066_v59 = vld [vmem:[%s6447_s2 + $0xf8] sm:$0xff]  }
  0x5d   :  { %v4513_v10 = vpack.i.b16 %v1705_v2, %v1780_v14  ;;  %v4514_v28 = vpack.i.b16 %v1706_v3, %v1782_v18  ;;  %v4515_v29 = vpack.i.b16 %v1707_v11, %v1784_v20  ;;  %v4516_v30 = vpack.i.b16 %v1722_v6, %v1786_v22  ;;  %4764 = vmatprep.subr.bf16.mxu1 %v5066_v59  ;;  %v5073_v2 = vld [vmem:[%s6447_s2 + $0x68] sm:$0xff]   ;;  %v5077_v6 = vld [vmem:[%s6447_s2 + $0x60] sm:$0xff]   ;;  %v5081_v12 = vld [vmem:[%s6447_s2 + $0x58] sm:$0xff]  }
  0x5e   :  { %v1483_v32 = vcombine.low %v1475_v19, %v1482_v24  ;;  %v4517_v33 = vpack.i.b16 %v1729_v1, %v1788_v23  ;;  %v4518_v34 = vpack.i.b16 %v1730_v21, %v1790_v25  ;;  %v4519_v38 = vpack.i.b16 %v1731_v17, %v1792_v26  ;;  %4765 = vmatpush3.bf16.msra.mxu1 %v5068_v9  ;;  %v5074_v3 = vld [vmem:[%s6447_s2 + $0xe8] sm:$0xff]   ;;  %v5078_v1 = vld [vmem:[%s6447_s2 + $0xe0] sm:$0xff]   ;;  %v5082_v14 = vld [vmem:[%s6447_s2 + $0xd8] sm:$0xff]  }
  0x5f   :  { %v1919_v15 = vcombine.low %v4512_v27, %v4513_v10  ;;  %v1920_v36 = vcombine.low %v4514_v28, %v4515_v29  ;;  %v1261_v37 = vrot.slane %v4483_v4, %v5247_v8  ;;  %v1310_v39 = vunpack.i.h.s16 %v5545_v35  ;;  %4766 = vmatprep.subr.bf16.mxu1 %v5070_v62  ;;  %4739 = vmatpush3.bf16.msra.mxu0 %v5071_v63  ;;  %v5080_v11 = vld [vmem:[%s6447_s2 + $0xa0] sm:$0xff]   ;;  %v5083_v16 = vld [vmem:[%s6447_s2 + $0x18] sm:$0xff]   ;;  %v5086_v18 = vld [vmem:[%s6447_s2 + $0xd0] sm:$0xff]  }
  0x60   :  { %5028 = vmatprep.mubr.bf16.mxu0 %v1483_v32  ;;  %v1921_v40 = vcombine.low %v4516_v30, %v4517_v33  ;;  %v1922_v41 = vcombine.low %v4518_v34, %v4519_v38  ;;  %v1745_v7 = vrot.slane %v4507_v31, %v5247_v8  ;;  %v1794_v43 = vunpack.i.h.s16 %v1731_v17  ;;  %4740 = vmatprep.subr.bf16.mxu0 %v5073_v2  ;;  %v5084_v21 = vld [vmem:[%s6447_s2 + $0x98] sm:$0xff]   ;;  %v5085_v17 = vld [vmem:[%s6447_s2 + $0x50] sm:$0xff]   ;;  %v5089_v22 = vld [vmem:[%s6447_s2 + $0x48] sm:$0xff]  }
  0x61   :  { %v1929_v44 = vrot.slane %v1919_v15, %v5247_v8  ;;  %v1936_v45 = vrot.slane %v1920_v36, %v5247_v8  ;;  %v4496_v46 = vpack.i.b16 %v1261_v37, %v1310_v39  ;;  %v5087_v19 = vld [vmem:[%s6447_s2 + $0x10] sm:$0xff]   ;;  %v5090_v23 = vld [vmem:[%s6447_s2 + $0xc8] sm:$0xff]   ;;  %v5093_v26 = vld [vmem:[%s6447_s2 + $0x40] sm:$0xff]  }
  0x62   :  { %v1943_v42 = vrot.slane %v1921_v40, %v5247_v8  ;;  %v1950_v48 = vrot.slane %v1922_v41, %v5247_v8  ;;  %v4520_v49 = vpack.i.b16 %v1745_v7, %v1794_v43  ;;  %4767 = vmatpush3.bf16.msra.mxu1 %v5072_v0  ;;  %v5088_v20 = vld [vmem:[%s6447_s2 + $0x90] sm:$0xff]   ;;  %v5091_v24 = vld [vmem:[%s6447_s2 + $0x8] sm:$0xff]   ;;  %v5094_v27 = vld [vmem:[%s6447_s2 + $0xc0] sm:$0xff]  }
  0x63   :  { %v1951_v50 = vcombine.low %v1929_v44, %v1936_v45  ;;  %v1490_v55 = vrot.slane %v4496_v46, %v5247_v8  ;;  %4768 = vmatprep.subr.bf16.mxu1 %v5074_v3  ;;  %4741 = vmatpush3.bf16.msra.mxu0 %v5075_v47  ;;  %v5092_v25 = vld [vmem:[%s6447_s2 + $0x88] sm:$0xff]   ;;  %v5095_v4 = vld [vmem:[%s6447_s2] sm:$0xff]   ;;  %v5097_v28 = vld [vmem:[%s6447_s2 + $0x178] sm:$0xff]  }
  0x64   :  { %v1952_v35 = vcombine.low %v1943_v42, %v1950_v48  ;;  %v1974_v51 = vrot.slane %v4520_v49, %v5247_v8  ;;  %4742 = vmatprep.subr.bf16.mxu0 %v5077_v6  ;;  %v5096_v10 = vld [vmem:[%s6447_s2 + $0x80] sm:$0xff]   ;;  %v5098_v29 = vld [vmem:[%s6447_s2 + $0x1f8] sm:$0xff]  }
  0x65   :  { %v1959_v52 = vrot.slane %v1951_v50, %v5247_v8  ;;  %v1497_v53 = vrot.slane %v1490_v55, %v5247_v8 }
  0x66   :  { %v1966_v54 = vrot.slane %v1952_v35, %v5247_v8  ;;  %v1981_v56 = vrot.slane %v1974_v51, %v5247_v8  ;;  %4769 = vmatpush3.bf16.msra.mxu1 %v5076_v5 }
  0x67   :  { %5029 = vmatmul.mubr.bf16.gmra.mxu0 %v1497_v53  ;;  %4770 = vmatprep.subr.bf16.mxu1 %v5078_v1 }
  0x68   :  { %v1967_v57 = vcombine.low %v1959_v52, %v1966_v54  ;;  %4743 = vmatpush3.bf16.msra.mxu0 %v5079_v13 }
  0x69   :  { %4744 = vmatprep.subr.bf16.mxu0 %v5081_v12 }
  0x6a   :  { %5052 = vmatprep.mubr.bf16.mxu1 %v1967_v57  ;;  %4771 = vmatpush3.bf16.msra.mxu1 %v5080_v11 }
  0x6b   :  { %5053 = vmatmul.mubr.bf16.gmra.mxu1 %v1981_v56  ;;  %4772 = vmatprep.subr.bf16.mxu1 %v5082_v14 }
  0x6c   :  { %4745 = vmatpush3.bf16.msra.mxu0 %v5083_v16 }
  0x6d   :  { %4746 = vmatprep.subr.bf16.mxu0 %v5085_v17 }
  0x6e   :  { %4773 = vmatpush3.bf16.msra.mxu1 %v5084_v21 }
  0x6f   :  { %4774 = vmatprep.subr.bf16.mxu1 %v5086_v18 }
  0x70   :  { %4747 = vmatpush3.bf16.msra.mxu0 %v5087_v19 }
  0x71   :  { %4748 = vmatprep.subr.bf16.mxu0 %v5089_v22 }
  0x72   :  { %4775 = vmatpush3.bf16.msra.mxu1 %v5088_v20 }
  0x73   :  { %4776 = vmatprep.subr.bf16.mxu1 %v5090_v23 }
  0x74   :  { %4749 = vmatpush3.bf16.msra.mxu0 %v5091_v24 }
  0x75   :  { %4750 = vmatprep.subr.bf16.mxu0 %v5093_v26 }
  0x76   :  { %4777 = vmatpush3.bf16.msra.mxu1 %v5092_v25 }
  0x77   :  { %4778 = vmatprep.subr.bf16.mxu1 %v5094_v27 }
  0x78   :  { %4751 = vmatpush3.bf16.msra.mxu0 %v5095_v4 }
  0x79   :  { %4792 = vmatprep.subr.bf16.mxu0 %v5097_v28 }
  0x7a   :  { %4779 = vmatpush3.bf16.msra.mxu1 %v5096_v10 }
  0x7b   :  { %4820 = vmatprep.subr.bf16.mxu1 %v5098_v29 }
  0xe3   :  { %v4978_v30 = vpop.f32.mrf.mxu0 }
  0xe4   :  { %vm2058_vm2 = vcmp.ge.f32.partialorder %v4978_v30, 0.0  ;;  %v2086_v49 = vmul.f32 0.2, %v4978_v30 }
  0xe5   :  { %v568_v32 = vpop.f32.mrf.mxu0 }
  0xe6   :  { %vm2050_vm3 = vcmp.ge.f32.partialorder %v568_v32, 0.0  ;;  %v2078_v50 = vmul.f32 0.2, %v568_v32  ;;  %v2114_v59 = vsel %vm2058_vm2, %v4978_v30, %v2086_v49 }
  0xe7   :  { %v4979_v34 = vpop.f32.mrf.mxu0 }
  0xe8   :  { %v2090_v55 = vmul.f32 0.2, %v4979_v34  ;;  %vm2062_vm5 = vcmp.ge.f32.partialorder %v4979_v34, 0.0  ;;  %v2106_v2 = vsel %vm2050_vm3, %v568_v32, %v2078_v50 }
  0xe9   :  { %v571_v15 = vpop.f32.mrf.mxu0 }
  0xea   :  { %v5002_v31 = vpop.f32.mrf.mxu1  ;;  %v2082_v35 = vmul.f32 0.2, %v571_v15  ;;  %vm2054_vm6 = vcmp.ge.f32.partialorder %v571_v15, 0.0  ;;  %v5716_v1 = vsel %vm2062_vm5, %v4979_v34, %v2090_v55 }
  0xeb   :  { %vm2059_vm4 = vcmp.ge.f32.partialorder %v5002_v31, 0.0  ;;  %v2087_v52 = vmul.f32 0.2, %v5002_v31 }
  0xec   :  { %v1052_v33 = vpop.f32.mrf.mxu1  ;;  %v2110_v18 = vsel %vm2054_vm6, %v571_v15, %v2082_v35 }
  0xed   :  { %v2079_v53 = vmul.f32 0.2, %v1052_v33  ;;  %vm2051_vm7 = vcmp.ge.f32.partialorder %v1052_v33, 0.0  ;;  %v2115_v60 = vsel %vm2059_vm4, %v5002_v31, %v2087_v52 }
  0xee   :  { %v5688_v38 = vpop.f32.mrf.mxu1  ;;  %v4528_v0 = vpack.c.bf16 %v2115_v60, %v2114_v59 }
  0xef   :  { %vm2063_vm8 = vcmp.ge.f32.partialorder %v5688_v38, 0.0  ;;  %v2091_v56 = vmul.f32 0.2, %v5688_v38  ;;  %v2107_v5 = vsel %vm2051_vm7, %v1052_v33, %v2079_v53 }
  0xf0   :  { %v5690_v39 = vpop.f32.mrf.mxu1  ;;  %v5722_v21 = vrot.slane %v4528_v0, %v5247_v8  ;;  %v4524_v17 = vpack.c.bf16 %v2107_v5, %v2106_v2 }
  0xf1   :  { %v2083_v57 = vmul.f32 0.2, %v5690_v39  ;;  %vm2055_vm9 = vcmp.ge.f32.partialorder %v5690_v39, 0.0  ;;  %v2119_v24 = vsel %vm2063_vm8, %v5688_v38, %v2091_v56 }
  0xf2   :  { %v2176_v15 = vrot.slane %v4524_v17, %v5247_v8 }
  0xf3   :  { %v2111_v25 = vsel %vm2055_vm9, %v5690_v39, %v2083_v57 }
  0xf4   :  { %v4525_v39 = vpack.c.bf16 %v2111_v25, %v2110_v18 }
  0xf8   :  { %v4982_v36 = vpop.f32.mrf.mxu0 }
  0xf9   :  { %v2102_v37 = vmul.f32 0.2, %v4982_v36  ;;  %vm2074_vm0 = vcmp.ge.f32.partialorder %v4982_v36, 0.0 }
  0xfa   :  { %v5692_v40 = vpop.f32.mrf.mxu0 }
  0xfb   :  { %v5694_v43 = vsel %vm2074_vm0, %v4982_v36, %v2102_v37  ;;  %v2094_v9 = vmul.f32 0.2, %v5692_v40  ;;  %vm2066_vm11 = vcmp.ge.f32.partialorder %v5692_v40, 0.0 }
  0xfc   :  { %v5006_v41 = vpop.f32.mrf.mxu1  ;;  %v4983_v7 = vpop.f32.mrf.mxu0 }
  0xfd   :  { %vm2075_vm1 = vcmp.ge.f32.partialorder %v5006_v41, 0.0  ;;  %v2103_v44 = vmul.f32 0.2, %v5006_v41  ;;  %v2122_v49 = vsel %vm2066_vm11, %v5692_v40, %v2094_v9  ;;  %v2183_v40 = vrot.slane %v4525_v39, %v5247_v8 }
  0xfe   :  { %v5696_v45 = vpop.f32.mrf.mxu1  ;;  %v5702_v51 = vpop.f32.mrf.mxu0 }
  0xff   :  { %v5698_v46 = vsel %vm2075_vm1, %v5006_v41, %v2103_v44  ;;  %v2095_v61 = vmul.f32 0.2, %v5696_v45  ;;  %v2098_v6 = vmul.f32 0.2, %v5702_v51  ;;  %vm2067_vm13 = vcmp.ge.f32.partialorder %v5696_v45, 0.0 }
 0x100   :  { %v4536_v42 = vpack.c.bf16 %v5698_v46, %v5694_v43  ;;  %v5007_v48 = vpop.f32.mrf.mxu1  ;;  %vm2070_vm14 = vcmp.ge.f32.partialorder %v5702_v51, 0.0 }
 0x101   :  { %v4529_v48 = vpack.c.bf16 %v2119_v24, %v5716_v1  ;;  %v2123_v35 = vsel %vm2067_vm13, %v5696_v45, %v2095_v61  ;;  %v2126_v52 = vsel %vm2070_vm14, %v5702_v51, %v2098_v6 }
 0x102   :  { %v1071_v3 = vpop.f32.mrf.mxu1  ;;  %v4532_v60 = vpack.c.bf16 %v2123_v35, %v2122_v49 }
 0x103   :  { %v2099_v29 = vmul.f32 0.2, %v1071_v3  ;;  %vm2071_vm4 = vcmp.ge.f32.partialorder %v1071_v3, 0.0 }
 0x105   :  { %v2127_v53 = vsel %vm2071_vm4, %v1071_v3, %v2099_v29 }
 0x106   :  { %v4533_v51 = vpack.c.bf16 %v2127_v53, %v2126_v52 }
 0x111   :  { %v5026_v54 = vpop.f32.mrf.mxu0 }
 0x112   :  { %vm2060_vm10 = vcmp.ge.f32.partialorder %v5026_v54, 0.0  ;;  %v2088_v62 = vmul.f32 0.2, %v5026_v54 }
 0x113   :  { %v1536_v58 = vpop.f32.mrf.mxu0 }
 0x114   :  { %v2080_v47 = vmul.f32 0.2, %v1536_v58  ;;  %vm2052_vm12 = vcmp.ge.f32.partialorder %v1536_v58, 0.0  ;;  %v2116_v12 = vsel %vm2060_vm10, %v5026_v54, %v2088_v62 }
 0x115   :  { %v5027_v63 = vpop.f32.mrf.mxu0 }
 0x116   :  { %v2092_v11 = vmul.f32 0.2, %v5027_v63  ;;  %v2108_v19 = vsel %vm2052_vm12, %v1536_v58, %v2080_v47  ;;  %vm2064_vm1 = vcmp.ge.f32.partialorder %v5027_v63, 0.0 }
 0x117   :  { %v1539_v16 = vpop.f32.mrf.mxu0 }
 0x118   :  { %v2084_v4 = vmul.f32 0.2, %v1539_v16  ;;  %vm2056_vm3 = vcmp.ge.f32.partialorder %v1539_v16, 0.0  ;;  %v2120_v32 = vsel %vm2064_vm1, %v5027_v63, %v2092_v11  ;;  %v2251_v63 = vrot.slane %v4529_v48, %v5247_v8 }
 0x119   :  { %v5050_v13 = vpop.f32.mrf.mxu1 }
 0x11a   :  { %vm2061_vm15 = vcmp.ge.f32.partialorder %v5050_v13, 0.0  ;;  %v2089_v14 = vmul.f32 0.2, %v5050_v13  ;;  %v2112_v37 = vsel %vm2056_vm3, %v1539_v16, %v2084_v4  ;;  %v5781_v16 = vrot.slane %v4532_v60, %v5247_v8 }
 0x11b   :  { %v2020_v20 = vpop.f32.mrf.mxu1 }
 0x11c   :  { %v2117_v22 = vsel %vm2061_vm15, %v5050_v13, %v2089_v14  ;;  %vm2053_vm0 = vcmp.ge.f32.partialorder %v2020_v20, 0.0  ;;  %v2081_v23 = vmul.f32 0.2, %v2020_v20  ;;  %v5774_v13 = vrot.slane %v4536_v42, %v5247_v8 }
 0x11d   :  { %v4530_v26 = vpack.c.bf16 %v2117_v22, %v2116_v12  ;;  %v5051_v27 = vpop.f32.mrf.mxu1 }
 0x11e   :  { %v2109_v10 = vsel %vm2053_vm0, %v2020_v20, %v2081_v23  ;;  %vm2065_vm2 = vcmp.ge.f32.partialorder %v5051_v27, 0.0  ;;  %v2093_v28 = vmul.f32 0.2, %v5051_v27 }
 0x11f   :  { %v2258_v30 = vrot.slane %v4530_v26, %v5247_v8  ;;  %v4526_v31 = vpack.c.bf16 %v2109_v10, %v2108_v19  ;;  %v2023_v33 = vpop.f32.mrf.mxu1 }
 0x120   :  { %v2121_v34 = vsel %vm2065_vm2, %v5051_v27, %v2093_v28  ;;  %vm2057_vm5 = vcmp.ge.f32.partialorder %v2023_v33, 0.0  ;;  %v2085_v38 = vmul.f32 0.2, %v2023_v33 }
 0x121   :  { %v2190_v36 = vrot.slane %v4526_v31, %v5247_v8  ;;  %v2266_v41 = vcombine.low %v5722_v21, %v2258_v30  ;;  %v4531_v7 = vpack.c.bf16 %v2121_v34, %v2120_v32  ;;  %v2267_v0 = vcombine.high %v5722_v21, %v2258_v30 }
 0x122   :  { %v2113_v44 = vsel %vm2057_vm5, %v2023_v33, %v2085_v38  ;;  %v5784_v21 = vrot.slane %v4533_v51, %v5247_v8 }
 0x123   :  { %v2198_v50 = vcombine.low %v2176_v15, %v2190_v36  ;;  %v2199_v55 = vcombine.high %v2176_v15, %v2190_v36  ;;  %v4527_v54 = vpack.c.bf16 %v2113_v44, %v2112_v37  ;;  %v5754_v58 = vrot.slane %v2266_v41, %v5247_v8 }
 0x124   :  { %v2265_v45 = vrot.slane %v4531_v7, %v5247_v8  ;;  %v5791_v42 = vrot.slane %v2267_v0, %v5247_v8 }
 0x125   :  { %v5747_v56 = vrot.slane %v2198_v50, %v5247_v8  ;;  %v5750_v57 = vrot.slane %v2199_v55, %v5247_v8  ;;  %v2197_v59 = vrot.slane %v4527_v54, %v5247_v8  ;;  %v2411_v11 = vunpack.i.h.s16 %v5754_v58 }
 0x126   :  { %v2268_v12 = vcombine.low %v2251_v63, %v2265_v45  ;;  %v2269_v27 = vcombine.high %v2251_v63, %v2265_v45 }
 0x127   :  { %v5760_v9 = vcombine.high %v5747_v56, %v5747_v56  ;;  %v5764_v61 = vcombine.high %v5750_v57, %v5750_v57  ;;  %v5030_v62 = vpop.f32.mrf.mxu0  ;;  %v2200_v2 = vcombine.low %v2183_v40, %v2197_v59  ;;  %v2201_v3 = vcombine.high %v2183_v40, %v2197_v59 }
 0x128   :  { %vm2076_vm6 = vcmp.ge.f32.partialorder %v5030_v62, 0.0  ;;  %v2104_v6 = vmul.f32 0.2, %v5030_v62  ;;  %v4541_v26 = vpack.i.b16 %v5791_v42, %v2411_v11  ;;  %v5805_v4 = vrot.slane %v2268_v12, %v5247_v8 }
 0x129   :  { %v2399_v47 = vunpack.i.h.s16 %v5760_v9  ;;  %v2401_v5 = vunpack.i.h.s16 %v5764_v61  ;;  %v1552_v1 = vpop.f32.mrf.mxu0  ;;  %v5778_v14 = vrot.slane %v2200_v2, %v5247_v8  ;;  %v5787_v17 = vrot.slane %v2201_v3, %v5247_v8 }
 0x12a   :  { %v2132_v22 = vsel %vm2076_vm6, %v5030_v62, %v2104_v6  ;;  %vm2068_vm8 = vcmp.ge.f32.partialorder %v1552_v1, 0.0  ;;  %v2096_v10 = vmul.f32 0.2, %v1552_v1  ;;  %v2460_v41 = vcombine.low %v5747_v56, %v5750_v57 }
 0x12b   :  { %v4538_v18 = vpack.i.b16 %v5764_v61, %v2399_v47  ;;  %v5054_v43 = vpop.f32.mrf.mxu1  ;;  %v5031_v46 = vpop.f32.mrf.mxu0  ;;  %v5795_v19 = vcombine.high %v5778_v14, %v5778_v14  ;;  %v4539_v20 = vpack.i.b16 %v5778_v14, %v2401_v5  ;;  %v5801_v23 = vcombine.high %v5787_v17, %v5787_v17 }
 0x12c   :  { %vm2077_vm7 = vcmp.ge.f32.partialorder %v5054_v43, 0.0  ;;  %v2105_v24 = vmul.f32 0.2, %v5054_v43  ;;  %v2124_v38 = vsel %vm2068_vm8, %v1552_v1, %v2096_v10  ;;  %v5817_v49 = vrot.slane %v2269_v27, %v5247_v8 }
 0x12d   :  { %v2036_v25 = vpop.f32.mrf.mxu1  ;;  %v1555_v28 = vpop.f32.mrf.mxu0  ;;  %v2409_v29 = vunpack.i.h.s16 %v5801_v23  ;;  %v2461_v30 = vcombine.low %v4538_v18, %v4539_v20  ;;  %v2462_v33 = vcombine.low %v5787_v17, %v5795_v19  ;;  %v2470_v54 = vrot.slane %v2460_v41, %v5247_v8 }
 0x12e   :  { %v2133_v31 = vsel %vm2077_vm7, %v5054_v43, %v2105_v24  ;;  %vm2069_vm9 = vcmp.ge.f32.partialorder %v2036_v25, 0.0  ;;  %v2097_v15 = vmul.f32 0.2, %v2036_v25  ;;  %vm2072_vm10 = vcmp.ge.f32.partialorder %v1555_v28, 0.0 }
 0x12f   :  { %v5055_v32 = vpop.f32.mrf.mxu1  ;;  %v4537_v34 = vpack.c.bf16 %v2133_v31, %v2132_v22  ;;  %v4540_v36 = vpack.i.b16 %v5754_v58, %v2409_v29  ;;  %v2100_v37 = vmul.f32 0.2, %v1555_v28  ;;  %v5823_v40 = vrot.slane %v2461_v30, %v5247_v8 }
 0x130   :  { %v2125_v44 = vsel %vm2069_vm9, %v2036_v25, %v2097_v15  ;;  %v5827_v60 = vrot.slane %v2462_v33, %v5247_v8  ;;  %v2419_v62 = vunpack.i.h.s16 %v5805_v4  ;;  %v2623_v2 = vcombine.low %v5754_v58, %v5791_v42  ;;  %v5100_v33 = vld [vmem:[%s6447_s2 + $0x1b8] sm:$0xff]   ;;  %v5101_v15 = vld [vmem:[%s6447_s2 + $0x170] sm:$0xff]  }
 0x131   :  { %v2039_v39 = vpop.f32.mrf.mxu1  ;;  %v5814_v7 = vrot.slane %v4537_v34, %v5247_v8  ;;  %v4534_v50 = vpack.c.bf16 %v2125_v44, %v2124_v38  ;;  %v2128_v55 = vsel %vm2072_vm10, %v1555_v28, %v2100_v37  ;;  %v2463_v35 = vcombine.low %v4540_v36, %v4541_v26  ;;  %v5102_v36 = vld [vmem:[%s6447_s2 + $0x1f0] sm:$0xff]  }
 0x132   :  { %vm2073_vm11 = vcmp.ge.f32.partialorder %v2039_v39, 0.0  ;;  %v2101_v48 = vmul.f32 0.2, %v2039_v39  ;;  %v2492_v63 = vcombine.low %v2470_v54, %v5823_v40  ;;  %v2493_v0 = vcombine.high %v2470_v54, %v5823_v40 }
 0x133   :  { %v2386_v52 = vcombine.low %v5774_v13, %v5814_v7  ;;  %v2326_v45 = vrot.slane %v4534_v50, %v5247_v8  ;;  %v5830_v51 = vrot.slane %v2463_v35, %v5247_v8  ;;  %v5844_v1 = vcombine.high %v5805_v4, %v5805_v4 }
 0x134   :  { %v2129_v53 = vsel %vm2073_vm11, %v2039_v39, %v2101_v48  ;;  %v2407_v11 = vunpack.i.h.s16 %v5795_v19  ;;  %v2421_v18 = vunpack.i.h.s16 %v5817_v49  ;;  %v2509_v46 = vrot.slane %v2493_v0, %v5247_v8 }
 0x135   :  { %v4535_v59 = vpack.c.bf16 %v2129_v53, %v2128_v55  ;;  %v2334_v3 = vcombine.low %v5781_v16, %v2326_v45  ;;  %v2335_v47 = vcombine.high %v5781_v16, %v2326_v45  ;;  %v2495_v6 = vcombine.high %v5827_v60, %v5830_v51  ;;  %v5103_v45 = vld [vmem:[%s6447_s2 + $0x130] sm:$0xff]  }
 0x136   :  { %v2494_v12 = vcombine.low %v5827_v60, %v5830_v51  ;;  %v2502_v20 = vrot.slane %v2492_v63, %v5247_v8  ;;  %v2395_v27 = vunpack.i.h.s16 %v5747_v56  ;;  %v5865_v10 = vcombine.high %v5817_v49, %v5817_v49 }
 0x137   :  { %v2333_v5 = vrot.slane %v4535_v59, %v5247_v8  ;;  %v5851_v43 = vrot.slane %v2334_v3, %v5247_v8  ;;  %v5857_v22 = vrot.slane %v2335_v47, %v5247_v8  ;;  %v2523_v25 = vrot.slane %v2495_v6, %v5247_v8  ;;  %v5106_v59 = vld [vmem:[%s6447_s2 + $0x1e8] sm:$0xff]  }
 0x138   :  { %v2516_v26 = vrot.slane %v2494_v12, %v5247_v8  ;;  %v2405_v28 = vunpack.i.h.s16 %v5787_v17  ;;  %v4542_v29 = vpack.i.b16 %v5817_v49, %v2419_v62  ;;  %v4543_v56 = vpack.i.b16 %v5844_v1, %v2421_v18 }
 0x139   :  { %v2336_v16 = vcombine.low %v5784_v21, %v2333_v5  ;;  %v2337_v24 = vcombine.high %v5784_v21, %v2333_v5  ;;  %v2526_v30 = vcombine.low %v2509_v46, %v2523_v25  ;;  %v2527_v31 = vcombine.high %v2509_v46, %v2523_v25  ;;  %v5099_v21 = vld [vmem:[%s6447_s2 + $0x138] sm:$0xff]   ;;  %v5108_v25 = vld [vmem:[%s6447_s2 + $0x1a8] sm:$0xff]  }
 0x13a   :  { %v2524_v32 = vcombine.low %v2502_v20, %v2516_v26  ;;  %v4549_v34 = vpack.i.b16 %v5801_v23, %v2407_v11  ;;  %v2525_v17 = vcombine.high %v2502_v20, %v2516_v26  ;;  %v2397_v37 = vunpack.i.h.s16 %v5750_v57 }
 0x13b   :  { %v2351_v38 = vrot.slane %v2336_v16, %v5247_v8  ;;  %v2429_v39 = vunpack.i.h.s16 %v5857_v22  ;;  %v5887_v41 = vrot.slane %v2337_v24, %v5247_v8  ;;  %4020 = vmatprep.mubr.bf16.mxu0 %v2526_v30  ;;  %4069 = vmatprep.mubr.bf16.mxu1 %v2527_v31  ;;  %v2366_v23 = vcombine.high %v5851_v43, %v5851_v43  ;;  %v5107_v24 = vld [vmem:[%s6447_s2 + $0x128] sm:$0xff]  }
 0x13c   :  { %v2529_v44 = vcombine.low %v5865_v10, %v5851_v43  ;;  %v4548_v48 = vpack.i.b16 %v5795_v19, %v2405_v28  ;;  %v2621_v50 = vcombine.low %v5764_v61, %v5778_v14  ;;  %4021 = vmatmul.mubr.bf16.vlgmr.msra.gmra.mxu0 %v2524_v32  ;;  %4070 = vmatmul.mubr.bf16.vlgmr.msra.gmra.mxu1 %v2525_v17  ;;  %v5104_v19 = vld [vmem:[%s6447_s2 + $0x1b0] sm:$0xff]   ;;  %v2427_v61 = vunpack.i.h.s16 %v5851_v43  ;;  %v5110_v28 = vld [vmem:[%s6447_s2 + $0x1e0] sm:$0xff]  }
 0x13d   :  { %v4546_v55 = vpack.i.b16 %v5750_v57, %v2395_v27  ;;  %v2368_v35 = vcombine.high %v5857_v22, %v5857_v22  ;;  %4793 = vmatpush3.bf16.msra.mxu0 %v5099_v21  ;;  %4821 = vmatpush3.bf16.msra.mxu1 %v5100_v33  ;;  %v2431_v53 = vunpack.i.h.s16 %v2366_v23  ;;  %v2528_v54 = vcombine.low %v4542_v29, %v4543_v56  ;;  %v5105_v57 = vld [vmem:[%s6447_s2 + $0x168] sm:$0xff]   ;;  %v5109_v27 = vld [vmem:[%s6447_s2 + $0x160] sm:$0xff]  }
 0x13e   :  { %v2435_v14 = vunpack.i.h.s16 %v2351_v38  ;;  %4794 = vmatprep.subr.bf16.mxu0 %v5101_v15  ;;  %4822 = vmatprep.subr.bf16.mxu1 %v5102_v36  ;;  %v4547_v62 = vpack.i.b16 %v5760_v9, %v2397_v37  ;;  %v2622_v63 = vcombine.low %v4548_v48, %v4549_v34  ;;  %v2531_v0 = vcombine.low %v2351_v38, %v5887_v41  ;;  %v5111_v15 = vld [vmem:[%s6447_s2 + $0x120] sm:$0xff]  }
 0x13f   :  { %v4544_v3 = vpack.i.b16 %v2366_v23, %v2429_v39  ;;  %v4545_v47 = vpack.i.b16 %v2368_v35, %v2431_v53  ;;  %v5915_v5 = vrot.slane %v2529_v44, %v5247_v8  ;;  %v5918_v11 = vrot.slane %v2621_v50, %v5247_v8  ;;  %v5112_v37 = vld [vmem:[%s6447_s2 + $0x1a0] sm:$0xff]   ;;  %v5113_v39 = vld [vmem:[%s6447_s2 + $0x158] sm:$0xff]  }
 0x140   :  { %v2620_v6 = vcombine.low %v4546_v55, %v4547_v62  ;;  %v5921_v12 = vrot.slane %v2622_v63, %v5247_v8  ;;  %v5927_v9 = vrot.slane %v2623_v2, %v5247_v8  ;;  %v5929_v18 = vcombine.high %v2351_v38, %v2351_v38 }
 0x141   :  { %v2437_v16 = vunpack.i.h.s16 %v5887_v41  ;;  %v2530_v46 = vcombine.low %v4544_v3, %v4545_v47  ;;  %v2538_v20 = vrot.slane %v2528_v54, %v5247_v8  ;;  %4795 = vmatpush3.bf16.msra.mxu0 %v5103_v45  ;;  %4823 = vmatpush3.bf16.msra.mxu1 %v5104_v19  ;;  %v2425_v29 = vunpack.i.h.s16 %v5865_v10  ;;  %v5115_v3 = vld [vmem:[%s6447_s2 + $0x118] sm:$0xff]  }
 0x142   :  { %4796 = vmatprep.subr.bf16.mxu0 %v5105_v57  ;;  %4824 = vmatprep.subr.bf16.mxu1 %v5106_v59  ;;  %v5940_v2 = vrot.slane %v2620_v6, %v5247_v8  ;;  %v2655_v26 = vcombine.high %v5921_v12, %v5927_v9  ;;  %v5955_v31 = vrot.slane %v2531_v0, %v5247_v8  ;;  %v5114_v0 = vld [vmem:[%s6447_s2 + $0x1d8] sm:$0xff]  }
 0x143   :  { %v5952_v30 = vrot.slane %v2530_v46, %v5247_v8  ;;  %v2561_v32 = vcombine.high %v2538_v20, %v5915_v5  ;;  %v4551_v21 = vpack.i.b16 %v5857_v22, %v2427_v61  ;;  %v4552_v33 = vpack.i.b16 %v5887_v41, %v2435_v14 }
 0x144   :  { %v2560_v56 = vcombine.low %v2538_v20, %v5915_v5  ;;  %v2653_v34 = vcombine.high %v5940_v2, %v5918_v11  ;;  %v4553_v38 = vpack.i.b16 %v5929_v18, %v2437_v16  ;;  %v2683_v36 = vrot.slane %v2655_v26, %v5247_v8  ;;  %v5118_v20 = vld [vmem:[%s6447_s2 + $0x1d0] sm:$0xff]  }
 0x145   :  { %v2563_v10 = vcombine.high %v5952_v30, %v5955_v31  ;;  %v2562_v17 = vcombine.low %v5952_v30, %v5955_v31  ;;  %4797 = vmatpush3.bf16.msra.mxu0 %v5107_v24  ;;  %4825 = vmatpush3.bf16.msra.mxu1 %v5108_v25  ;;  %v4550_v23 = vpack.i.b16 %v5851_v43, %v2425_v29 }
 0x146   :  { %4798 = vmatprep.subr.bf16.mxu0 %v5109_v27  ;;  %4826 = vmatprep.subr.bf16.mxu1 %v5110_v28  ;;  %v2577_v44 = vrot.slane %v2561_v32, %v5247_v8  ;;  %v4557_v55 = vcombine.high %v5754_v58, %v5791_v42  ;;  %v2570_v35 = vrot.slane %v2560_v56, %v5247_v8  ;;  %v5122_v56 = vld [vmem:[%s6447_s2 + $0x1c8] sm:$0xff]  }
 0x147   :  { %v2591_v48 = vrot.slane %v2563_v10, %v5247_v8  ;;  %v2584_v50 = vrot.slane %v2562_v17, %v5247_v8  ;;  %v2669_v53 = vrot.slane %v2653_v34, %v5247_v8  ;;  %v2654_v54 = vcombine.low %v5921_v12, %v5927_v9 }
 0x148   :  { %v2689_v45 = vcombine.low %v4550_v23, %v4551_v21  ;;  %v4554_v14 = vcombine.high %v5851_v43, %v5857_v22  ;;  %v2691_v57 = vcombine.low %v4552_v33, %v4553_v38  ;;  %v5116_v43 = vld [vmem:[%s6447_s2 + $0x198] sm:$0xff]   ;;  %v5117_v22 = vld [vmem:[%s6447_s2 + $0x150] sm:$0xff]   ;;  %v6003_v6 = vrot.slane %v4557_v55, %v5247_v8  ;;  %v5125_v23 = vld [vmem:[%s6447_s2 + $0x140] sm:$0xff]  }
 0x149   :  { %v2594_v19 = vcombine.low %v2577_v44, %v2591_v48  ;;  %v2595_v61 = vcombine.high %v2577_v44, %v2591_v48  ;;  %4799 = vmatpush3.bf16.msra.mxu0 %v5111_v15  ;;  %v2592_v59 = vcombine.low %v2570_v35, %v2584_v50  ;;  %v2593_v62 = vcombine.high %v2570_v35, %v2584_v50 }
 0x14a   :  { %v2686_v63 = vcombine.low %v2669_v53, %v2683_v36  ;;  %4827 = vmatpush3.bf16.msra.mxu1 %v5112_v37  ;;  %4800 = vmatprep.subr.bf16.mxu0 %v5113_v39  ;;  %v2687_v47 = vcombine.high %v2669_v53, %v2683_v36  ;;  %v2776_v16 = vcombine.low %v5823_v40, %v5827_v60  ;;  %v2439_v38 = vunpack.i.h.s16 %v5929_v18  ;;  %v5124_v39 = vld [vmem:[%s6447_s2 + $0x188] sm:$0xff]  }
 0x14b   :  { %4028 = vmatprep.mubr.bf16.mxu0 %v2594_v19  ;;  %4077 = vmatprep.mubr.bf16.mxu1 %v2595_v61  ;;  %v2652_v46 = vcombine.low %v5940_v2, %v5918_v11  ;;  %v2688_v24 = vcombine.low %v5817_v49, %v5844_v1  ;;  %v6015_v25 = vrot.slane %v2691_v57, %v5247_v8  ;;  %v5119_v2 = vld [vmem:[%s6447_s2 + $0x110] sm:$0xff]   ;;  %v5121_v1 = vld [vmem:[%s6447_s2 + $0x148] sm:$0xff]   ;;  %v5127_v61 = vld [vmem:[%s6447_s2 + $0x100] sm:$0xff]  }
 0x14c   :  { %4029 = vmatmul.mubr.bf16.gmra.mxu0 %v2592_v59  ;;  %4078 = vmatmul.mubr.bf16.gmra.mxu1 %v2593_v62  ;;  %v2778_v26 = vcombine.low %v5830_v51, %v6003_v6  ;;  %v6023_v27 = vrot.slane %v2654_v54, %v5247_v8  ;;  %v6026_v28 = vrot.slane %v2689_v45, %v5247_v8  ;;  %v5120_v49 = vld [vmem:[%s6447_s2 + $0x190] sm:$0xff]  }
 0x14d   :  { %4118 = vmatprep.mubr.bf16.mxu0 %v2686_v63  ;;  %4167 = vmatprep.mubr.bf16.mxu1 %v2687_v47  ;;  %v6035_v29 = vrot.slane %v4554_v14, %v5247_v8  ;;  %v6038_v32 = vrot.slane %v2776_v16, %v5247_v8  ;;  %v2393_v33 = vrot.slane %v2386_v52, %v5247_v8  ;;  %v5123_v52 = vld [vmem:[%s6447_s2 + $0x108] sm:$0xff]   ;;  %v5129_v63 = vld [vmem:[%s6447_s2 + $0x278] sm:$0xff]  }
 0x14e   :  { %4828 = vmatprep.subr.bf16.mxu1 %v5114_v0  ;;  %4801 = vmatpush3.bf16.msra.mxu0 %v5115_v3  ;;  %v6041_v21 = vrot.slane %v2778_v26, %v5247_v8  ;;  %v6051_v34 = vrot.slane %v2652_v46, %v5247_v8  ;;  %v6055_v10 = vrot.slane %v2688_v24, %v5247_v8 }
 0x14f   :  { %4829 = vmatpush3.bf16.msra.mxu1 %v5116_v43  ;;  %4802 = vmatprep.subr.bf16.mxu0 %v5117_v22  ;;  %v2723_v17 = vcombine.high %v6035_v29, %v6015_v25  ;;  %v2369_v36 = vcombine.high %v5887_v41, %v5887_v41  ;;  %v2298_v37 = vcombine.high %v5754_v58, %v5754_v58  ;;  %v5126_v58 = vld [vmem:[%s6447_s2 + $0x1c0] sm:$0xff]   ;;  %v5130_v43 = vld [vmem:[%s6447_s2 + $0x2f8] sm:$0xff]  }
 0x150   :  { %4830 = vmatprep.subr.bf16.mxu1 %v5118_v20  ;;  %v2808_v13 = vcombine.low %v6038_v32, %v6041_v21  ;;  %v2809_v7 = vcombine.high %v6038_v32, %v6041_v21  ;;  %v2684_v18 = vcombine.low %v6051_v34, %v6023_v27  ;;  %v2685_v15 = vcombine.high %v6051_v34, %v6023_v27  ;;  %v5169_v32 = vld [vmem:[%s6447_s2 + $0x368] sm:$0xff]  }
 0x151   :  { %v2721_v44 = vcombine.high %v6055_v10, %v6026_v28  ;;  %v2300_v48 = vcombine.high %v5791_v42, %v5791_v42  ;;  %v2876_v41 = vcombine.low %v5918_v11, %v5921_v12  ;;  %v2720_v50 = vcombine.low %v6055_v10, %v6026_v28  ;;  %v5170_v21 = vld [vmem:[%s6447_s2 + $0x3e8] sm:$0xff]  }
 0x152   :  { %4803 = vmatpush3.bf16.msra.mxu0 %v5119_v2  ;;  %v2722_v55 = vcombine.low %v6035_v29, %v6015_v25  ;;  %v2441_v35 = vunpack.i.h.s16 %v2369_v36  ;;  %v4555_v53 = vpack.i.b16 %v2369_v36, %v2439_v38  ;;  %v2751_v54 = vrot.slane %v2723_v17, %v5247_v8 }
 0x153   :  { %4831 = vmatpush3.bf16.msra.mxu1 %v5120_v49  ;;  %4804 = vmatprep.subr.bf16.mxu0 %v5121_v1  ;;  %v2779_v42 = vcombine.high %v5830_v51, %v6003_v6  ;;  %v2415_v45 = vunpack.i.h.s16 %v2298_v37  ;;  %v2417_v19 = vunpack.i.h.s16 %v2300_v48  ;;  %v2912_v57 = vcombine.low %v2369_v36, %v2393_v33  ;;  %v5128_v51 = vld [vmem:[%s6447_s2 + $0x180] sm:$0xff]   ;;  %v5134_v36 = vld [vmem:[%s6447_s2 + $0x2f0] sm:$0xff]  }
 0x154   :  { %4832 = vmatprep.subr.bf16.mxu1 %v5122_v56  ;;  %v4556_v14 = vpack.i.b16 %v2393_v33, %v2441_v35  ;;  %v2921_v59 = vcombine.high %v6026_v28, %v6035_v29  ;;  %v2920_v62 = vcombine.low %v6026_v28, %v6035_v29  ;;  %v2821_v0 = vcombine.high %v5915_v5, %v5952_v30  ;;  %v5131_v29 = vld [vmem:[%s6447_s2 + $0x238] sm:$0xff]  }
 0x155   :  { %v4558_v3 = vpack.i.b16 %v2300_v48, %v2415_v45  ;;  %v4559_v47 = vpack.i.b16 %v5805_v4, %v2417_v19  ;;  %v2737_v22 = vrot.slane %v2721_v44, %v5247_v8  ;;  %v2777_v6 = vcombine.high %v5823_v40, %v5827_v60  ;;  %v5138_v45 = vld [vmem:[%s6447_s2 + $0x2e8] sm:$0xff]  }
 0x156   :  { %4805 = vmatpush3.bf16.msra.mxu0 %v5123_v52  ;;  %v2812_v16 = vcombine.low %v4555_v53, %v4556_v14  ;;  %v2919_v46 = vrot.slane %v2912_v57, %v5247_v8  ;;  %v6120_v20 = vrot.slane %v2722_v55, %v5247_v8  ;;  %v6123_v24 = vrot.slane %v2779_v42, %v5247_v8  ;;  %v5137_v55 = vld [vmem:[%s6447_s2 + $0x268] sm:$0xff]  }
 0x157   :  { %4833 = vmatpush3.bf16.msra.mxu1 %v5124_v39  ;;  %4806 = vmatprep.subr.bf16.mxu0 %v5125_v23  ;;  %v2820_v4 = vcombine.low %v5915_v5, %v5952_v30  ;;  %v2868_v26 = vcombine.low %v4558_v3, %v4559_v47  ;;  %v2754_v2 = vcombine.low %v2737_v22, %v2751_v54  ;;  %v5132_v30 = vld [vmem:[%s6447_s2 + $0x2b8] sm:$0xff]   ;;  %v5142_v47 = vld [vmem:[%s6447_s2 + $0x2e0] sm:$0xff]  }
 0x158   :  { %4834 = vmatprep.subr.bf16.mxu1 %v5126_v58  ;;  %v2819_v49 = vrot.slane %v2812_v16, %v5247_v8  ;;  %v2923_v1 = vcombine.high %v6015_v25, %v2919_v46  ;;  %v2922_v40 = vcombine.low %v6015_v25, %v2919_v46  ;;  %v2755_v60 = vcombine.high %v2737_v22, %v2751_v54  ;;  %v5133_v25 = vld [vmem:[%s6447_s2 + $0x270] sm:$0xff]   ;;  %v5144_v22 = vld [vmem:[%s6447_s2 + $0x2a0] sm:$0xff]   ;;  %v5146_v16 = vld [vmem:[%s6447_s2 + $0x2d8] sm:$0xff]  }
 0x159   :  { %v6134_v33 = vrot.slane %v2821_v0, %v5247_v8  ;;  %v6137_v5 = vrot.slane %v2868_v26, %v5247_v8  ;;  %v6148_v17 = vrot.slane %v2921_v59, %v5247_v8  ;;  %v6157_v37 = vrot.slane %v2820_v4, %v5247_v8  ;;  %v5141_v0 = vld [vmem:[%s6447_s2 + $0x260] sm:$0xff]   ;;  %v5147_v46 = vld [vmem:[%s6447_s2 + $0x218] sm:$0xff]   ;;  %v5150_v4 = vld [vmem:[%s6447_s2 + $0x2d0] sm:$0xff]  }
 0x15a   :  { %4807 = vmatpush3.bf16.msra.mxu0 %v5127_v61  ;;  %v2823_v56 = vcombine.high %v5955_v31, %v2819_v49  ;;  %v2822_v38 = vcombine.low %v5955_v31, %v2819_v49  ;;  %v6151_v52 = vrot.slane %v2923_v1, %v5247_v8  ;;  %v6162_v23 = vrot.slane %v2876_v41, %v5247_v8  ;;  %v5135_v41 = vld [vmem:[%s6447_s2 + $0x230] sm:$0xff]   ;;  %v5153_v49 = vld [vmem:[%s6447_s2 + $0x248] sm:$0xff]  }
 0x15b   :  { %4835 = vmatpush3.bf16.msra.mxu1 %v5128_v51  ;;  %4848 = vmatprep.subr.bf16.mxu0 %v5129_v63  ;;  %v2878_v39 = vcombine.low %v5927_v9, %v6137_v5  ;;  %v6165_v31 = vrot.slane %v2922_v40, %v5247_v8  ;;  %v6187_v34 = vrot.slane %v2920_v62, %v5247_v8  ;;  %v5140_v63 = vld [vmem:[%s6447_s2 + $0x2a8] sm:$0xff]   ;;  %v5151_v26 = vld [vmem:[%s6447_s2 + $0x210] sm:$0xff]  }
 0x15c   :  { %4876 = vmatprep.subr.bf16.mxu1 %v5130_v43  ;;  %v6174_v44 = vrot.slane %v2822_v38, %v5247_v8  ;;  %v2954_v48 = vcombine.low %v6148_v17, %v6151_v52  ;;  %v2955_v27 = vcombine.high %v6148_v17, %v6151_v52  ;;  %v2730_v42 = vrot.slane %v2720_v50, %v5247_v8  ;;  %v5139_v50 = vld [vmem:[%s6447_s2 + $0x228] sm:$0xff]   ;;  %v5143_v43 = vld [vmem:[%s6447_s2 + $0x220] sm:$0xff]   ;;  %v5161_v38 = vld [vmem:[%s6447_s2 + $0x378] sm:$0xff]  }
 0x15d   :  { %4119 = vmatmul.mubr.bf16.vlgmr.msra.gmra.mxu0 %v2684_v18  ;;  %v6171_v18 = vrot.slane %v2823_v56, %v5247_v8  ;;  %v6182_v58 = vrot.slane %v2878_v39, %v5247_v8  ;;  %v2793_v14 = vrot.slane %v2777_v6, %v5247_v8  ;;  %v2952_v59 = vcombine.low %v6187_v34, %v6165_v31  ;;  %v5145_v6 = vld [vmem:[%s6447_s2 + $0x258] sm:$0xff]   ;;  %v5154_v1 = vld [vmem:[%s6447_s2 + $0x2c8] sm:$0xff]   ;;  %v5160_v56 = vld [vmem:[%s6447_s2 + $0x280] sm:$0xff]  }
 0x15e   :  { %4168 = vmatmul.mubr.bf16.vlgmr.msra.gmra.mxu1 %v2685_v15  ;;  %4126 = vmatprep.mubr.bf16.mxu0 %v2754_v2  ;;  %v5136_v15 = vld [vmem:[%s6447_s2 + $0x2b0] sm:$0xff]   ;;  %v2852_v54 = vcombine.low %v6157_v37, %v6174_v44  ;;  %v2853_v19 = vcombine.high %v6157_v37, %v6174_v44  ;;  %v2953_v28 = vcombine.high %v6187_v34, %v6165_v31  ;;  %v5155_v40 = vld [vmem:[%s6447_s2 + $0x208] sm:$0xff]   ;;  %v5163_v39 = vld [vmem:[%s6447_s2 + $0x338] sm:$0xff]  }
 0x15f   :  { %4175 = vmatprep.mubr.bf16.mxu1 %v2755_v60  ;;  %4849 = vmatpush3.bf16.msra.mxu0 %v5131_v29  ;;  %v2854_v35 = vcombine.low %v6134_v33, %v6171_v18  ;;  %v2855_v53 = vcombine.high %v6134_v33, %v6171_v18  ;;  %v2908_v61 = vcombine.low %v6162_v23, %v6182_v58  ;;  %v5152_v2 = vld [vmem:[%s6447_s2 + $0x290] sm:$0xff]   ;;  %v5156_v60 = vld [vmem:[%s6447_s2 + $0x288] sm:$0xff]   ;;  %v5157_v29 = vld [vmem:[%s6447_s2 + $0x240] sm:$0xff]  }
 0x160   :  { %4877 = vmatpush3.bf16.msra.mxu1 %v5132_v30  ;;  %4850 = vmatprep.subr.bf16.mxu0 %v5133_v25  ;;  %v2909_v57 = vcombine.high %v6162_v23, %v6182_v58  ;;  %v2752_v10 = vcombine.low %v2730_v42, %v6120_v20  ;;  %v2753_v62 = vcombine.high %v2730_v42, %v6120_v20  ;;  %v5148_v20 = vld [vmem:[%s6447_s2 + $0x298] sm:$0xff]   ;;  %v5158_v30 = vld [vmem:[%s6447_s2 + $0x2c0] sm:$0xff]   ;;  %v5166_v42 = vld [vmem:[%s6447_s2 + $0x3f0] sm:$0xff]  }
 0x161   :  { %4878 = vmatprep.subr.bf16.mxu1 %v5134_v36  ;;  %v2810_v51 = vcombine.low %v2793_v14, %v6123_v24  ;;  %v2811_v3 = vcombine.high %v2793_v14, %v6123_v24  ;;  %v5149_v24 = vld [vmem:[%s6447_s2 + $0x250] sm:$0xff]   ;;  %v5159_v25 = vld [vmem:[%s6447_s2 + $0x200] sm:$0xff]   ;;  %v5162_v36 = vld [vmem:[%s6447_s2 + $0x3f8] sm:$0xff]  }
 0x162   :  { %v5173_v18 = vld [vmem:[%s6447_s2 + $0x360] sm:$0xff]   ;;  %v5177_v14 = vld [vmem:[%s6447_s2 + $0x358] sm:$0xff]  }
 0x163   :  { %4851 = vmatpush3.bf16.msra.mxu0 %v5135_v41  ;;  %v5164_v41 = vld [vmem:[%s6447_s2 + $0x3b8] sm:$0xff]  }
 0x164   :  { %4879 = vmatpush3.bf16.msra.mxu1 %v5136_v15  ;;  %4852 = vmatprep.subr.bf16.mxu0 %v5137_v55  ;;  %v5165_v15 = vld [vmem:[%s6447_s2 + $0x370] sm:$0xff]   ;;  %v2877_v55 = vcombine.high %v5918_v11, %v5921_v12  ;;  %v5178_v37 = vld [vmem:[%s6447_s2 + $0x3d8] sm:$0xff]  }
 0x165   :  { %4127 = vmatmul.mubr.bf16.gmra.mxu0 %v2752_v10  ;;  %4880 = vmatprep.subr.bf16.mxu1 %v5138_v45  ;;  %v2879_v45 = vcombine.high %v5927_v9, %v6137_v5  ;;  %v5167_v11 = vld [vmem:[%s6447_s2 + $0x330] sm:$0xff]   ;;  %v5172_v5 = vld [vmem:[%s6447_s2 + $0x3a8] sm:$0xff]   ;;  %v5179_v44 = vld [vmem:[%s6447_s2 + $0x318] sm:$0xff]  }
 0x166   :  { %4176 = vmatmul.mubr.bf16.gmra.mxu1 %v2753_v62  ;;  %4216 = vmatprep.mubr.bf16.mxu0 %v2810_v51  ;;  %v5168_v12 = vld [vmem:[%s6447_s2 + $0x3b0] sm:$0xff]   ;;  %v2893_v9 = vrot.slane %v2877_v55, %v5247_v8 }
 0x167   :  { %4853 = vmatpush3.bf16.msra.mxu0 %v5139_v50  ;;  %4265 = vmatprep.mubr.bf16.mxu1 %v2811_v3  ;;  %v5181_v10 = vld [vmem:[%s6447_s2 + $0x350] sm:$0xff]   ;;  %v5187_v3 = vld [vmem:[%s6447_s2 + $0x308] sm:$0xff]  }
 0x168   :  { %4881 = vmatpush3.bf16.msra.mxu1 %v5140_v63  ;;  %4854 = vmatprep.subr.bf16.mxu0 %v5141_v0  ;;  %v5182_v50 = vld [vmem:[%s6447_s2 + $0x3d0] sm:$0xff]   ;;  %v5185_v63 = vld [vmem:[%s6447_s2 + $0x348] sm:$0xff]  }
 0x169   :  { %4882 = vmatprep.subr.bf16.mxu1 %v5142_v47  ;;  %v5183_v62 = vld [vmem:[%s6447_s2 + $0x310] sm:$0xff]   ;;  %v5186_v0 = vld [vmem:[%s6447_s2 + $0x3c8] sm:$0xff]  }
 0x16a   :  { %v5184_v51 = vld [vmem:[%s6447_s2 + $0x390] sm:$0xff]   ;;  %v5188_v47 = vld [vmem:[%s6447_s2 + $0x388] sm:$0xff]  }
 0x16b   :  { %4855 = vmatpush3.bf16.msra.mxu0 %v5143_v43  ;;  %v5189_v43 = vld [vmem:[%s6447_s2 + $0x340] sm:$0xff]  }
 0x16c   :  { %4883 = vmatpush3.bf16.msra.mxu1 %v5144_v22  ;;  %4856 = vmatprep.subr.bf16.mxu0 %v5145_v6  ;;  %v5190_v22 = vld [vmem:[%s6447_s2 + $0x3c0] sm:$0xff]  }
 0x16d   :  { %4884 = vmatprep.subr.bf16.mxu1 %v5146_v16  ;;  %v5191_v6 = vld [vmem:[%s6447_s2 + $0x300] sm:$0xff]  }
 0x16e   :  { %v5192_v16 = vld [vmem:[%s6447_s2 + $0x380] sm:$0xff]  }
 0x16f   :  { %4857 = vmatpush3.bf16.msra.mxu0 %v5147_v46 }
 0x170   :  { %4885 = vmatpush3.bf16.msra.mxu1 %v5148_v20  ;;  %4858 = vmatprep.subr.bf16.mxu0 %v5149_v24 }
 0x171   :  { %4886 = vmatprep.subr.bf16.mxu1 %v5150_v4 }
 0x173   :  { %4859 = vmatpush3.bf16.msra.mxu0 %v5151_v26 }
 0x174   :  { %4887 = vmatpush3.bf16.msra.mxu1 %v5152_v2  ;;  %4860 = vmatprep.subr.bf16.mxu0 %v5153_v49 }
 0x175   :  { %4888 = vmatprep.subr.bf16.mxu1 %v5154_v1 }
 0x177   :  { %4861 = vmatpush3.bf16.msra.mxu0 %v5155_v40 }
 0x178   :  { %4889 = vmatpush3.bf16.msra.mxu1 %v5156_v60  ;;  %4862 = vmatprep.subr.bf16.mxu0 %v5157_v29 }
 0x179   :  { %4890 = vmatprep.subr.bf16.mxu1 %v5158_v30 }
 0x17b   :  { %4863 = vmatpush3.bf16.msra.mxu0 %v5159_v25 }
 0x17c   :  { %4891 = vmatpush3.bf16.msra.mxu1 %v5160_v56  ;;  %4904 = vmatprep.subr.bf16.mxu0 %v5161_v38 }
 0x17d   :  { %4932 = vmatprep.subr.bf16.mxu1 %v5162_v36 }
 0x17e   :  { %4217 = vmatmul.mubr.bf16.vlgmr.msra.gmra.mxu0 %v2808_v13  ;;  %v2907_v13 = vrot.slane %v2879_v45, %v5247_v8 }
 0x17f   :  { %4266 = vmatmul.mubr.bf16.vlgmr.msra.gmra.mxu1 %v2809_v7  ;;  %4224 = vmatprep.mubr.bf16.mxu0 %v2854_v35  ;;  %v5171_v7 = vld [vmem:[%s6447_s2 + $0x328] sm:$0xff]   ;;  %v5174_v35 = vld [vmem:[%s6447_s2 + $0x3e0] sm:$0xff]  }
 0x180   :  { %4273 = vmatprep.mubr.bf16.mxu1 %v2855_v53  ;;  %4905 = vmatpush3.bf16.msra.mxu0 %v5163_v39  ;;  %v2910_v33 = vcombine.low %v2893_v9, %v2907_v13  ;;  %v2911_v8 = vcombine.high %v2893_v9, %v2907_v13  ;;  %v5175_v53 = vld [vmem:[%s6447_s2 + $0x320] sm:$0xff]  }
 0x181   :  { %4933 = vmatpush3.bf16.msra.mxu1 %v5164_v41  ;;  %4906 = vmatprep.subr.bf16.mxu0 %v5165_v15 }
 0x182   :  { %4934 = vmatprep.subr.bf16.mxu1 %v5166_v42 }
 0x184   :  { %4907 = vmatpush3.bf16.msra.mxu0 %v5167_v11 }
 0x185   :  { %4935 = vmatpush3.bf16.msra.mxu1 %v5168_v12  ;;  %4908 = vmatprep.subr.bf16.mxu0 %v5169_v32 }
 0x186   :  { %4225 = vmatmul.mubr.bf16.gmra.mxu0 %v2852_v54  ;;  %4936 = vmatprep.subr.bf16.mxu1 %v5170_v21  ;;  %v5176_v54 = vld [vmem:[%s6447_s2 + $0x3a0] sm:$0xff]  }
 0x187   :  { %4274 = vmatmul.mubr.bf16.gmra.mxu1 %v2853_v19  ;;  %4314 = vmatprep.mubr.bf16.mxu0 %v2910_v33  ;;  %v5180_v19 = vld [vmem:[%s6447_s2 + $0x398] sm:$0xff]  }
 0x188   :  { %4909 = vmatpush3.bf16.msra.mxu0 %v5171_v7  ;;  %4363 = vmatprep.mubr.bf16.mxu1 %v2911_v8 }
 0x189   :  { %4937 = vmatpush3.bf16.msra.mxu1 %v5172_v5  ;;  %4910 = vmatprep.subr.bf16.mxu0 %v5173_v18 }
 0x18a   :  { %4938 = vmatprep.subr.bf16.mxu1 %v5174_v35 }
 0x18c   :  { %4911 = vmatpush3.bf16.msra.mxu0 %v5175_v53 }
 0x18d   :  { %4939 = vmatpush3.bf16.msra.mxu1 %v5176_v54  ;;  %4912 = vmatprep.subr.bf16.mxu0 %v5177_v14 }
 0x18e   :  { %4940 = vmatprep.subr.bf16.mxu1 %v5178_v37 }
 0x190   :  { %4913 = vmatpush3.bf16.msra.mxu0 %v5179_v44 }
 0x191   :  { %4941 = vmatpush3.bf16.msra.mxu1 %v5180_v19  ;;  %4914 = vmatprep.subr.bf16.mxu0 %v5181_v10 }
 0x192   :  { %4942 = vmatprep.subr.bf16.mxu1 %v5182_v50 }
 0x194   :  { %4915 = vmatpush3.bf16.msra.mxu0 %v5183_v62 }
 0x195   :  { %4943 = vmatpush3.bf16.msra.mxu1 %v5184_v51  ;;  %4916 = vmatprep.subr.bf16.mxu0 %v5185_v63 }
 0x196   :  { %4944 = vmatprep.subr.bf16.mxu1 %v5186_v0 }
 0x198   :  { %4917 = vmatpush3.bf16.msra.mxu0 %v5187_v3 }
 0x199   :  { %4945 = vmatpush3.bf16.msra.mxu1 %v5188_v47  ;;  %4918 = vmatprep.subr.bf16.mxu0 %v5189_v43 }
 0x19a   :  { %4946 = vmatprep.subr.bf16.mxu1 %v5190_v22 }
 0x19c   :  { %4919 = vmatpush3.bf16.msra.mxu0 %v5191_v6 }
 0x19d   :  { %4947 = vmatpush3.bf16.msra.mxu1 %v5192_v16 }
 0x19f   :  { %4315 = vmatmul.mubr.bf16.vlgmr.msra.gmra.mxu0 %v2908_v61 }
 0x1a0   :  { %4364 = vmatmul.mubr.bf16.vlgmr.msra.gmra.mxu1 %v2909_v57  ;;  %4322 = vmatprep.mubr.bf16.mxu0 %v2954_v48 }
 0x1a1   :  { %4371 = vmatprep.mubr.bf16.mxu1 %v2955_v27 }
 0x1a7   :  { %4323 = vmatmul.mubr.bf16.gmra.mxu0 %v2952_v59 }
 0x1a8   :  { %4372 = vmatmul.mubr.bf16.gmra.mxu1 %v2953_v28 }
 0x1fc   :  { %v4752_v61 = vpop.f32.mrf.mxu0  ;;  %v4780_v46 = vpop.f32.mrf.mxu1 }
 0x1fe   :  { %v4753_v23 = vpop.f32.mrf.mxu0  ;;  %v4781_v58 = vpop.f32.mrf.mxu1 }
 0x1ff   :  { %v4754_v33 = vadd.f32 %v4753_v23, %v4752_v61  ;;  %v4782_v5 = vadd.f32 %v4781_v58, %v4780_v46 }
 0x200   :  { %v4755_v57 = vpop.f32.mrf.mxu0  ;;  %v4783_v20 = vpop.f32.mrf.mxu1 }
 0x201   :  { %v4072_v14 = vadd.f32 %v4782_v5, %v4754_v33 }
 0x202   :  { %v4756_v24 = vpop.f32.mrf.mxu0  ;;  %v4784_v48 = vpop.f32.mrf.mxu1 }
 0x203   :  { %v4757_v35 = vadd.f32 %v4756_v24, %v4755_v57  ;;  %v4785_v53 = vadd.f32 %v4784_v48, %v4783_v20 }
 0x205   :  { %v4075_v10 = vadd.f32 %v4785_v53, %v4757_v35 }
 0x20c   :  { %v4758_v4 = vpop.f32.mrf.mxu0  ;;  %v4786_v26 = vpop.f32.mrf.mxu1 }
 0x20e   :  { %v4759_v17 = vpop.f32.mrf.mxu0  ;;  %v4787_v52 = vpop.f32.mrf.mxu1 }
 0x20f   :  { %v4760_v62 = vadd.f32 %v4759_v17, %v4758_v4  ;;  %v4788_v51 = vadd.f32 %v4787_v52, %v4786_v26 }
 0x210   :  { %v4761_v27 = vpop.f32.mrf.mxu0  ;;  %v4789_v2 = vpop.f32.mrf.mxu1 }
 0x211   :  { %v4080_v58 = vadd.f32 %v4788_v51, %v4760_v62 }
 0x212   :  { %v4762_v49 = vpop.f32.mrf.mxu0  ;;  %v4790_v59 = vpop.f32.mrf.mxu1 }
 0x213   :  { %v4763_v6 = vadd.f32 %v4762_v49, %v4761_v27  ;;  %v4791_v16 = vadd.f32 %v4790_v59, %v4789_v2 }
 0x215   :  { %v4083_v17 = vadd.f32 %v4791_v16, %v4763_v6 }
 0x21d   :  { %v4808_v1 = vpop.f32.mrf.mxu0 }
 0x21e   :  { %v4836_v40 = vpop.f32.mrf.mxu1 }
 0x21f   :  { %v4809_v31 = vpop.f32.mrf.mxu0 }
 0x220   :  { %v4837_v34 = vpop.f32.mrf.mxu1  ;;  %v4810_v8 = vadd.f32 %v4809_v31, %v4808_v1 }
 0x221   :  { %v4811_v28 = vpop.f32.mrf.mxu0  ;;  %v4838_v63 = vadd.f32 %v4837_v34, %v4836_v40 }
 0x222   :  { %v4839_v60 = vpop.f32.mrf.mxu1  ;;  %v4121_v19 = vadd.f32 %v4810_v8, %v4072_v14 }
 0x223   :  { %v4812_v29 = vpop.f32.mrf.mxu0 }
 0x224   :  { %v4840_v30 = vpop.f32.mrf.mxu1  ;;  %v4813_v44 = vadd.f32 %v4812_v29, %v4811_v28  ;;  %v4170_v43 = vadd.f32 %v4838_v63, %v4121_v19 }
 0x225   :  { %v4814_v25 = vpop.f32.mrf.mxu0  ;;  %v4841_v61 = vadd.f32 %v4840_v30, %v4839_v60 }
 0x226   :  { %v4842_v56 = vpop.f32.mrf.mxu1  ;;  %v4124_v47 = vadd.f32 %v4813_v44, %v4075_v10 }
 0x227   :  { %v4815_v38 = vpop.f32.mrf.mxu0 }
 0x228   :  { %v4843_v36 = vpop.f32.mrf.mxu1  ;;  %v4816_v22 = vadd.f32 %v4815_v38, %v4814_v25  ;;  %v4173_v24 = vadd.f32 %v4841_v61, %v4124_v47 }
 0x229   :  { %v4817_v39 = vpop.f32.mrf.mxu0  ;;  %v4844_v34 = vadd.f32 %v4843_v36, %v4842_v56 }
 0x22a   :  { %v4845_v41 = vpop.f32.mrf.mxu1  ;;  %v4129_v1 = vadd.f32 %v4816_v22, %v4080_v58 }
 0x22b   :  { %v4818_v15 = vpop.f32.mrf.mxu0 }
 0x22c   :  { %v4846_v55 = vpop.f32.mrf.mxu1  ;;  %v4819_v31 = vadd.f32 %v4818_v15, %v4817_v39  ;;  %v4178_v60 = vadd.f32 %v4844_v34, %v4129_v1 }
 0x22e   :  { %v4132_v30 = vadd.f32 %v4819_v31, %v4083_v17 }
 0x23e   :  { %v4864_v42 = vpop.f32.mrf.mxu0 }
 0x23f   :  { %v4892_v45 = vpop.f32.mrf.mxu1 }
 0x240   :  { %v4865_v11 = vpop.f32.mrf.mxu0 }
 0x241   :  { %v4893_v12 = vpop.f32.mrf.mxu1  ;;  %v4866_v0 = vadd.f32 %v4865_v11, %v4864_v42  ;;  %v4847_v11 = vadd.f32 %v4846_v55, %v4845_v41 }
 0x242   :  { %v4867_v32 = vpop.f32.mrf.mxu0  ;;  %v4894_v4 = vadd.f32 %v4893_v12, %v4892_v45 }
 0x243   :  { %v4895_v9 = vpop.f32.mrf.mxu1  ;;  %v4219_v57 = vadd.f32 %v4866_v0, %v4170_v43  ;;  %v4181_v36 = vadd.f32 %v4847_v11, %v4132_v30 }
 0x244   :  { %v4868_v21 = vpop.f32.mrf.mxu0 }
 0x245   :  { %v4896_v13 = vpop.f32.mrf.mxu1  ;;  %v4869_v46 = vadd.f32 %v4868_v21, %v4867_v32  ;;  %v4268_v28 = vadd.f32 %v4894_v4, %v4219_v57 }
 0x246   :  { %v4870_v7 = vpop.f32.mrf.mxu0  ;;  %v4897_v49 = vadd.f32 %v4896_v13, %v4895_v9 }
 0x247   :  { %v4898_v18 = vpop.f32.mrf.mxu1  ;;  %v4222_v52 = vadd.f32 %v4869_v46, %v4173_v24 }
 0x248   :  { %v4871_v54 = vpop.f32.mrf.mxu0 }
 0x249   :  { %v4899_v37 = vpop.f32.mrf.mxu1  ;;  %v4872_v29 = vadd.f32 %v4871_v54, %v4870_v7  ;;  %v4271_v32 = vadd.f32 %v4897_v49, %v4222_v52 }
 0x24a   :  { %v4873_v50 = vpop.f32.mrf.mxu0  ;;  %v4900_v7 = vadd.f32 %v4899_v37, %v4898_v18 }
 0x24b   :  { %v4901_v3 = vpop.f32.mrf.mxu1  ;;  %v4227_v15 = vadd.f32 %v4872_v29, %v4178_v60 }
 0x24c   :  { %v4874_v23 = vpop.f32.mrf.mxu0 }
 0x24d   :  { %v4902_v20 = vpop.f32.mrf.mxu1  ;;  %v4875_v45 = vadd.f32 %v4874_v23, %v4873_v50  ;;  %v4276_v35 = vadd.f32 %v4900_v7, %v4227_v15 }
 0x24e   :  { %v4903_v44 = vadd.f32 %v4902_v20, %v4901_v3 }
 0x24f   :  { %v4230_v41 = vadd.f32 %v4875_v45, %v4181_v36 }
 0x251   :  { %v4279_v50 = vadd.f32 %v4903_v44, %v4230_v41 }
 0x25f   :  { %v4920_v48 = vpop.f32.mrf.mxu0 }
 0x260   :  { %v4948_v26 = vpop.f32.mrf.mxu1 }
 0x261   :  { %v4921_v40 = vpop.f32.mrf.mxu0 }
 0x262   :  { %v4922_v27 = vadd.f32 %v4921_v40, %v4920_v48  ;;  %v4949_v2 = vpop.f32.mrf.mxu1 }
 0x263   :  { %v4923_v59 = vpop.f32.mrf.mxu0  ;;  %v4950_v38 = vadd.f32 %v4949_v2, %v4948_v26 }
 0x264   :  { %v4317_v25 = vadd.f32 %v4922_v27, %v4268_v28  ;;  %v4951_v42 = vpop.f32.mrf.mxu1 }
 0x265   :  { %v4924_v39 = vpop.f32.mrf.mxu0 }
 0x266   :  { %v4366_v12 = vadd.f32 %v4950_v38, %v4317_v25  ;;  %v4925_v21 = vadd.f32 %v4924_v39, %v4923_v59  ;;  %v4952_v33 = vpop.f32.mrf.mxu1 }
 0x267   :  { %v4926_v56 = vpop.f32.mrf.mxu0  ;;  %v4953_v13 = vadd.f32 %v4952_v33, %v4951_v42 }
 0x268   :  { %4380 = vst [vmem:[%s6448_s3] sm:$0xff] %v4366_v12  ;;  %v4320_v9 = vadd.f32 %v4925_v21, %v4271_v32  ;;  %v4954_v5 = vpop.f32.mrf.mxu1  ;;  %v4394_v47 = vmul.f32 %v4366_v12, %v4366_v12 }
 0x269   :  { %v4927_v8 = vpop.f32.mrf.mxu0 }
 0x26a   :  { %v4369_v55 = vadd.f32 %v4953_v13, %v4320_v9  ;;  %v4928_v53 = vadd.f32 %v4927_v8, %v4926_v56  ;;  %v4955_v54 = vpop.f32.mrf.mxu1 }
 0x26b   :  { %v4929_v14 = vpop.f32.mrf.mxu0  ;;  %v4956_v37 = vadd.f32 %v4955_v54, %v4954_v5 }
 0x26c   :  { %4381 = vst [vmem:[%s6448_s3 + $0x8] sm:$0xff] %v4369_v55  ;;  %v4325_v18 = vadd.f32 %v4928_v53, %v4276_v35  ;;  %v4957_v19 = vpop.f32.mrf.mxu1  ;;  %v4395_v62 = vmul.f32 %v4369_v55, %v4369_v55  ;;  %v4384_v43 = vadd.f32 %v4369_v55, %v4366_v12 }
 0x26d   :  { %v4930_v10 = vpop.f32.mrf.mxu0 }
 0x26e   :  { %v4374_v51 = vadd.f32 %v4956_v37, %v4325_v18  ;;  %v4931_v63 = vadd.f32 %v4930_v10, %v4929_v14  ;;  %v4958_v0 = vpop.f32.mrf.mxu1  ;;  %v4398_v16 = vadd.f32 %v4395_v62, %v4394_v47 }
 0x26f   :  { %v4959_v6 = vadd.f32 %v4958_v0, %v4957_v19 }
 0x270   :  { %4382 = vst [vmem:[%s6448_s3 + $0x10] sm:$0xff] %v4374_v51  ;;  %v4396_v3 = vmul.f32 %v4374_v51, %v4374_v51  ;;  %v4328_v22 = vadd.f32 %v4931_v63, %v4279_v50  ;;  %v4385_v61 = vadd.f32 %v4384_v43, %v4374_v51 }
 0x272   :  { %v4377_v46 = vadd.f32 %v4959_v6, %v4328_v22  ;;  %v4399_v23 = vadd.f32 %v4398_v16, %v4396_v3 }
 0x274   :  { %4383 = vst [vmem:[%s6448_s3 + $0x18] sm:$0xff] %v4377_v46  ;;  %v4386_v58 = vadd.f32 %v4385_v61, %v4377_v46  ;;  %v4397_v57 = vmul.f32 %v4377_v46, %v4377_v46 }
 0x276   :  { %v4387_v20 = vrot.slane %v4386_v58, 4  ;;  %v4400_v24 = vadd.f32 %v4399_v23, %v4397_v57 }
 0x278   :  { %v4388_v48 = vadd.f32 %v4387_v20, %v4386_v58  ;;  %v4401_v1 = vrot.slane %v4400_v24, 4 }
 0x27a   :  { %v4389_v31 = vrot.slane %v4388_v48, 2  ;;  %v4402_v4 = vadd.f32 %v4401_v1, %v4400_v24 }
 0x27c   :  { %v4390_v26 = vadd.f32 %v4389_v31, %v4388_v48  ;;  %v4403_v17 = vrot.slane %v4402_v4, 2 }
 0x27e   :  { %v4391_v52 = vrot.slane %v4390_v26, 1  ;;  %v4404_v40 = vadd.f32 %v4403_v17, %v4402_v4 }
 0x280   :  { %v4392_v34 = vadd.f32 %v4391_v52, %v4390_v26  ;;  %v4405_v28 = vrot.slane %v4404_v40, 1 }
 0x282   :  { %4393 = vst [vmem:[%s6449_s4] sm:$0x1] %v4392_v34  ;;  %v4406_v29 = vadd.f32 %v4405_v28, %v4404_v40 }
 0x284   :  { %4407 = vst [vmem:[%s6450_s5] sm:$0x1] %v4406_v29 }

</bundles_post_ra>
